<compile_context>
chip_gen: v7x
topology: tpu7x:2x2x1
jax: 0.10.0
libtpu: 0.0.40
codegen_flags: <defaults>
</compile_context>

<pallas_src>
import jax
import jax.numpy as jnp
from jax.experimental import pallas as pl
from jax.experimental.pallas import tpu as pltpu

LATENT_DIM = 100
K_PAD = 128                      # latent dim zero-padded to a full MXU lane tile
IMG_SHAPE = (3, 16, 16)          # scaled-down stand-in for (3, 256, 256)
OUT_DIM = IMG_SHAPE[0] * IMG_SHAPE[1] * IMG_SHAPE[2]
HIDDEN = (256, 512, 1024)        # AdvancedGenerator hidden widths
BN_EPS = 0.9                     # nn.BatchNorm1d(n, 0.9) -> eps = 0.9 (see note above)
LRELU_SLOPE = 0.2


def _leaky_relu(x):
    return jnp.where(x > 0, x, LRELU_SLOPE * x)


def _batchnorm_train_fused(x, gamma, beta):
    """Training-mode BatchNorm1d, single reduction pass + single FMA per element."""
    mean = jnp.mean(x, axis=0, keepdims=True)
    meansq = jnp.mean(x * x, axis=0, keepdims=True)
    var = meansq - mean * mean                       # biased (population) variance
    a = gamma * jax.lax.rsqrt(var + BN_EPS)
    b = beta - mean * a
    return x * a + b


def generator_kernel(z_ref,
                     w1_ref, b1_ref,
                     w2_ref, g2_ref, be2_ref,
                     w3_ref, g3_ref, be3_ref,
                     w4_ref, b4_ref,
                     out_ref):
    # --- early layers: tiny, recomputed per output-feature tile (keeps the grid
    # axis "parallel" so v7x megacore can split tiles across TensorCores) ---

    # Linear(latent -> 256) + LeakyReLU   (z / w1 already bf16, accumulate f32)
    h = jnp.dot(z_ref[...], w1_ref[...],
                preferred_element_type=jnp.float32) + b1_ref[...]
    h = _leaky_relu(h)

    # Linear(256 -> 512) [bias cancels in BN] + BatchNorm1d(512) + LeakyReLU
    h = jnp.dot(h.astype(jnp.bfloat16), w2_ref[...],
                preferred_element_type=jnp.float32)
    h = _leaky_relu(_batchnorm_train_fused(h, g2_ref[...], be2_ref[...]))

    # Linear(512 -> 1024) [bias cancels in BN] + BatchNorm1d(1024) + LeakyReLU
    h = jnp.dot(h.astype(jnp.bfloat16), w3_ref[...],
                preferred_element_type=jnp.float32)
    h = _leaky_relu(_batchnorm_train_fused(h, g3_ref[...], be3_ref[...]))

    # --- final layer, tiled along output features: Linear(1024 -> TN) + Tanh ---
    y = jnp.dot(h.astype(jnp.bfloat16), w4_ref[...],
                preferred_element_type=jnp.float32) + b4_ref[...]
    out_ref[...] = jnp.tanh(y)


def init_params(key):
    """PyTorch Linear default init U(-1/sqrt(fan_in), +1/sqrt(fan_in)).

    Weights are stored as (in, out) == W.T in bf16; w1 is zero-padded along the
    latent dim to K_PAD=128.  b2/b3 are generated (module has them) but are dead
    parameters in this forward pass (they cancel in training-mode BN).
    """
    dims = (LATENT_DIM,) + HIDDEN + (OUT_DIM,)
    params = {}
    keys = jax.random.split(key, 2 * (len(dims) - 1))
    for i in range(len(dims) - 1):
        fan_in, fan_out = dims[i], dims[i + 1]
        bound = 1.0 / float(fan_in) ** 0.5
        w = jax.random.uniform(keys[2 * i], (fan_in, fan_out), jnp.float32,
                               -bound, bound)
        if i == 0:
            w = jnp.pad(w, ((0, K_PAD - fan_in), (0, 0)))   # zero rows: exact no-op
        params[f"w{i + 1}"] = w.astype(jnp.bfloat16)
        params[f"b{i + 1}"] = jax.random.uniform(keys[2 * i + 1], (1, fan_out),
                                                 jnp.float32, -bound, bound)
    # BatchNorm affine params for BN(512) and BN(1024): gamma=1, beta=0 at init.
    for idx, n in zip((2, 3), HIDDEN[1:]):
        params[f"g{idx}"] = jnp.ones((1, n), jnp.float32)
        params[f"be{idx}"] = jnp.zeros((1, n), jnp.float32)
    return params


def _pick_tile_n(out_dim, target):
    """Largest power-of-2 multiple of 128 that divides out_dim and is <= target."""
    if out_dim % 128 != 0:
        return out_dim          # fall back to a single full-width tile
    tn = 128
    while tn * 2 <= target and out_dim % (tn * 2) == 0:
        tn *= 2
    return tn


def generator_forward(z, params, *, max_tile_n=2048):
    """z: (B, LATENT_DIM) f32 -> img: (B, C, H, W) f32."""
    B = z.shape[0]
    assert B >= 2, "training-mode BatchNorm1d needs batch > 1"

    # Zero-pad latent dim to 128 and cast the MXU operand to bf16 host-side.
    z_pad = jnp.pad(z, ((0, 0), (0, K_PAD - LATENT_DIM))).astype(jnp.bfloat16)

    tn = _pick_tile_n(OUT_DIM, max_tile_n)
    grid = (OUT_DIM // tn,)
    const = lambda n: (0, 0)    # weights of the early layers: fetched once, resident

    h1, h2, h3 = HIDDEN
    flat = pl.pallas_call(
        generator_kernel,
        out_shape=jax.ShapeDtypeStruct((B, OUT_DIM), jnp.float32),
        grid_spec=pltpu.PrefetchScalarGridSpec(
            num_scalar_prefetch=0,
            grid=grid,
            in_specs=[
                pl.BlockSpec((B, K_PAD), const),          # z (bf16)
                pl.BlockSpec((K_PAD, h1), const),         # w1 (bf16)
                pl.BlockSpec((1, h1), const),             # b1
                pl.BlockSpec((h1, h2), const),            # w2 (bf16)
                pl.BlockSpec((1, h2), const),             # gamma2
                pl.BlockSpec((1, h2), const),             # beta2
                pl.BlockSpec((h2, h3), const),            # w3 (bf16)
                pl.BlockSpec((1, h3), const),             # gamma3
                pl.BlockSpec((1, h3), const),             # beta3
                pl.BlockSpec((h3, tn), lambda n: (0, n)), # w4 tile (bf16, pipelined)
                pl.BlockSpec((1, tn), lambda n: (0, n)),  # b4 tile
            ],
            out_specs=pl.BlockSpec((B, tn), lambda n: (0, n)),
        ),
        compiler_params=pltpu.CompilerParams(
            dimension_semantics=("parallel",),            # tiles independent -> megacore
            vmem_limit_bytes=32 * 1024 * 1024,            # safe on v5e/v6e/v7x
        ),
    )(z_pad,
      params["w1"], params["b1"],
      params["w2"], params["g2"], params["be2"],
      params["w3"], params["g3"], params["be3"],
      params["w4"], params["b4"])

    # NCHW output, as in PyTorch: img.view(B, C, H, W)
    return flat.reshape(B, *IMG_SHAPE)


if __name__ == "__main__":
    key = jax.random.PRNGKey(0)
    pkey, zkey = jax.random.split(key)
    params = init_params(pkey)

    batch = 8
    z = jax.random.normal(zkey, (batch, LATENT_DIM), jnp.float32)

    # max_tile_n=256 at the toy OUT_DIM=768 exercises a 3-step pipelined grid;
    # at the real (3,256,256) size the default (2048) would be used instead.
    img = generator_forward(z, params, max_tile_n=256)
    jax.block_until_ready(img)

    assert img.shape == (batch,) + IMG_SHAPE, img.shape
    assert bool(jnp.all(jnp.isfinite(img)))
    assert bool(jnp.all(jnp.abs(img) <= 1.0))     # tanh output range
    print("KERNEL_OK")
</pallas_src>

<mosaic_0001>
module attributes {stable_mosaic.version = 11 : i64} {
  func.func @generator_kernel(%arg0: i32, %arg1: memref<8x128xbf16, #tpu.memory_space<vmem>>, %arg2: memref<128x256xbf16, #tpu.memory_space<vmem>>, %arg3: memref<1x256xf32, #tpu.memory_space<vmem>>, %arg4: memref<256x512xbf16, #tpu.memory_space<vmem>>, %arg5: memref<1x512xf32, #tpu.memory_space<vmem>>, %arg6: memref<1x512xf32, #tpu.memory_space<vmem>>, %arg7: memref<512x1024xbf16, #tpu.memory_space<vmem>>, %arg8: memref<1x1024xf32, #tpu.memory_space<vmem>>, %arg9: memref<1x1024xf32, #tpu.memory_space<vmem>>, %arg10: memref<1024x256xbf16, #tpu.memory_space<vmem>>, %arg11: memref<1x256xf32, #tpu.memory_space<vmem>>, %arg12: memref<8x256xf32, #tpu.memory_space<vmem>>) attributes {dimension_semantics = [#tpu.dimension_semantics<parallel>], iteration_bounds = array<i64: 3>, scalar_prefetch = 0 : i64, scratch_operands = 0 : i64, tpu.core_type = #tpu.core_type<tc>, window_params = [{pipeline_mode = #tpu.pipeline_mode<synchronous>, transform_indices = @transform_0, window_bounds = array<i64: 8, 128>}, {pipeline_mode = #tpu.pipeline_mode<synchronous>, transform_indices = @transform_1, window_bounds = array<i64: 128, 256>}, {pipeline_mode = #tpu.pipeline_mode<synchronous>, transform_indices = @transform_2, window_bounds = array<i64: 1, 256>}, {pipeline_mode = #tpu.pipeline_mode<synchronous>, transform_indices = @transform_3, window_bounds = array<i64: 256, 512>}, {pipeline_mode = #tpu.pipeline_mode<synchronous>, transform_indices = @transform_4, window_bounds = array<i64: 1, 512>}, {pipeline_mode = #tpu.pipeline_mode<synchronous>, transform_indices = @transform_5, window_bounds = array<i64: 1, 512>}, {pipeline_mode = #tpu.pipeline_mode<synchronous>, transform_indices = @transform_6, window_bounds = array<i64: 512, 1024>}, {pipeline_mode = #tpu.pipeline_mode<synchronous>, transform_indices = @transform_7, window_bounds = array<i64: 1, 1024>}, {pipeline_mode = #tpu.pipeline_mode<synchronous>, transform_indices = @transform_8, window_bounds = array<i64: 1, 1024>}, {transform_indices = @transform_9, window_bounds = array<i64: 1024, 256>}, {transform_indices = @transform_10, window_bounds = array<i64: 1, 256>}, {transform_indices = @transform_11, window_bounds = array<i64: 8, 256>}]} {
    %c0 = arith.constant 0 : index
    %c0_0 = arith.constant 0 : index
    %0 = vector.load %arg1[%c0, %c0_0] : memref<8x128xbf16, #tpu.memory_space<vmem>>, vector<8x128xbf16>
    %c0_1 = arith.constant 0 : index
    %c0_2 = arith.constant 0 : index
    %1 = vector.load %arg2[%c0_1, %c0_2] : memref<128x256xbf16, #tpu.memory_space<vmem>>, vector<128x256xbf16>
    %cst = arith.constant dense<0.000000e+00> : vector<8x256xf32>
    %2 = tpu.matmul %0, %1, %cst {dimension_numbers = #tpu.dot_dimension_numbers<[1], [0], [0], [1], [0, 0, 1, 1], [], []>} : vector<8x128xbf16>, vector<128x256xbf16>, vector<8x256xf32> -> vector<8x256xf32>
    %c0_3 = arith.constant 0 : index
    %c0_4 = arith.constant 0 : index
    %3 = vector.load %arg3[%c0_3, %c0_4] : memref<1x256xf32, #tpu.memory_space<vmem>>, vector<1x256xf32>
    %4 = vector.broadcast %3 : vector<1x256xf32> to vector<8x256xf32>
    %5 = arith.addf %2, %4 : vector<8x256xf32>
    %cst_5 = arith.constant 0.000000e+00 : f32
    %6 = vector.broadcast %cst_5 : f32 to vector<8x256xf32>
    %7 = arith.cmpf ogt, %5, %6 : vector<8x256xf32>
    %cst_6 = arith.constant 2.000000e-01 : f32
    %8 = vector.broadcast %cst_6 : f32 to vector<8x256xf32>
    %9 = arith.mulf %8, %5 : vector<8x256xf32>
    %10 = arith.select %7, %5, %9 : vector<8x256xi1>, vector<8x256xf32>
    %11 = arith.truncf %10 : vector<8x256xf32> to vector<8x256xbf16>
    %c0_7 = arith.constant 0 : index
    %c0_8 = arith.constant 0 : index
    %12 = vector.load %arg4[%c0_7, %c0_8] : memref<256x512xbf16, #tpu.memory_space<vmem>>, vector<256x512xbf16>
    %cst_9 = arith.constant dense<0.000000e+00> : vector<8x512xf32>
    %13 = tpu.matmul %11, %12, %cst_9 {dimension_numbers = #tpu.dot_dimension_numbers<[1], [0], [0], [1], [0, 0, 1, 1], [], []>} : vector<8x256xbf16>, vector<256x512xbf16>, vector<8x512xf32> -> vector<8x512xf32>
    %c0_10 = arith.constant 0 : index
    %c0_11 = arith.constant 0 : index
    %14 = vector.load %arg5[%c0_10, %c0_11] : memref<1x512xf32, #tpu.memory_space<vmem>>, vector<1x512xf32>
    %c0_12 = arith.constant 0 : index
    %c0_13 = arith.constant 0 : index
    %15 = vector.load %arg6[%c0_12, %c0_13] : memref<1x512xf32, #tpu.memory_space<vmem>>, vector<1x512xf32>
    %cst_14 = arith.constant dense<0.000000e+00> : vector<512xf32>
    %16 = vector.multi_reduction <add>, %13, %cst_14 [0] : vector<8x512xf32> to vector<512xf32>
    %17 = vector.shape_cast %16 : vector<512xf32> to vector<1x512xf32>
    %cst_15 = arith.constant 8.000000e+00 : f32
    %18 = vector.broadcast %cst_15 : f32 to vector<1x512xf32>
    %19 = arith.divf %17, %18 : vector<1x512xf32>
    %20 = arith.mulf %13, %13 : vector<8x512xf32>
    %cst_16 = arith.constant dense<0.000000e+00> : vector<512xf32>
    %21 = vector.multi_reduction <add>, %20, %cst_16 [0] : vector<8x512xf32> to vector<512xf32>
    %22 = vector.shape_cast %21 : vector<512xf32> to vector<1x512xf32>
    %cst_17 = arith.constant 8.000000e+00 : f32
    %23 = vector.broadcast %cst_17 : f32 to vector<1x512xf32>
    %24 = arith.divf %22, %23 : vector<1x512xf32>
    %25 = arith.mulf %19, %19 : vector<1x512xf32>
    %26 = arith.subf %24, %25 : vector<1x512xf32>
    %cst_18 = arith.constant 0.899999976 : f32
    %27 = vector.broadcast %cst_18 : f32 to vector<1x512xf32>
    %28 = arith.addf %26, %27 : vector<1x512xf32>
    %29 = math.rsqrt %28 : vector<1x512xf32>
    %30 = arith.mulf %14, %29 : vector<1x512xf32>
    %31 = arith.mulf %19, %30 : vector<1x512xf32>
    %32 = arith.subf %15, %31 : vector<1x512xf32>
    %33 = vector.broadcast %30 : vector<1x512xf32> to vector<8x512xf32>
    %34 = arith.mulf %13, %33 : vector<8x512xf32>
    %35 = vector.broadcast %32 : vector<1x512xf32> to vector<8x512xf32>
    %36 = arith.addf %34, %35 : vector<8x512xf32>
    %cst_19 = arith.constant 0.000000e+00 : f32
    %37 = vector.broadcast %cst_19 : f32 to vector<8x512xf32>
    %38 = arith.cmpf ogt, %36, %37 : vector<8x512xf32>
    %cst_20 = arith.constant 2.000000e-01 : f32
    %39 = vector.broadcast %cst_20 : f32 to vector<8x512xf32>
    %40 = arith.mulf %39, %36 : vector<8x512xf32>
    %41 = arith.select %38, %36, %40 : vector<8x512xi1>, vector<8x512xf32>
    %42 = arith.truncf %41 : vector<8x512xf32> to vector<8x512xbf16>
    %c0_21 = arith.constant 0 : index
    %c0_22 = arith.constant 0 : index
    %43 = vector.load %arg7[%c0_21, %c0_22] : memref<512x1024xbf16, #tpu.memory_space<vmem>>, vector<512x1024xbf16>
    %cst_23 = arith.constant dense<0.000000e+00> : vector<8x1024xf32>
    %44 = tpu.matmul %42, %43, %cst_23 {dimension_numbers = #tpu.dot_dimension_numbers<[1], [0], [0], [1], [0, 0, 1, 1], [], []>} : vector<8x512xbf16>, vector<512x1024xbf16>, vector<8x1024xf32> -> vector<8x1024xf32>
    %c0_24 = arith.constant 0 : index
    %c0_25 = arith.constant 0 : index
    %45 = vector.load %arg8[%c0_24, %c0_25] : memref<1x1024xf32, #tpu.memory_space<vmem>>, vector<1x1024xf32>
    %c0_26 = arith.constant 0 : index
    %c0_27 = arith.constant 0 : index
    %46 = vector.load %arg9[%c0_26, %c0_27] : memref<1x1024xf32, #tpu.memory_space<vmem>>, vector<1x1024xf32>
    %cst_28 = arith.constant dense<0.000000e+00> : vector<1024xf32>
    %47 = vector.multi_reduction <add>, %44, %cst_28 [0] : vector<8x1024xf32> to vector<1024xf32>
    %48 = vector.shape_cast %47 : vector<1024xf32> to vector<1x1024xf32>
    %cst_29 = arith.constant 8.000000e+00 : f32
    %49 = vector.broadcast %cst_29 : f32 to vector<1x1024xf32>
    %50 = arith.divf %48, %49 : vector<1x1024xf32>
    %51 = arith.mulf %44, %44 : vector<8x1024xf32>
    %cst_30 = arith.constant dense<0.000000e+00> : vector<1024xf32>
    %52 = vector.multi_reduction <add>, %51, %cst_30 [0] : vector<8x1024xf32> to vector<1024xf32>
    %53 = vector.shape_cast %52 : vector<1024xf32> to vector<1x1024xf32>
    %cst_31 = arith.constant 8.000000e+00 : f32
    %54 = vector.broadcast %cst_31 : f32 to vector<1x1024xf32>
    %55 = arith.divf %53, %54 : vector<1x1024xf32>
    %56 = arith.mulf %50, %50 : vector<1x1024xf32>
    %57 = arith.subf %55, %56 : vector<1x1024xf32>
    %cst_32 = arith.constant 0.899999976 : f32
    %58 = vector.broadcast %cst_32 : f32 to vector<1x1024xf32>
    %59 = arith.addf %57, %58 : vector<1x1024xf32>
    %60 = math.rsqrt %59 : vector<1x1024xf32>
    %61 = arith.mulf %45, %60 : vector<1x1024xf32>
    %62 = arith.mulf %50, %61 : vector<1x1024xf32>
    %63 = arith.subf %46, %62 : vector<1x1024xf32>
    %64 = vector.broadcast %61 : vector<1x1024xf32> to vector<8x1024xf32>
    %65 = arith.mulf %44, %64 : vector<8x1024xf32>
    %66 = vector.broadcast %63 : vector<1x1024xf32> to vector<8x1024xf32>
    %67 = arith.addf %65, %66 : vector<8x1024xf32>
    %cst_33 = arith.constant 0.000000e+00 : f32
    %68 = vector.broadcast %cst_33 : f32 to vector<8x1024xf32>
    %69 = arith.cmpf ogt, %67, %68 : vector<8x1024xf32>
    %cst_34 = arith.constant 2.000000e-01 : f32
    %70 = vector.broadcast %cst_34 : f32 to vector<8x1024xf32>
    %71 = arith.mulf %70, %67 : vector<8x1024xf32>
    %72 = arith.select %69, %67, %71 : vector<8x1024xi1>, vector<8x1024xf32>
    %73 = arith.truncf %72 : vector<8x1024xf32> to vector<8x1024xbf16>
    %c0_35 = arith.constant 0 : index
    %c0_36 = arith.constant 0 : index
    %74 = vector.load %arg10[%c0_35, %c0_36] : memref<1024x256xbf16, #tpu.memory_space<vmem>>, vector<1024x256xbf16>
    %cst_37 = arith.constant dense<0.000000e+00> : vector<8x256xf32>
    %75 = tpu.matmul %73, %74, %cst_37 {dimension_numbers = #tpu.dot_dimension_numbers<[1], [0], [0], [1], [0, 0, 1, 1], [], []>} : vector<8x1024xbf16>, vector<1024x256xbf16>, vector<8x256xf32> -> vector<8x256xf32>
    %c0_38 = arith.constant 0 : index
    %c0_39 = arith.constant 0 : index
    %76 = vector.load %arg11[%c0_38, %c0_39] : memref<1x256xf32, #tpu.memory_space<vmem>>, vector<1x256xf32>
    %77 = vector.broadcast %76 : vector<1x256xf32> to vector<8x256xf32>
    %78 = arith.addf %75, %77 : vector<8x256xf32>
    %79 = math.tanh %78 : vector<8x256xf32>
    %c0_40 = arith.constant 0 : index
    %c0_41 = arith.constant 0 : index
    %80 = vector.load %arg12[%c0_40, %c0_41] : memref<8x256xf32, #tpu.memory_space<vmem>>, vector<8x256xf32>
    tpu.vector_store %arg12[%c0_40, %c0_41], %79 {strides = array<i32>} : memref<8x256xf32, #tpu.memory_space<vmem>>, vector<8x256xf32>,
    return
  }
  func.func @transform_0(%arg0: i32) -> (i32, i32) {
    %c0_i32 = arith.constant 0 : i32
    %c0_i32_0 = arith.constant 0 : i32
    %c0_i32_1 = arith.constant 0 : i32
    return %c0_i32, %c0_i32_0 : i32, i32
  }
  func.func @transform_1(%arg0: i32) -> (i32, i32) {
    %c0_i32 = arith.constant 0 : i32
    %c0_i32_0 = arith.constant 0 : i32
    %c0_i32_1 = arith.constant 0 : i32
    return %c0_i32, %c0_i32_0 : i32, i32
  }
  func.func @transform_2(%arg0: i32) -> (i32, i32) {
    %c0_i32 = arith.constant 0 : i32
    %c0_i32_0 = arith.constant 0 : i32
    %c0_i32_1 = arith.constant 0 : i32
    return %c0_i32, %c0_i32_0 : i32, i32
  }
  func.func @transform_3(%arg0: i32) -> (i32, i32) {
    %c0_i32 = arith.constant 0 : i32
    %c0_i32_0 = arith.constant 0 : i32
    %c0_i32_1 = arith.constant 0 : i32
    return %c0_i32, %c0_i32_0 : i32, i32
  }
  func.func @transform_4(%arg0: i32) -> (i32, i32) {
    %c0_i32 = arith.constant 0 : i32
    %c0_i32_0 = arith.constant 0 : i32
    %c0_i32_1 = arith.constant 0 : i32
    return %c0_i32, %c0_i32_0 : i32, i32
  }
  func.func @transform_5(%arg0: i32) -> (i32, i32) {
    %c0_i32 = arith.constant 0 : i32
    %c0_i32_0 = arith.constant 0 : i32
    %c0_i32_1 = arith.constant 0 : i32
    return %c0_i32, %c0_i32_0 : i32, i32
  }
  func.func @transform_6(%arg0: i32) -> (i32, i32) {
    %c0_i32 = arith.constant 0 : i32
    %c0_i32_0 = arith.constant 0 : i32
    %c0_i32_1 = arith.constant 0 : i32
    return %c0_i32, %c0_i32_0 : i32, i32
  }
  func.func @transform_7(%arg0: i32) -> (i32, i32) {
    %c0_i32 = arith.constant 0 : i32
    %c0_i32_0 = arith.constant 0 : i32
    %c0_i32_1 = arith.constant 0 : i32
    return %c0_i32, %c0_i32_0 : i32, i32
  }
  func.func @transform_8(%arg0: i32) -> (i32, i32) {
    %c0_i32 = arith.constant 0 : i32
    %c0_i32_0 = arith.constant 0 : i32
    %c0_i32_1 = arith.constant 0 : i32
    return %c0_i32, %c0_i32_0 : i32, i32
  }
  func.func @transform_9(%arg0: i32) -> (i32, i32) {
    %c0_i32 = arith.constant 0 : i32
    %c0_i32_0 = arith.constant 0 : i32
    return %c0_i32, %arg0 : i32, i32
  }
  func.func @transform_10(%arg0: i32) -> (i32, i32) {
    %c0_i32 = arith.constant 0 : i32
    %c0_i32_0 = arith.constant 0 : i32
    return %c0_i32, %arg0 : i32, i32
  }
  func.func @transform_11(%arg0: i32) -> (i32, i32) {
    %c0_i32 = arith.constant 0 : i32
    %c0_i32_0 = arith.constant 0 : i32
    return %c0_i32, %arg0 : i32, i32
  }
}

</mosaic_0001>

<bundles_post_ra>
// kernel: tpu_custom_call.1
= control target key start
LH: loop header
LB: loop body
LE: loop exit
PB: predicated region body
PF: predicated region fallthrough
CT: control target
= control target key end

     0   :  { %s7132_s0 = inlined_call_operand.hbm [shape: bf16[8,128], index: 0, kind: input, shape index: {}]   ;;  %s7133_s1 = inlined_call_operand.hbm [shape: bf16[128,256], index: 1, kind: input, shape index: {}]   ;;  %s7134_s2 = inlined_call_operand.hbm [shape: f32[1,256], index: 2, kind: input, shape index: {}]   ;;  %s7135_s3 = inlined_call_operand.hbm [shape: bf16[256,512], index: 3, kind: input, shape index: {}]   ;;  %s7136_s4 = inlined_call_operand.hbm [shape: f32[1,512], index: 4, kind: input, shape index: {}]   ;;  %s7137_s5 = inlined_call_operand.hbm [shape: f32[1,512], index: 5, kind: input, shape index: {}]   ;;  %s7138_s6 = inlined_call_operand.hbm [shape: bf16[512,1024], index: 6, kind: input, shape index: {}]   ;;  %s7139_s7 = inlined_call_operand.hbm [shape: f32[1,1024], index: 7, kind: input, shape index: {}]   ;;  %s7140_s8 = inlined_call_operand.hbm [shape: f32[1,1024], index: 8, kind: input, shape index: {}]   ;;  %s7141_s9 = inlined_call_operand.hbm [shape: bf16[1024,768], index: 9, kind: input, shape index: {}]   ;;  %s7142_s10 = inlined_call_operand.hbm [shape: f32[1,768], index: 10, kind: input, shape index: {}]   ;;  %s7143_s11 = inlined_call_operand.hbm [shape: f32[8,768], index: 11, kind: output, shape index: {}]  }
   0x1   :  { %7163 = sst [smem:[#allocation33_spill]] %s7133_s1 }
   0x2   :  { %7164 = sst [smem:[#allocation34_spill]] %s7135_s3 }
   0x3   :  { %7165 = sst [smem:[#allocation35_spill]] %s7137_s5 }
   0x4   :  { %7166 = sst [smem:[#allocation36_spill]] %s7139_s7 }
   0x5   :  { %7167 = sst [smem:[#allocation37_spill]] %s7141_s9 }
   0x6   :  { %7168 = sst [smem:[#allocation38_spill]] %s7142_s10 }
   0x7   :  { %7169 = sst [smem:[#allocation39_spill]] %s7143_s11 }
   0x8   :  { %16 = vsyncpa [#allocation3], 0 }
   0x9   :  { %17 = vsyncpa [#allocation6], 0 }
   0xa   :  { %18 = vsyncpa [#allocation9], 0 }
   0xb   :  { %19 = vsyncpa [#allocation12], 0 }
   0xc   :  { %20 = vsyncpa [#allocation15], 0 }
   0xd   :  { %21 = vsyncpa [#allocation18], 0 }
   0xe   :  { %23 = vsyncpa [#allocation18 + $0x1], 0 }
   0xf   :  { %24 = vsyncpa [#allocation4], 0 }
  0x10   :  { %26 = vsyncpa [#allocation4 + $0x1], 0  ;;  %s6314_s17 = smov 0   ;;  %s6316_s18 = smov 0  }
  0x11   :  { %s6318_s19 = smov 0   ;;  %s6320_s20 = smov 0  }
  0x12 LB: > { %7170 = sst [smem:[#allocation28_spill]] %s6219_s17  ;;  %s6233_s21 = smov [#allocation5]   ;;  %s6231_s20 = sphi %s6320_s20, %s7215_s20   ;;  %s6227_s19 = sphi %s6318_s19, %s7219_s19   ;;  %s6223_s18 = sphi %s6316_s18, %s7218_s18   ;;  %s6219_s17 = sphi %s6314_s17, %s7217_s17  }
  0x13   : > { %s327_s22 = sshll.u32 %s6233_s21, 4  ;;  %s6335_s23 = sadd.s32 4294967295, %s6231_s20   ;;  %s6340_s22 = int_to_ptr.vmem [resolvable:$true] %s327_s22 }
  0x14   : > { %p4812_p0 = scmp.ge.s32.totalorder %s6231_s20, 1  ;;  %p7148_p1 = scmp.eq.s32.totalorder %s6335_s23, 0 }
  0x15   : > { %p304_p2 = scmp.lt.s32.totalorder %s6231_s20, 4  ;;  %s6234_s25 = smov [#allocation8]  }
  0x16   : > { %s351_s26 = sshll.u32 %s6234_s25, 4  ;;  %s6235_s28 = smov [#allocation11]   ;;  %s6354_s26 = int_to_ptr.vmem [resolvable:$true] %s351_s26 }
  0x17   : > { %p6342_p3 = pnand %p4812_p0, %p304_p2  ;;  %s6356_s29 = sshll.u32 %s6235_s28, 4  ;;  %s377_s29 = int_to_ptr.vmem [resolvable:$true] %s6356_s29 }
  0x18   : > { %s7174_s1 = sld [smem:[#allocation33_spill]] }
  0x19   : > { %s7171_s24 = scalar_select %p6342_p3, 1, 0 }
  0x1a   : > { %p5384_p4 = pneg %p6342_p3 }
  0x1b   : > { %7172 = sst [smem:[#allocation29_spill]] %s7171_s24 }
  0x1c   : > { %p6350_p5 = pnand %p5384_p4, %p7148_p1 }
  0x1e   : > { %s7173_s27 = scalar_select %p6350_p5, 1, 0 }
  0x1f   : > { %s5833_s13 = scalar_lea.hbm %s7174_s1, 2048  ;;  %p6366_p7 = pneg %p6350_p5 }
  0x20   : > { %p5834_p6 = scmp.ne.s32.totalorder %s7174_s1, %s5833_s13  ;;  %p5840_p10 = scmp.lt.u32.totalorder %s5833_s13, %s7174_s1 }
  0x22   : > { %p5836_p8 = pnand %p6366_p7, %p5834_p6 }
  0x24   : > { %p5837_p9 = pneg %p5836_p8 }
  0x26   : > { %p5842_p11 = pnand %p5840_p10, %p5837_p9 }
  0x28   : > { %5845 = shalt.err (!%p5842_p11)
}
  0x29   : > { %s5846_s28 = scalar_lea.vmem %s6340_s22, 2048  ;;  %p5854_p2 = scmp.lt.s32.totalorder %s6340_s22, %s6340_s22 }
  0x2a   : > { %p5847_p12 = scmp.ne.s32.totalorder %s6340_s22, %s5846_s28  ;;  %p5855_p4 = scmp.lt.s32.totalorder %s5846_s28, %s5846_s28 }
  0x2c   : > { %p5849_p13 = pnand %p5847_p12, %p6366_p7  ;;  %p5856_p6 = por %p5855_p4, %p5854_p2 }
  0x2e   : > { %p5850_p0 = pneg %p5849_p13 }
  0x30   : > { %p5857_p8 = pnand %p5856_p6, %p5850_p0 }
  0x32   : > { %5860 = shalt.err (!%p5857_p8)
}
  0x33   : > { %s7147_s30 = smov 128   ;;  %s7150_s12 = smov 8  }
  0x34   : > { %5390 = dma.hbm_to_vmem [thread:$0]  (!%p6350_p5), %s7174_s1, 2048, %s6340_s22, [#allocation6], %s7147_s30, %s7147_s30, %s7150_s12  }
  0x35   : > { %s7176_s3 = sld [smem:[#allocation34_spill]] }
  0x3b   : > { %s5861_s25 = scalar_lea.hbm %s7176_s3, 8192 }
  0x3c   : > { %p5862_p9 = scmp.ne.s32.totalorder %s7176_s3, %s5861_s25  ;;  %p5868_p12 = scmp.lt.u32.totalorder %s5861_s25, %s7176_s3 }
  0x3e   : > { %p5864_p10 = pnand %p5862_p9, %p6366_p7 }
  0x40   : > { %p5865_p11 = pneg %p5864_p10 }
  0x42   : > { %p5870_p13 = pnand %p5868_p12, %p5865_p11 }
  0x44   : > { %5873 = shalt.err (!%p5870_p13)
}
  0x45   : > { %s5874_s22 = scalar_lea.vmem %s6354_s26, 8192  ;;  %p5882_p6 = scmp.lt.s32.totalorder %s6354_s26, %s6354_s26 }
  0x46   : > { %p5875_p0 = scmp.ne.s32.totalorder %s6354_s26, %s5874_s22  ;;  %p5883_p8 = scmp.lt.s32.totalorder %s5874_s22, %s5874_s22 }
  0x48   : > { %p5877_p2 = pnand %p5875_p0, %p6366_p7  ;;  %p5884_p9 = por %p5883_p8, %p5882_p6 }
  0x4a   : > { %p5878_p4 = pneg %p5877_p2 }
  0x4c   : > { %p5885_p10 = pnand %p5884_p9, %p5878_p4 }
  0x4e   : > { %5888 = shalt.err (!%p5885_p10)
}
  0x4f   : > { %s6238_s11 = smov 256   ;;  %s6239_s10 = smov 16  }
  0x50   : > { %5396 = dma.hbm_to_vmem [thread:$0]  (!%p6350_p5), %s7176_s3, 8192, %s6354_s26, [#allocation9], %s6238_s11, %s6238_s11, %s6239_s10  }
  0x51   : > { %s7177_s5 = sld [smem:[#allocation35_spill]] }
  0x57   : > { %s5889_s21 = scalar_lea.hbm %s7177_s5, 64 }
  0x58   : > { %p5890_p11 = scmp.ne.s32.totalorder %s7177_s5, %s5889_s21  ;;  %p5896_p0 = scmp.lt.u32.totalorder %s5889_s21, %s7177_s5 }
  0x5a   : > { %p5892_p12 = pnand %p5890_p11, %p6366_p7 }
  0x5c   : > { %p5893_p13 = pneg %p5892_p12 }
  0x5e   : > { %p5898_p2 = pnand %p5896_p0, %p5893_p13 }
  0x60   : > { %5901 = shalt.err (!%p5898_p2)
}
  0x61   : > { %s5902_s24 = scalar_lea.vmem %s377_s29, 64  ;;  %p5910_p9 = scmp.lt.s32.totalorder %s377_s29, %s377_s29 }
  0x62   : > { %p5903_p4 = scmp.ne.s32.totalorder %s377_s29, %s5902_s24  ;;  %p5911_p10 = scmp.lt.s32.totalorder %s5902_s24, %s5902_s24 }
  0x64   : > { %p5905_p6 = pnand %p5903_p4, %p6366_p7  ;;  %p5912_p1 = por %p5911_p10, %p5910_p9 }
  0x66   : > { %p5906_p8 = pneg %p5905_p6 }
  0x68   : > { %p5913_p3 = pnand %p5912_p1, %p5906_p8 }
  0x6a   : > { %5916 = shalt.err (!%p5913_p3)
}
  0x6b   : > { %5402 = dma.hbm_to_vmem [thread:$0]  (!%p6350_p5), %s7177_s5, 64, %s377_s29, [#allocation12]  }
  0x6c   : > { %s6240_s30 = smov [#allocation14]   ;;  %s7178_s7 = sld [smem:[#allocation36_spill]] }
  0x6d   : > { %s400_s10 = sshll.u32 %s6240_s30, 4  ;;  %s401_s10 = int_to_ptr.vmem [resolvable:$true] %s400_s10 }
  0x72   : > { %s5917_s15 = scalar_lea.hbm %s7178_s7, 128 }
  0x73   : > { %p5918_p11 = scmp.ne.s32.totalorder %s7178_s7, %s5917_s15  ;;  %p5924_p12 = scmp.lt.u32.totalorder %s5917_s15, %s7178_s7 }
  0x75   : > { %p5920_p1 = pnand %p5918_p11, %p6366_p7 }
  0x77   : > { %p5921_p3 = pneg %p5920_p1 }
  0x79   : > { %p5926_p13 = pnand %p5924_p12, %p5921_p3 }
  0x7b   : > { %5929 = shalt.err (!%p5926_p13)
}
  0x7c   : > { %s5930_s29 = scalar_lea.vmem %s401_s10, 128  ;;  %p5938_p6 = scmp.lt.s32.totalorder %s401_s10, %s401_s10 }
  0x7d   : > { %p5931_p0 = scmp.ne.s32.totalorder %s401_s10, %s5930_s29  ;;  %p5939_p8 = scmp.lt.s32.totalorder %s5930_s29, %s5930_s29 }
  0x7f   : > { %p5933_p2 = pnand %p5931_p0, %p6366_p7  ;;  %p5940_p9 = por %p5939_p8, %p5938_p6 }
  0x81   : > { %p5934_p4 = pneg %p5933_p2 }
  0x83   : > { %p5941_p10 = pnand %p5940_p9, %p5934_p4 }
  0x85   : > { %5944 = shalt.err (!%p5941_p10)
}
  0x86   : > { %5408 = dma.hbm_to_vmem [thread:$0]  (!%p6350_p5), %s7178_s7, 128, %s401_s10, [#allocation15]  }
  0x87   : > { %s4811_s11 = sadd.s32 4294967294, %s6231_s20   ;;  %s6452_s30 = sadd.s32 1, %s6231_s20  }
  0x88   : > { %7179 = sst [smem:[#allocation30_spill]] %s6452_s30  ;;  %s225_s13 = ssub.s32 %s6231_s20, %s6452_s30 }
  0x89   : > { %s228_s14 = sadd.s32 1, %s6227_s19  ;;  %p226_p11 = scmp.eq.s32.totalorder %s225_s13, 0 }
  0x8a   : > { %p235_p1 = scmp.ne.s32.totalorder %s6227_s19, %s6223_s18  ;;  %p236_p3 = scmp.eq.s32.totalorder %s6231_s20, 0 }
  0x8b   : > { %p241_p12 = scmp.ne.s32.totalorder %s6223_s18, %s6219_s17  ;;  %p7182_p0 = scmp.eq.s32.totalorder %s6335_s23, 0 }
  0x8c   : > { %s6463_s15 = scalar_select %p226_p11, %s6227_s19, %s228_s14  }
  0x8d   : > { %p6465_p13 = por %p236_p3, %p235_p1  ;;  %p6471_p2 = por %p7182_p0, %p241_p12 }
  0x8e   : > { %7180 = sst [smem:[#allocation31_spill]] %s6463_s15  ;;  %p291_p4 = scmp.eq.s32.totalorder %s6335_s23, 2 }
  0x8f   : > { %s7183_s10 = scalar_select %p6471_p2, 1, 0 }
  0x90   : > { %p297_p6 = scmp.eq.s32.totalorder %s4811_s11, 2  ;;  %p5432_p8 = scmp.lt.s32.totalorder %s6231_s20, 3 }
  0x91   : > { %s422_s25 = sand.u32 1, %s6231_s20   ;;  %p6478_p9 = por %p291_p4, %p235_p1 }
  0x92   : > { %p6482_p10 = por %p297_p6, %p241_p12  ;;  %s7151_s29 = sand.u32 1, %s6227_s19  }
  0x93   : > { %s7184_s28 = scalar_select %p6478_p9, 1, 0 }
  0x94   : > { %s7185_s22 = scalar_select %p6482_p10, 1, 0 }
  0x95   : > { %s4823_s24 = sshll.u32 %s7151_s29, 10  ;;  %s5311_s26 = sshll.u32 %s6231_s20, 7 }
  0x96   : > { %7186 = sst [smem:[#allocation32_spill]] %s7185_s22  ;;  %s7187_s9 = sld [smem:[#allocation37_spill]] }
  0x97   : > { %s426_s11 = scalar_lea.vmem [#allocation17], %s4823_s24  ;;  %p6497_p11 = pnand %p5432_p8, %p6465_p13 }
  0x98   : > { %s433_s1 = sshll.u32 %s426_s11, 4  ;;  %s6503_s29 = scalar_lea.sflag [#allocation18], %s422_s25  ;;  %s6501_s1 = int_to_ptr.vmem [resolvable:$true] %s433_s1 }
  0x99   : > { %s7188_s3 = scalar_select %p6497_p11, 1, 0 }
  0x9a   : > { %p7160_p3 = pneg %p6497_p11 }
  0x9c   : > { %s6493_s12 = scalar_lea.hbm %s7187_s9, %s5311_s26  ;;  %s5950_s26 = scalar_lea.hbm %s7187_s9, 49152 }
  0x9d   : > { %s5945_s13 = scalar_lea.hbm %s6493_s12, 16384  ;;  %p5951_p13 = scmp.lt.u32.totalorder %s6493_s12, %s7187_s9 }
  0x9e   : > { %p5946_p1 = scmp.ne.s32.totalorder %s6493_s12, %s5945_s13  ;;  %p5952_p4 = scmp.lt.u32.totalorder %s5950_s26, %s5945_s13 }
  0x9f   : > { %p5954_p8 = scmp.lt.u32.totalorder %s5945_s13, %s6493_s12 }
  0xa0   : > { %p5948_p12 = pnand %p7160_p3, %p5946_p1  ;;  %p5953_p6 = por %p5952_p4, %p5951_p13 }
  0xa2   : > { %p5949_p0 = pneg %p5948_p12  ;;  %p5955_p10 = por %p5954_p8, %p5953_p6 }
  0xa4   : > { %p5956_p9 = pnand %p5955_p10, %p5949_p0 }
  0xa6   : > { %5959 = shalt.err (!%p5956_p9)
}
  0xa7   : > { %s5960_s25 = scalar_lea.vmem %s6501_s1, 16384  ;;  %s6241_s24 = smov [#allocation17]  }
  0xa8   : > { %p5961_p1 = scmp.ne.s32.totalorder %s6501_s1, %s5960_s25  ;;  %s5965_s21 = sshll.u32 %s6241_s24, 4  ;;  %s5966_s21 = int_to_ptr.vmem [resolvable:$false] %s5965_s21 }
  0xa9   : > { %s5967_s14 = scalar_lea.vmem %s5966_s21, 32768  ;;  %p5968_p5 = scmp.lt.s32.totalorder %s6501_s1, %s5966_s21 }
  0xaa   : > { %p5963_p12 = pnand %p5961_p1, %p7160_p3  ;;  %p5969_p13 = scmp.lt.s32.totalorder %s5967_s14, %s5960_s25 }
  0xac   : > { %p5964_p2 = pneg %p5963_p12  ;;  %p5970_p4 = por %p5969_p13, %p5968_p5 }
  0xae   : > { %p5971_p6 = pnand %p5970_p4, %p5964_p2 }
  0xb0   : > { %5974 = shalt.err (!%p5971_p6)
}
  0xb1   : > { %s6242_s13 = smov 384   ;;  %s7189_s26 = smov 8  }
  0xb2   : > { %s7190_s11 = smov 128   ;;  %s6243_s5 = smov [#allocation2]  }
  0xb3   : > { %5415 = dma.hbm_to_vmem [thread:$0]  (!%p6497_p11), %s6493_s12, 16384, %s6501_s1, %s6503_s29, %s6242_s13, %s7190_s11, %s7189_s26  }
  0xb4   : > { %s317_s7 = sshll.u32 %s6243_s5, 4  ;;  %s6244_s24 = smov [#allocation7]   ;;  %s318_s7 = int_to_ptr.vmem [resolvable:$true] %s317_s7 }
  0xb5   : > { %s341_s9 = sshll.u32 %s6244_s24, 4  ;;  %s5975_s14 = scalar_lea.hbm %s7132_s0, 64  ;;  %s342_s9 = int_to_ptr.vmem [resolvable:$true] %s341_s9 }
  0xb6   : > { %p5976_p5 = scmp.ne.s32.totalorder %s7132_s0, %s5975_s14  ;;  %p5982_p10 = scmp.lt.u32.totalorder %s5975_s14, %s7132_s0 }
  0xb8   : > { %p5978_p2 = pnand %p5976_p5, %p6366_p7 }
  0xba   : > { %p5979_p9 = pneg %p5978_p2 }
  0xbc   : > { %p5984_p0 = pnand %p5982_p10, %p5979_p9 }
  0xbe   : > { %5987 = shalt.err (!%p5984_p0)
}
  0xbf   : > { %s5988_s1 = scalar_lea.vmem %s318_s7, 64  ;;  %p5996_p13 = scmp.lt.s32.totalorder %s318_s7, %s318_s7 }
  0xc0   : > { %p5989_p8 = scmp.ne.s32.totalorder %s318_s7, %s5988_s1  ;;  %p5997_p4 = scmp.lt.s32.totalorder %s5988_s1, %s5988_s1 }
  0xc2   : > { %p5991_p1 = pnand %p5989_p8, %p6366_p7  ;;  %p5998_p6 = por %p5997_p4, %p5996_p13 }
  0xc4   : > { %p5992_p12 = pneg %p5991_p1 }
  0xc6   : > { %p5999_p3 = pnand %p5998_p6, %p5992_p12 }
  0xc8   : > { %6002 = shalt.err (!%p5999_p3)
}
  0xc9   : > { %p7191_p5 = scmp.ne.s32.totalorder %s7173_s27, 0  ;;  %s6003_s15 = scalar_lea.hbm %s7134_s2, 32 }
  0xca   : > { %p6004_p2 = scmp.ne.s32.totalorder %s7134_s2, %s6003_s15  ;;  %p6010_p3 = scmp.lt.u32.totalorder %s6003_s15, %s7134_s2 }
  0xcb   : > { %5387 = dma.hbm_to_vmem [thread:$0]  (!%p7191_p5), %s7132_s0, 64, %s318_s7, [#allocation3]  }
  0xcc   : > { %p6006_p9 = pnand %p6004_p2, %p6366_p7 }
  0xce   : > { %p6007_p10 = pneg %p6006_p9 }
  0xd0   : > { %p6012_p0 = pnand %p6010_p3, %p6007_p10 }
  0xd2   : > { %6015 = shalt.err (!%p6012_p0)
}
  0xd3   : > { %s6016_s24 = scalar_lea.vmem %s342_s9, 32  ;;  %p6024_p13 = scmp.lt.s32.totalorder %s342_s9, %s342_s9 }
  0xd4   : > { %p6017_p8 = scmp.ne.s32.totalorder %s342_s9, %s6016_s24  ;;  %p6025_p4 = scmp.lt.s32.totalorder %s6016_s24, %s6016_s24 }
  0xd6   : > { %p6019_p1 = pnand %p6017_p8, %p6366_p7  ;;  %p6026_p6 = por %p6025_p4, %p6024_p13 }
  0xd8   : > { %p6020_p12 = pneg %p6019_p1 }
  0xda   : > { %p6027_p11 = pnand %p6026_p6, %p6020_p12 }
  0xdc   : > { %6030 = shalt.err (!%p6027_p11)
}
  0xdd   : > { %5393 = dma.hbm_to_vmem [thread:$0]  (!%p7191_p5), %s7134_s2, 32, %s342_s9, [#allocation6]  }
  0xde   : > { %s6245_s25 = smov [#allocation10]   ;;  %s6246_s1 = smov [#allocation13]  }
  0xdf   : > { %s365_s14 = sshll.u32 %s6245_s25, 4  ;;  %s386_s5 = sshll.u32 %s6246_s1, 4  ;;  %s366_s14 = int_to_ptr.vmem [resolvable:$true] %s365_s14  ;;  %s387_s5 = int_to_ptr.vmem [resolvable:$true] %s386_s5 }
  0xe0   : > { %s6031_s30 = scalar_lea.hbm %s7136_s4, 64 }
  0xe1   : > { %p6032_p11 = scmp.ne.s32.totalorder %s7136_s4, %s6031_s30  ;;  %p6038_p10 = scmp.lt.u32.totalorder %s6031_s30, %s7136_s4 }
  0xe3   : > { %p6034_p2 = pnand %p6032_p11, %p6366_p7 }
  0xe5   : > { %p6035_p9 = pneg %p6034_p2 }
  0xe7   : > { %p6040_p3 = pnand %p6038_p10, %p6035_p9 }
  0xe9   : > { %6043 = shalt.err (!%p6040_p3)
}
  0xea   : > { %s6044_s9 = scalar_lea.vmem %s366_s14, 64  ;;  %p6052_p12 = scmp.lt.s32.totalorder %s366_s14, %s366_s14 }
  0xeb   : > { %p6045_p0 = scmp.ne.s32.totalorder %s366_s14, %s6044_s9  ;;  %p6053_p13 = scmp.lt.s32.totalorder %s6044_s9, %s6044_s9 }
  0xed   : > { %p6047_p8 = pnand %p6045_p0, %p6366_p7  ;;  %p6054_p4 = por %p6053_p13, %p6052_p12 }
  0xef   : > { %p6048_p1 = pneg %p6047_p8 }
  0xf1   : > { %p6055_p6 = pnand %p6054_p4, %p6048_p1 }
  0xf3   : > { %6058 = shalt.err (!%p6055_p6)
}
  0xf4   : > { %5399 = dma.hbm_to_vmem [thread:$0]  (!%p7191_p5), %s7136_s4, 64, %s366_s14, [#allocation9]  }
  0xf5   : > { %s6059_s25 = scalar_lea.hbm %s7138_s6, 32768 }
  0xf6   : > { %p6060_p11 = scmp.ne.s32.totalorder %s7138_s6, %s6059_s25  ;;  %p6066_p10 = scmp.lt.u32.totalorder %s6059_s25, %s7138_s6 }
  0xf8   : > { %p6062_p2 = pnand %p6060_p11, %p6366_p7 }
  0xfa   : > { %p6063_p9 = pneg %p6062_p2 }
  0xfc   : > { %p6068_p3 = pnand %p6066_p10, %p6063_p9 }
  0xfe   : > { %6071 = shalt.err (!%p6068_p3)
}
  0xff   : > { %s6072_s15 = scalar_lea.vmem %s387_s5, 32768  ;;  %p6080_p12 = scmp.lt.s32.totalorder %s387_s5, %s387_s5 }
 0x100   : > { %p6073_p0 = scmp.ne.s32.totalorder %s387_s5, %s6072_s15  ;;  %p6081_p13 = scmp.lt.s32.totalorder %s6072_s15, %s6072_s15 }
 0x102   : > { %p6075_p8 = pnand %p6073_p0, %p6366_p7  ;;  %p6082_p4 = por %p6081_p13, %p6080_p12 }
 0x104   : > { %p6076_p1 = pneg %p6075_p8 }
 0x106   : > { %p6083_p6 = pnand %p6082_p4, %p6076_p1 }
 0x108   : > { %6086 = shalt.err (!%p6083_p6)
}
 0x109   : > { %s6247_s14 = smov 512   ;;  %s6248_s22 = smov 32  }
 0x10a   : > { %5405 = dma.hbm_to_vmem [thread:$0]  (!%p7191_p5), %s7138_s6, 32768, %s387_s5, [#allocation12], %s6247_s14, %s6247_s14, %s6248_s22  }
 0x10b   : > { %s6249_s9 = smov [#allocation16]   ;;  %s7192_s24 = sand.u32 1, %s6227_s19  }
 0x10c   : > { %s411_s11 = sshll.u32 %s6249_s9, 4  ;;  %s4826_s7 = sshll.u32 %s7192_s24, 1  ;;  %s412_s11 = int_to_ptr.vmem [resolvable:$true] %s411_s11 }
 0x10d   : > { %s6087_s1 = scalar_lea.hbm %s7140_s8, 128 }
 0x10e   : > { %p6088_p11 = scmp.ne.s32.totalorder %s7140_s8, %s6087_s1  ;;  %p6094_p10 = scmp.lt.u32.totalorder %s6087_s1, %s7140_s8 }
 0x110   : > { %p6090_p2 = pnand %p6088_p11, %p6366_p7 }
 0x112   : > { %p6091_p9 = pneg %p6090_p2 }
 0x114   : > { %p6096_p3 = pnand %p6094_p10, %p6091_p9 }
 0x116   : > { %6099 = shalt.err (!%p6096_p3)
}
 0x117   : > { %s6100_s5 = scalar_lea.vmem %s412_s11, 128  ;;  %p6108_p12 = scmp.lt.s32.totalorder %s412_s11, %s412_s11 }
 0x118   : > { %p6101_p0 = scmp.ne.s32.totalorder %s412_s11, %s6100_s5  ;;  %p6109_p13 = scmp.lt.s32.totalorder %s6100_s5, %s6100_s5 }
 0x11a   : > { %p6103_p8 = pnand %p6101_p0, %p6366_p7  ;;  %p6110_p4 = por %p6109_p13, %p6108_p12 }
 0x11c   : > { %p6104_p1 = pneg %p6103_p8 }
 0x11e   : > { %p6111_p6 = pnand %p6110_p4, %p6104_p1 }
 0x120   : > { %6114 = shalt.err (!%p6111_p6)
}
 0x121   : > { %5411 = dma.hbm_to_vmem [thread:$0]  (!%p7191_p5), %s7140_s8, 128, %s412_s11, [#allocation15]  }
 0x122   : > { %s5312_s13 = sshll.u32 %s6231_s20, 5  ;;  %s447_s26 = scalar_lea.vmem [#allocation19], %s4826_s7 }
 0x123   : > { %s455_s9 = sshll.u32 %s447_s26, 4  ;;  %s7193_s21 = sld [smem:[#allocation38_spill]]  ;;  %s456_s9 = int_to_ptr.vmem [resolvable:$true] %s455_s9 }
 0x124   : > { %p7194_p11 = scmp.ne.s32.totalorder %s7188_s3, 0 }
 0x126   : > { %p7195_p2 = pneg %p7194_p11 }
 0x129   : > { %s453_s25 = scalar_lea.hbm %s7193_s21, %s5312_s13  ;;  %s6120_s17 = scalar_lea.hbm %s7193_s21, 96 }
 0x12a   : > { %s6115_s1 = scalar_lea.hbm %s453_s25, 32  ;;  %p6121_p5 = scmp.lt.u32.totalorder %s453_s25, %s7193_s21 }
 0x12b   : > { %p6116_p7 = scmp.ne.s32.totalorder %s453_s25, %s6115_s1  ;;  %p6122_p3 = scmp.lt.u32.totalorder %s6120_s17, %s6115_s1 }
 0x12c   : > { %p6124_p8 = scmp.lt.u32.totalorder %s6115_s1, %s453_s25 }
 0x12d   : > { %p6118_p9 = pnand %p6116_p7, %p7195_p2  ;;  %p6123_p0 = por %p6122_p3, %p6121_p5 }
 0x12f   : > { %p6119_p10 = pneg %p6118_p9  ;;  %p6125_p1 = por %p6124_p8, %p6123_p0 }
 0x131   : > { %p6126_p12 = pnand %p6125_p1, %p6119_p10 }
 0x133   : > { %6129 = shalt.err (!%p6126_p12)
}
 0x134   : > { %s6130_s7 = scalar_lea.vmem %s456_s9, 32  ;;  %p7196_p4 = pmov %p7195_p2 }
 0x135   : > { %p6131_p13 = scmp.ne.s32.totalorder %s456_s9, %s6130_s7  ;;  %s6250_s15 = smov [#allocation19]  }
 0x136   : > { %s6135_s5 = sshll.u32 %s6250_s15, 4  ;;  %s6136_s5 = int_to_ptr.vmem [resolvable:$false] %s6135_s5 }
 0x137   : > { %p6133_p6 = pnand %p6131_p13, %p7196_p4  ;;  %s6137_s14 = scalar_lea.vmem %s6136_s5, 64 }
 0x138   : > { %p6138_p2 = scmp.lt.s32.totalorder %s456_s9, %s6136_s5  ;;  %p6139_p9 = scmp.lt.s32.totalorder %s6137_s14, %s6130_s7 }
 0x139   : > { %p6134_p7 = pneg %p6133_p6 }
 0x13a   : > { %p6140_p3 = por %p6139_p9, %p6138_p2 }
 0x13c   : > { %p6141_p5 = pnand %p6140_p3, %p6134_p7 }
 0x13e   : > { %6144 = shalt.err (!%p6141_p5)
}
 0x13f   : > { %5418 = dma.hbm_to_vmem [thread:$0]  (!%p7194_p11), %s453_s25, 32, %s456_s9, %s6503_s29  }
 0x140   : > { %s7197_s22 = sld [smem:[#allocation29_spill]] }
 0x146   : > { %p7198_p10 = scmp.ne.s32.totalorder %s7197_s22, 0 }
 0x147   : > { %p7199_p0 = scmp.eq.s32.totalorder (!%p7198_p10), %s6335_s23, 0 }
 0x148   : > { %464 = sbr.rel (%p7198_p10) target bundleno = 1920 (0x780), region = 64 }
 0x14f   : > { %6190 = dma.done.wait (%p7199_p0), [#allocation3], 64   ;;  %p7200_p8 = pmov %p7199_p0 }
 0x150   : > { %p7201_p1 = pmov %p7199_p0 }
 0x151   : > { %6192 = vsyncadd (%p7200_p8), [#allocation3], 4294967232 }
 0x152   : > { %6194 = dma.done.wait (%p7201_p1), [#allocation6], 2080   ;;  %p7202_p12 = pmov %p7199_p0 }
 0x153   : > { %p7203_p13 = pmov %p7199_p0 }
 0x154   : > { %6196 = vsyncadd (%p7202_p12), [#allocation6], 4294965216 }
 0x155   : > { %6198 = dma.done.wait (%p7203_p13), [#allocation9], 8256   ;;  %p7204_p11 = pmov %p7199_p0 }
 0x156   : > { %p7205_p4 = pmov %p7199_p0 }
 0x157   : > { %6200 = vsyncadd (%p7204_p11), [#allocation9], 4294959040 }
 0x158   : > { %6202 = dma.done.wait (%p7205_p4), [#allocation12], 32832   ;;  %p7206_p6 = pmov %p7199_p0 }
 0x159   : > { %p7207_p7 = pmov %p7199_p0 }
 0x15a   : > { %6204 = vsyncadd (%p7206_p6), [#allocation12], 4294934464 }
 0x15b   : > { %6206 = dma.done.wait (%p7207_p7), [#allocation15], 256   ;;  %p7208_p2 = pmov %p7199_p0 }
 0x15c   : > { %s502_s3 = sand.u32 1, %s6335_s23   ;;  %s6668_s29 = sand.u32 1, %s6223_s18  }
 0x15d   : > { %6208 = vsyncadd (%p7208_p2), [#allocation15], 4294967040  ;;  %s4839_s13 = sshll.u32 %s6668_s29, 10  ;;  %s503_s26 = scalar_lea.sflag [#allocation18], %s502_s3 }
 0x15e   : > { %s6671_s9 = scalar_lea.vmem [#allocation17], %s4839_s13  ;;  %p7209_p9 = scmp.ne.s32.totalorder %s7183_s10, 0 }
 0x160   : > { %6210 = dma.done.wait (%p7209_p9), %s503_s26, 16416  }
 0x161   : > { %6212 = vsyncadd (%p7209_p9), %s503_s26, 4294950880  ;;  %v6251_v0 = vmov 0   ;;  %v5493_v1 = vld [vmem:[#allocation5 + $0x4] ss:$8 sps:$4 sm:$0xff]   ;;  %v5495_v2 = vld [vmem:[#allocation5] ss:$8 sps:$4 sm:$0xff]   ;;  %v582_v51 = vlaneseq }
 0x162   : > { %704 = vmatprep.mubr.bf16.mxu0 %v6251_v0  ;;  %672 = vmatprep.subr.bf16.mxu0 %v5493_v1  ;;  %v5496_v3 = vld [vmem:[#allocation5 + $0x14] ss:$8 sps:$4 sm:$0xff]   ;;  %v5498_v4 = vld [vmem:[#allocation5 + $0x10] ss:$8 sps:$4 sm:$0xff]   ;;  %v5499_v5 = vld [vmem:[#allocation5 + $0x24] ss:$8 sps:$4 sm:$0xff]  }
 0x163   : > { %673 = vmatpush1.bf16.msra.mxu0 %v5495_v2  ;;  %v5501_v6 = vld [vmem:[#allocation5 + $0x20] ss:$8 sps:$4 sm:$0xff]   ;;  %v5502_v7 = vld [vmem:[#allocation5 + $0x34] ss:$8 sps:$4 sm:$0xff]   ;;  %v5504_v8 = vld [vmem:[#allocation5 + $0x30] ss:$8 sps:$4 sm:$0xff]  }
 0x164   : > { %674 = vmatprep.subr.bf16.mxu0 %v5496_v3  ;;  %v5505_v9 = vld [vmem:[#allocation5 + $0x44] ss:$8 sps:$4 sm:$0xff]   ;;  %v5507_v10 = vld [vmem:[#allocation5 + $0x40] ss:$8 sps:$4 sm:$0xff]   ;;  %v5508_v11 = vld [vmem:[#allocation5 + $0x54] ss:$8 sps:$4 sm:$0xff]  }
 0x165   : > { %v5510_v12 = vld [vmem:[#allocation5 + $0x50] ss:$8 sps:$4 sm:$0xff]   ;;  %v5511_v13 = vld [vmem:[#allocation5 + $0x64] ss:$8 sps:$4 sm:$0xff]   ;;  %v5513_v14 = vld [vmem:[#allocation5 + $0x60] ss:$8 sps:$4 sm:$0xff]  }
 0x166   : > { %v5514_v15 = vld [vmem:[#allocation5 + $0x74] ss:$8 sps:$4 sm:$0xff]   ;;  %v5516_v16 = vld [vmem:[#allocation5 + $0x70] ss:$8 sps:$4 sm:$0xff]   ;;  %v6677_v52 = vshrl.u32 %v582_v51, 7  ;;  %s4840_s10 = sshll.u32 %s6668_s29, 1 }
 0x167   : > { %675 = vmatpush1.bf16.msra.mxu0 %v5498_v4  ;;  %v5519_v17 = vld [vmem:[#allocation8 + $0x4] ss:$16 sps:$4 sm:$0xff]   ;;  %v563_v18 = vld [vmem:[#allocation2] sm:$0xf]  ;;  %v5517_v19 = vld [vmem:[#allocation8] ss:$16 sps:$4 sm:$0xff]  }
 0x168   : > { %676 = vmatprep.subr.bf16.mxu0 %v5499_v5  ;;  %v5522_v20 = vld [vmem:[#allocation8 + $0x24] ss:$16 sps:$4 sm:$0xff]   ;;  %v5520_v21 = vld [vmem:[#allocation8 + $0x20] ss:$16 sps:$4 sm:$0xff]   ;;  %v5567_v50 = vld [vmem:[#allocation8 + $0xc] ss:$16 sps:$4 sm:$0xff]  }
 0x169   : > { %v5525_v22 = vld [vmem:[#allocation8 + $0x44] ss:$16 sps:$4 sm:$0xff]   ;;  %v5523_v23 = vld [vmem:[#allocation8 + $0x40] ss:$16 sps:$4 sm:$0xff]   ;;  %v6680_v53 = vsub.s32 0, %v6677_v52  ;;  %v6683_v55 = vsub.s32 1, %v6677_v52 }
 0x16a   : > { %v5528_v24 = vld [vmem:[#allocation8 + $0x64] ss:$16 sps:$4 sm:$0xff]   ;;  %v5526_v25 = vld [vmem:[#allocation8 + $0x60] ss:$16 sps:$4 sm:$0xff]   ;;  %v580_v54 = vld [vmem:[#allocation7] sm:$0x3] }
 0x16b   : > { %677 = vmatpush1.bf16.msra.mxu0 %v5501_v6  ;;  %v5531_v26 = vld [vmem:[#allocation8 + $0x84] ss:$16 sps:$4 sm:$0xff]   ;;  %v5529_v27 = vld [vmem:[#allocation8 + $0x80] ss:$16 sps:$4 sm:$0xff]   ;;  %v585_v56 = vrot.slane %v580_v54, %v6680_v53  ;;  %v589_v57 = vrot.slane %v580_v54, %v6683_v55  ;;  %v5565_v5 = vld [vmem:[#allocation8 + $0x8] ss:$16 sps:$4 sm:$0xff]  }
 0x16c   : > { %678 = vmatprep.subr.bf16.mxu0 %v5502_v7  ;;  %v5534_v28 = vld [vmem:[#allocation8 + $0xa4] ss:$16 sps:$4 sm:$0xff]   ;;  %v5532_v29 = vld [vmem:[#allocation8 + $0xa0] ss:$16 sps:$4 sm:$0xff]   ;;  %v5570_v7 = vld [vmem:[#allocation8 + $0x2c] ss:$16 sps:$4 sm:$0xff]  }
 0x16d   : > { %v5537_v30 = vld [vmem:[#allocation8 + $0xc4] ss:$16 sps:$4 sm:$0xff]   ;;  %v5535_v31 = vld [vmem:[#allocation8 + $0xc0] ss:$16 sps:$4 sm:$0xff]   ;;  %s515_s24 = scalar_lea.vmem [#allocation19], %s4840_s10  ;;  %s4841_s16 = sshll.u32 %s6668_s29, 4 }
 0x16e   : > { %v5540_v32 = vld [vmem:[#allocation8 + $0xe4] ss:$16 sps:$4 sm:$0xff]   ;;  %v5538_v33 = vld [vmem:[#allocation8 + $0xe0] ss:$16 sps:$4 sm:$0xff]   ;;  %s5313_s25 = sshll.u32 %s6335_s23, 8  ;;  %s558_s1 = scalar_lea.vmem [#allocation20], %s4841_s16 }
 0x16f   : > { %679 = vmatpush1.bf16.msra.mxu0 %v5504_v8  ;;  %v5543_v34 = vld [vmem:[#allocation8 + $0x104] ss:$16 sps:$4 sm:$0xff]   ;;  %v5541_v35 = vld [vmem:[#allocation8 + $0x100] ss:$16 sps:$4 sm:$0xff]   ;;  %v5568_v8 = vld [vmem:[#allocation8 + $0x28] ss:$16 sps:$4 sm:$0xff]  }
 0x170   : > { %680 = vmatprep.subr.bf16.mxu0 %v5505_v9  ;;  %v5546_v36 = vld [vmem:[#allocation8 + $0x124] ss:$16 sps:$4 sm:$0xff]   ;;  %v5544_v37 = vld [vmem:[#allocation8 + $0x120] ss:$16 sps:$4 sm:$0xff]   ;;  %v5573_v9 = vld [vmem:[#allocation8 + $0x4c] ss:$16 sps:$4 sm:$0xff]  }
 0x171   : > { %v5549_v38 = vld [vmem:[#allocation8 + $0x144] ss:$16 sps:$4 sm:$0xff]   ;;  %v5547_v39 = vld [vmem:[#allocation8 + $0x140] ss:$16 sps:$4 sm:$0xff]   ;;  %s4633_s27 = sshll.u32 %s558_s1, 4  ;;  %s7210_s30 = sld [smem:[#allocation39_spill]]  ;;  %s7091_s27 = int_to_ptr.vmem [resolvable:$true] %s4633_s27 }
 0x172   : > { %v5552_v40 = vld [vmem:[#allocation8 + $0x164] ss:$16 sps:$4 sm:$0xff]   ;;  %v5550_v41 = vld [vmem:[#allocation8 + $0x160] ss:$16 sps:$4 sm:$0xff]   ;;  %s4619_s7 = scalar_lea.sflag [#allocation4], %s6668_s29  ;;  %s6145_s15 = scalar_lea.vmem %s7091_s27, 256 }
 0x173   : > { %681 = vmatpush1.bf16.msra.mxu0 %v5507_v10  ;;  %v5555_v42 = vld [vmem:[#allocation8 + $0x184] ss:$16 sps:$4 sm:$0xff]   ;;  %v5553_v43 = vld [vmem:[#allocation8 + $0x180] ss:$16 sps:$4 sm:$0xff]   ;;  %v5571_v10 = vld [vmem:[#allocation8 + $0x48] ss:$16 sps:$4 sm:$0xff]   ;;  %p6146_p3 = scmp.ne.s32.totalorder %s7091_s27, %s6145_s15 }
 0x174   : > { %682 = vmatprep.subr.bf16.mxu0 %v5508_v11  ;;  %v5558_v44 = vld [vmem:[#allocation8 + $0x1a4] ss:$16 sps:$4 sm:$0xff]   ;;  %v5556_v45 = vld [vmem:[#allocation8 + $0x1a0] ss:$16 sps:$4 sm:$0xff]   ;;  %v5576_v11 = vld [vmem:[#allocation8 + $0x6c] ss:$16 sps:$4 sm:$0xff]  }
 0x175   : > { %v5561_v46 = vld [vmem:[#allocation8 + $0x1c4] ss:$16 sps:$4 sm:$0xff]   ;;  %v5559_v47 = vld [vmem:[#allocation8 + $0x1c0] ss:$16 sps:$4 sm:$0xff]   ;;  %p7211_p5 = scmp.ne.s32.totalorder %s7184_s28, 0  ;;  %s6253_s23 = smov [#allocation20]  }
 0x176   : > { %v5564_v48 = vld [vmem:[#allocation8 + $0x1e4] ss:$16 sps:$4 sm:$0xff]   ;;  %v5562_v49 = vld [vmem:[#allocation8 + $0x1e0] ss:$16 sps:$4 sm:$0xff]   ;;  %s6149_s5 = sshll.u32 %s6253_s23, 4  ;;  %s6150_s5 = int_to_ptr.vmem [resolvable:$false] %s6149_s5 }
 0x177   : > { %683 = vmatpush1.bf16.msra.mxu0 %v5510_v12  ;;  %v5574_v12 = vld [vmem:[#allocation8 + $0x68] ss:$16 sps:$4 sm:$0xff]   ;;  %s7089_s11 = scalar_lea.hbm %s7210_s30, %s5313_s25  ;;  %p6147_p10 = pnand %p6146_p3, %p7211_p5 }
 0x178   : > { %684 = vmatprep.subr.bf16.mxu0 %v5511_v13  ;;  %v5579_v13 = vld [vmem:[#allocation8 + $0x8c] ss:$16 sps:$4 sm:$0xff]   ;;  %s6151_s14 = scalar_lea.vmem %s6150_s5, 512  ;;  %p6152_p8 = scmp.lt.s32.totalorder %s7091_s27, %s6150_s5 }
 0x179   : > { %p6148_p0 = pneg %p6147_p10  ;;  %p6153_p1 = scmp.lt.s32.totalorder %s6151_s14, %s6145_s15 }
 0x17b   : > { %685 = vmatpush1.bf16.msra.mxu0 %v5513_v14  ;;  %v5577_v14 = vld [vmem:[#allocation8 + $0x88] ss:$16 sps:$4 sm:$0xff]   ;;  %p6154_p12 = por %p6153_p1, %p6152_p8 }
 0x17c   : > { %686 = vmatprep.subr.bf16.mxu0 %v5514_v15  ;;  %v5582_v15 = vld [vmem:[#allocation8 + $0xac] ss:$16 sps:$4 sm:$0xff]  }
 0x17d   : > { %p6155_p13 = pnand %p6154_p12, %p6148_p0 }
 0x17f   : > { %687 = vmatpush1.bf16.msra.mxu0 %v5516_v16  ;;  %v5580_v16 = vld [vmem:[#allocation8 + $0xa8] ss:$16 sps:$4 sm:$0xff]  }
 0x180   : > { %1105 = vmatprep.subr.bf16.mxu0 %v5519_v17  ;;  %v5585_v17 = vld [vmem:[#allocation8 + $0xcc] ss:$16 sps:$4 sm:$0xff]  }
 0x182   : > { %705 = vmatmul.mubr.bf16.vlgmr.msra.gmra.mrb[0].mxu0 %v563_v18  ;;  %v5583_v18 = vld [vmem:[#allocation8 + $0xc8] ss:$16 sps:$4 sm:$0xff]  }
 0x183   : > { %1106 = vmatpush1.bf16.msra.mxu0 %v5517_v19  ;;  %v5588_v19 = vld [vmem:[#allocation8 + $0xec] ss:$16 sps:$4 sm:$0xff]  }
 0x184   : > { %1107 = vmatprep.subr.bf16.mxu0 %v5522_v20  ;;  %v5586_v20 = vld [vmem:[#allocation8 + $0xe8] ss:$16 sps:$4 sm:$0xff]  }
 0x187   : > { %1108 = vmatpush1.bf16.msra.mxu0 %v5520_v21  ;;  %v5591_v21 = vld [vmem:[#allocation8 + $0x10c] ss:$16 sps:$4 sm:$0xff]  }
 0x188   : > { %1109 = vmatprep.subr.bf16.mxu0 %v5525_v22  ;;  %v5589_v22 = vld [vmem:[#allocation8 + $0x108] ss:$16 sps:$4 sm:$0xff]  }
 0x18b   : > { %1110 = vmatpush1.bf16.msra.mxu0 %v5523_v23  ;;  %v5594_v23 = vld [vmem:[#allocation8 + $0x12c] ss:$16 sps:$4 sm:$0xff]  }
 0x18c   : > { %1111 = vmatprep.subr.bf16.mxu0 %v5528_v24  ;;  %v5592_v24 = vld [vmem:[#allocation8 + $0x128] ss:$16 sps:$4 sm:$0xff]  }
 0x18f   : > { %1112 = vmatpush1.bf16.msra.mxu0 %v5526_v25  ;;  %v5597_v25 = vld [vmem:[#allocation8 + $0x14c] ss:$16 sps:$4 sm:$0xff]  }
 0x190   : > { %1113 = vmatprep.subr.bf16.mxu0 %v5531_v26  ;;  %v5595_v26 = vld [vmem:[#allocation8 + $0x148] ss:$16 sps:$4 sm:$0xff]  }
 0x193   : > { %1114 = vmatpush1.bf16.msra.mxu0 %v5529_v27  ;;  %v5600_v27 = vld [vmem:[#allocation8 + $0x16c] ss:$16 sps:$4 sm:$0xff]  }
 0x194   : > { %1115 = vmatprep.subr.bf16.mxu0 %v5534_v28  ;;  %v5598_v28 = vld [vmem:[#allocation8 + $0x168] ss:$16 sps:$4 sm:$0xff]  }
 0x197   : > { %1116 = vmatpush1.bf16.msra.mxu0 %v5532_v29  ;;  %v5603_v29 = vld [vmem:[#allocation8 + $0x18c] ss:$16 sps:$4 sm:$0xff]  }
 0x198   : > { %1117 = vmatprep.subr.bf16.mxu0 %v5537_v30  ;;  %v5601_v30 = vld [vmem:[#allocation8 + $0x188] ss:$16 sps:$4 sm:$0xff]  }
 0x19b   : > { %1118 = vmatpush1.bf16.msra.mxu0 %v5535_v31  ;;  %v5606_v31 = vld [vmem:[#allocation8 + $0x1ac] ss:$16 sps:$4 sm:$0xff]  }
 0x19c   : > { %1119 = vmatprep.subr.bf16.mxu0 %v5540_v32  ;;  %v5604_v32 = vld [vmem:[#allocation8 + $0x1a8] ss:$16 sps:$4 sm:$0xff]  }
 0x19f   : > { %1120 = vmatpush1.bf16.msra.mxu0 %v5538_v33  ;;  %v5609_v33 = vld [vmem:[#allocation8 + $0x1cc] ss:$16 sps:$4 sm:$0xff]  }
 0x1a0   : > { %1121 = vmatprep.subr.bf16.mxu0 %v5543_v34  ;;  %v5607_v34 = vld [vmem:[#allocation8 + $0x1c8] ss:$16 sps:$4 sm:$0xff]  }
 0x1a3   : > { %1122 = vmatpush1.bf16.msra.mxu0 %v5541_v35  ;;  %v5612_v35 = vld [vmem:[#allocation8 + $0x1ec] ss:$16 sps:$4 sm:$0xff]  }
 0x1a4   : > { %1123 = vmatprep.subr.bf16.mxu0 %v5546_v36  ;;  %v5610_v36 = vld [vmem:[#allocation8 + $0x1e8] ss:$16 sps:$4 sm:$0xff]  }
 0x1a7   : > { %1124 = vmatpush1.bf16.msra.mxu0 %v5544_v37  ;;  %v1396_v37 = vld [vmem:[#allocation13] sm:$0xff] }
 0x1a8   : > { %1125 = vmatprep.subr.bf16.mxu0 %v5549_v38  ;;  %v1400_v38 = vld [vmem:[#allocation13 + $0x20] sm:$0xff] }
 0x1ab   : > { %1126 = vmatpush1.bf16.msra.mxu0 %v5547_v39  ;;  %v1524_v39 = vld [vmem:[#allocation13 + $0x400] sm:$0xff] }
 0x1ac   : > { %1127 = vmatprep.subr.bf16.mxu0 %v5552_v40  ;;  %v4923_v40 = vcombine.high %v1396_v37, %v1400_v38 }
 0x1af   : > { %1128 = vmatpush1.bf16.msra.mxu0 %v5550_v41  ;;  %v1528_v41 = vld [vmem:[#allocation13 + $0x420] sm:$0xff] }
 0x1b0   : > { %1129 = vmatprep.subr.bf16.mxu0 %v5555_v42  ;;  %v4922_v42 = vcombine.low %v1396_v37, %v1400_v38 }
 0x1b3   : > { %1130 = vmatpush1.bf16.msra.mxu0 %v5553_v43  ;;  %v5051_v43 = vcombine.high %v1524_v39, %v1528_v41 }
 0x1b4   : > { %1131 = vmatprep.subr.bf16.mxu0 %v5558_v44  ;;  %v5050_v44 = vcombine.low %v1524_v39, %v1528_v41  ;;  %v1464_v41 = vld [vmem:[#allocation13 + $0x220] sm:$0xff] }
 0x1b5   : > { %2973 = vmatprep.subr.bf16.mxu1 %v5051_v43 }
 0x1b6   : > { %2974 = vmatpush1.bf16.msra.mxu1 %v5050_v44  ;;  %v1592_v44 = vld [vmem:[#allocation13 + $0x620] sm:$0xff] }
 0x1b7   : > { %1132 = vmatpush1.bf16.msra.mxu0 %v5556_v45  ;;  %v1404_v45 = vld [vmem:[#allocation13 + $0x40] sm:$0xff] }
 0x1b8   : > { %1133 = vmatprep.subr.bf16.mxu0 %v5561_v46  ;;  %v1408_v46 = vld [vmem:[#allocation13 + $0x60] sm:$0xff] }
 0x1bb   : > { %1134 = vmatpush1.bf16.msra.mxu0 %v5559_v47  ;;  %v1532_v47 = vld [vmem:[#allocation13 + $0x440] sm:$0xff] }
 0x1bc   : > { %1135 = vmatprep.subr.bf16.mxu0 %v5564_v48  ;;  %v4931_v48 = vcombine.high %v1404_v45, %v1408_v46 }
 0x1bf   : > { %1136 = vmatpush1.bf16.msra.mxu0 %v5562_v49  ;;  %v1536_v49 = vld [vmem:[#allocation13 + $0x460] sm:$0xff] }
 0x1c0   : > { %1146 = vmatprep.subr.bf16.mxu0 %v5567_v50  ;;  %v4930_v50 = vcombine.low %v1404_v45, %v1408_v46  ;;  %v5059_v51 = vcombine.high %v1532_v47, %v1536_v49  ;;  %v5058_v54 = vcombine.low %v1532_v47, %v1536_v49  ;;  %v1472_v49 = vld [vmem:[#allocation13 + $0x260] sm:$0xff] }
 0x1c2   : > { %2975 = vmatprep.subr.bf16.mxu1 %v5059_v51 }
 0x1c3   : > { %2976 = vmatpush1.bf16.msra.mxu1 %v5058_v54  ;;  %v1600_v54 = vld [vmem:[#allocation13 + $0x660] sm:$0xff] }
 0x255   : > { %v706_v58 = vpop.f32.mrb[0].mxu0 }
 0x256   : > { %v707_v59 = vadd.f32 %v706_v58, %v585_v56  ;;  %v708_v60 = vpop.f32.mrb[1].mxu0  ;;  %v1412_v56 = vld [vmem:[#allocation13 + $0x80] sm:$0xff] }
 0x257   : > { %v709_v61 = vadd.f32 %v708_v60, %v589_v57  ;;  %v710_v62 = vpop.f32.mrb[2].mxu0  ;;  %v1416_v57 = vld [vmem:[#allocation13 + $0xa0] sm:$0xff] }
 0x258   : > { %vm713_vm0 = vcmp.gt.f32.partialorder %v707_v59, 0.0  ;;  %v715_v63 = vmul.f32 0.2, %v707_v59  ;;  %v711_v0 = vpop.f32.mrb[3].mxu0  ;;  %v1540_v58 = vld [vmem:[#allocation13 + $0x480] sm:$0xff] }
 0x259   : > { %vm714_vm1 = vcmp.gt.f32.partialorder %v709_v61, 0.0  ;;  %v716_v1 = vmul.f32 0.2, %v709_v61  ;;  %v1544_v60 = vld [vmem:[#allocation13 + $0x4a0] sm:$0xff] }
 0x25a   : > { %v717_v2 = vsel %vm713_vm0, %v707_v59, %v715_v63  ;;  %v4939_v59 = vcombine.high %v1412_v56, %v1416_v57  ;;  %v5067_v62 = vcombine.high %v1540_v58, %v1544_v60  ;;  %v5066_v63 = vcombine.low %v1540_v58, %v1544_v60  ;;  %v1420_v0 = vld [vmem:[#allocation13 + $0xc0] sm:$0xff] }
 0x25b   : > { %v718_v3 = vsel %vm714_vm1, %v709_v61, %v716_v1  ;;  %v6687_v6 = vpack.c.bf16 %v717_v2, %v717_v2  ;;  %v4938_v61 = vcombine.low %v1412_v56, %v1416_v57  ;;  %v1424_v1 = vld [vmem:[#allocation13 + $0xe0] sm:$0xff] }
 0x25c   : > { %v720_v4 = vpack.c.bf16 %v718_v3, %v718_v3  ;;  %2977 = vmatprep.subr.bf16.mxu1 %v5067_v62  ;;  %v1548_v2 = vld [vmem:[#allocation13 + $0x4c0] sm:$0xff]  ;;  %v4947_v3 = vcombine.high %v1420_v0, %v1424_v1 }
 0x25d   : > { %2978 = vmatpush1.bf16.msra.mxu1 %v5066_v63  ;;  %v1480_v60 = vld [vmem:[#allocation13 + $0x2a0] sm:$0xff] }
 0x25e   : > { %1137 = vmatprep.mubr.bf16.mxu0 %v720_v4  ;;  %v1608_v63 = vld [vmem:[#allocation13 + $0x6a0] sm:$0xff] }
 0x25f   : > { %1138 = vmatmul.mubr.bf16.vlgmr.msra.gmra.mrb[4].mxu0 %v6687_v6 }
 0x260   : > { %1147 = vmatpush1.bf16.msra.mxu0 %v5565_v5  ;;  %1178 = vmatprep.mubr.bf16.mxu0 %v720_v4  ;;  %v1552_v4 = vld [vmem:[#allocation13 + $0x4e0] sm:$0xff]  ;;  %v4946_v5 = vcombine.low %v1420_v0, %v1424_v1 }
 0x261   : > { %1148 = vmatprep.subr.bf16.mxu0 %v5570_v7  ;;  %v5074_v7 = vcombine.low %v1548_v2, %v1552_v4 }
 0x264   : > { %1149 = vmatpush1.bf16.msra.mxu0 %v5568_v8  ;;  %v1428_v8 = vld [vmem:[#allocation13 + $0x100] sm:$0xff] }
 0x265   : > { %1150 = vmatprep.subr.bf16.mxu0 %v5573_v9  ;;  %v1432_v9 = vld [vmem:[#allocation13 + $0x120] sm:$0xff] }
 0x268   : > { %1151 = vmatpush1.bf16.msra.mxu0 %v5571_v10  ;;  %v1556_v10 = vld [vmem:[#allocation13 + $0x500] sm:$0xff] }
 0x269   : > { %1152 = vmatprep.subr.bf16.mxu0 %v5576_v11  ;;  %v4955_v11 = vcombine.high %v1428_v8, %v1432_v9 }
 0x26c   : > { %1153 = vmatpush1.bf16.msra.mxu0 %v5574_v12  ;;  %v1560_v12 = vld [vmem:[#allocation13 + $0x520] sm:$0xff] }
 0x26d   : > { %1154 = vmatprep.subr.bf16.mxu0 %v5579_v13  ;;  %v4954_v13 = vcombine.low %v1428_v8, %v1432_v9 }
 0x270   : > { %1155 = vmatpush1.bf16.msra.mxu0 %v5577_v14  ;;  %v5083_v14 = vcombine.high %v1556_v10, %v1560_v12 }
 0x271   : > { %1156 = vmatprep.subr.bf16.mxu0 %v5582_v15  ;;  %v5082_v15 = vcombine.low %v1556_v10, %v1560_v12  ;;  %v1496_v12 = vld [vmem:[#allocation13 + $0x320] sm:$0xff] }
 0x274   : > { %1157 = vmatpush1.bf16.msra.mxu0 %v5580_v16  ;;  %v1436_v16 = vld [vmem:[#allocation13 + $0x140] sm:$0xff] }
 0x275   : > { %1158 = vmatprep.subr.bf16.mxu0 %v5585_v17  ;;  %v1440_v17 = vld [vmem:[#allocation13 + $0x160] sm:$0xff] }
 0x278   : > { %1159 = vmatpush1.bf16.msra.mxu0 %v5583_v18  ;;  %v1564_v18 = vld [vmem:[#allocation13 + $0x540] sm:$0xff] }
 0x279   : > { %1160 = vmatprep.subr.bf16.mxu0 %v5588_v19  ;;  %v4963_v19 = vcombine.high %v1436_v16, %v1440_v17 }
 0x27c   : > { %1161 = vmatpush1.bf16.msra.mxu0 %v5586_v20  ;;  %v1568_v20 = vld [vmem:[#allocation13 + $0x560] sm:$0xff] }
 0x27d   : > { %1162 = vmatprep.subr.bf16.mxu0 %v5591_v21  ;;  %v4962_v21 = vcombine.low %v1436_v16, %v1440_v17 }
 0x280   : > { %1163 = vmatpush1.bf16.msra.mxu0 %v5589_v22  ;;  %v5091_v22 = vcombine.high %v1564_v18, %v1568_v20 }
 0x281   : > { %1164 = vmatprep.subr.bf16.mxu0 %v5594_v23  ;;  %v5090_v23 = vcombine.low %v1564_v18, %v1568_v20  ;;  %v1504_v20 = vld [vmem:[#allocation13 + $0x360] sm:$0xff] }
 0x284   : > { %1165 = vmatpush1.bf16.msra.mxu0 %v5592_v24  ;;  %v1444_v24 = vld [vmem:[#allocation13 + $0x180] sm:$0xff] }
 0x285   : > { %1166 = vmatprep.subr.bf16.mxu0 %v5597_v25  ;;  %v1448_v25 = vld [vmem:[#allocation13 + $0x1a0] sm:$0xff] }
 0x288   : > { %1167 = vmatpush1.bf16.msra.mxu0 %v5595_v26  ;;  %v1572_v26 = vld [vmem:[#allocation13 + $0x580] sm:$0xff] }
 0x289   : > { %1168 = vmatprep.subr.bf16.mxu0 %v5600_v27  ;;  %v4971_v27 = vcombine.high %v1444_v24, %v1448_v25 }
 0x28c   : > { %1169 = vmatpush1.bf16.msra.mxu0 %v5598_v28  ;;  %v1576_v28 = vld [vmem:[#allocation13 + $0x5a0] sm:$0xff] }
 0x28d   : > { %1170 = vmatprep.subr.bf16.mxu0 %v5603_v29  ;;  %v4970_v29 = vcombine.low %v1444_v24, %v1448_v25 }
 0x290   : > { %1171 = vmatpush1.bf16.msra.mxu0 %v5601_v30  ;;  %v5099_v30 = vcombine.high %v1572_v26, %v1576_v28 }
 0x291   : > { %1172 = vmatprep.subr.bf16.mxu0 %v5606_v31  ;;  %v5098_v31 = vcombine.low %v1572_v26, %v1576_v28  ;;  %v1512_v28 = vld [vmem:[#allocation13 + $0x3a0] sm:$0xff] }
 0x294   : > { %1173 = vmatpush1.bf16.msra.mxu0 %v5604_v32  ;;  %v1452_v32 = vld [vmem:[#allocation13 + $0x1c0] sm:$0xff] }
 0x295   : > { %1174 = vmatprep.subr.bf16.mxu0 %v5609_v33  ;;  %v1456_v33 = vld [vmem:[#allocation13 + $0x1e0] sm:$0xff] }
 0x296   : > { %v4978_v37 = vcombine.low %v1452_v32, %v1456_v33 }
 0x298   : > { %1175 = vmatpush1.bf16.msra.mxu0 %v5607_v34  ;;  %v1580_v34 = vld [vmem:[#allocation13 + $0x5c0] sm:$0xff] }
 0x299   : > { %1176 = vmatprep.subr.bf16.mxu0 %v5612_v35  ;;  %v4979_v35 = vcombine.high %v1452_v32, %v1456_v33 }
 0x29c   : > { %1177 = vmatpush1.bf16.msra.mxu0 %v5610_v36  ;;  %v1584_v36 = vld [vmem:[#allocation13 + $0x5e0] sm:$0xff] }
 0x29d   : > { %2932 = vmatprep.subr.bf16.mxu0 %v4923_v40  ;;  %v5107_v38 = vcombine.high %v1580_v34, %v1584_v36  ;;  %v5106_v39 = vcombine.low %v1580_v34, %v1584_v36  ;;  %v1460_v40 = vld [vmem:[#allocation13 + $0x200] sm:$0xff] }
 0x29e   : > { %v4987_v43 = vcombine.high %v1460_v40, %v1464_v41  ;;  %v4986_v45 = vcombine.low %v1460_v40, %v1464_v41  ;;  %v1520_v36 = vld [vmem:[#allocation13 + $0x3e0] sm:$0xff] }
 0x29f   : > { %1179 = vmatmul.mubr.bf16.vlgmr.msra.gmra.mrb[8].mxu0 %v6687_v6  ;;  %v5075_v6 = vcombine.high %v1548_v2, %v1552_v4  ;;  %v1488_v4 = vld [vmem:[#allocation13 + $0x2e0] sm:$0xff] }
 0x2a0   : > { %2933 = vmatpush1.bf16.msra.mxu0 %v4922_v42  ;;  %v1588_v42 = vld [vmem:[#allocation13 + $0x600] sm:$0xff] }
 0x2a1   : > { %2934 = vmatprep.subr.bf16.mxu0 %v4931_v48  ;;  %2979 = vmatprep.subr.bf16.mxu1 %v5075_v6  ;;  %v5115_v46 = vcombine.high %v1588_v42, %v1592_v44  ;;  %v5114_v47 = vcombine.low %v1588_v42, %v1592_v44  ;;  %v1468_v48 = vld [vmem:[#allocation13 + $0x240] sm:$0xff]  ;;  %v6693_v44 = vld [vmem:[#allocation13 + $0x8] sm:$0xff] }
 0x2a2   : > { %2980 = vmatpush1.bf16.msra.mxu1 %v5074_v7  ;;  %v4995_v51 = vcombine.high %v1468_v48, %v1472_v49  ;;  %v4994_v56 = vcombine.low %v1468_v48, %v1472_v49  ;;  %v1616_v7 = vld [vmem:[#allocation13 + $0x6e0] sm:$0xff] }
 0x2a3   : > { %2981 = vmatprep.subr.bf16.mxu1 %v5083_v14  ;;  %v1648_v40 = vld [vmem:[#allocation13 + $0x7e0] sm:$0xff] }
 0x2a4   : > { %2935 = vmatpush1.bf16.msra.mxu0 %v4930_v50  ;;  %v1596_v50 = vld [vmem:[#allocation13 + $0x640] sm:$0xff] }
 0x2a5   : > { %2936 = vmatprep.subr.bf16.mxu0 %v4939_v59  ;;  %v5123_v57 = vcombine.high %v1596_v50, %v1600_v54  ;;  %v5122_v58 = vcombine.low %v1596_v50, %v1600_v54  ;;  %v1476_v59 = vld [vmem:[#allocation13 + $0x280] sm:$0xff] }
 0x2a6   : > { %2982 = vmatpush1.bf16.msra.mxu1 %v5082_v15  ;;  %v5003_v62 = vcombine.high %v1476_v59, %v1480_v60  ;;  %v5002_v0 = vcombine.low %v1476_v59, %v1480_v60  ;;  %v1624_v15 = vld [vmem:[#allocation13 + $0x720] sm:$0xff] }
 0x2a7   : > { %2983 = vmatprep.subr.bf16.mxu1 %v5091_v22 }
 0x2a8   : > { %2937 = vmatpush1.bf16.msra.mxu0 %v4938_v61  ;;  %v1604_v61 = vld [vmem:[#allocation13 + $0x680] sm:$0xff] }
 0x2a9   : > { %2938 = vmatprep.subr.bf16.mxu0 %v4947_v3  ;;  %v5131_v1 = vcombine.high %v1604_v61, %v1608_v63  ;;  %v5130_v2 = vcombine.low %v1604_v61, %v1608_v63  ;;  %v1484_v3 = vld [vmem:[#allocation13 + $0x2c0] sm:$0xff] }
 0x2aa   : > { %2984 = vmatpush1.bf16.msra.mxu1 %v5090_v23  ;;  %v5011_v6 = vcombine.high %v1484_v3, %v1488_v4  ;;  %v5010_v8 = vcombine.low %v1484_v3, %v1488_v4  ;;  %v1632_v23 = vld [vmem:[#allocation13 + $0x760] sm:$0xff] }
 0x2ab   : > { %2985 = vmatprep.subr.bf16.mxu1 %v5099_v30 }
 0x2ac   : > { %2939 = vmatpush1.bf16.msra.mxu0 %v4946_v5  ;;  %v1612_v5 = vld [vmem:[#allocation13 + $0x6c0] sm:$0xff] }
 0x2ad   : > { %2940 = vmatprep.subr.bf16.mxu0 %v4955_v11  ;;  %v5139_v9 = vcombine.high %v1612_v5, %v1616_v7  ;;  %v5138_v10 = vcombine.low %v1612_v5, %v1616_v7  ;;  %v1492_v11 = vld [vmem:[#allocation13 + $0x300] sm:$0xff] }
 0x2ae   : > { %2986 = vmatpush1.bf16.msra.mxu1 %v5098_v31  ;;  %v5019_v14 = vcombine.high %v1492_v11, %v1496_v12  ;;  %v5018_v16 = vcombine.low %v1492_v11, %v1496_v12  ;;  %v1640_v31 = vld [vmem:[#allocation13 + $0x7a0] sm:$0xff] }
 0x2af   : > { %2987 = vmatprep.subr.bf16.mxu1 %v5107_v38 }
 0x2b0   : > { %2941 = vmatpush1.bf16.msra.mxu0 %v4954_v13  ;;  %v1620_v13 = vld [vmem:[#allocation13 + $0x700] sm:$0xff] }
 0x2b1   : > { %2942 = vmatprep.subr.bf16.mxu0 %v4963_v19  ;;  %v5147_v17 = vcombine.high %v1620_v13, %v1624_v15  ;;  %v5146_v18 = vcombine.low %v1620_v13, %v1624_v15  ;;  %v1500_v19 = vld [vmem:[#allocation13 + $0x340] sm:$0xff] }
 0x2b2   : > { %2988 = vmatpush1.bf16.msra.mxu1 %v5106_v39  ;;  %v5027_v22 = vcombine.high %v1500_v19, %v1504_v20  ;;  %v5026_v24 = vcombine.low %v1500_v19, %v1504_v20 }
 0x2b3   : > { %2989 = vmatprep.subr.bf16.mxu1 %v5115_v46  ;;  %v6697_v46 = vld [vmem:[#allocation13 + $0x10] sm:$0xff] }
 0x2b4   : > { %2943 = vmatpush1.bf16.msra.mxu0 %v4962_v21  ;;  %v1628_v21 = vld [vmem:[#allocation13 + $0x740] sm:$0xff] }
 0x2b5   : > { %2944 = vmatprep.subr.bf16.mxu0 %v4971_v27  ;;  %v5155_v25 = vcombine.high %v1628_v21, %v1632_v23  ;;  %v5154_v26 = vcombine.low %v1628_v21, %v1632_v23  ;;  %v1508_v27 = vld [vmem:[#allocation13 + $0x380] sm:$0xff] }
 0x2b6   : > { %2990 = vmatpush1.bf16.msra.mxu1 %v5114_v47  ;;  %v5035_v30 = vcombine.high %v1508_v27, %v1512_v28  ;;  %v5034_v32 = vcombine.low %v1508_v27, %v1512_v28 }
 0x2b7   : > { %2991 = vmatprep.subr.bf16.mxu1 %v5123_v57 }
 0x2b8   : > { %2945 = vmatpush1.bf16.msra.mxu0 %v4970_v29  ;;  %v1636_v29 = vld [vmem:[#allocation13 + $0x780] sm:$0xff] }
 0x2b9   : > { %2946 = vmatprep.subr.bf16.mxu0 %v4979_v35  ;;  %v5163_v33 = vcombine.high %v1636_v29, %v1640_v31  ;;  %v5162_v34 = vcombine.low %v1636_v29, %v1640_v31  ;;  %v1516_v35 = vld [vmem:[#allocation13 + $0x3c0] sm:$0xff] }
 0x2ba   : > { %2992 = vmatpush1.bf16.msra.mxu1 %v5122_v58  ;;  %v5042_v38 = vcombine.low %v1516_v35, %v1520_v36  ;;  %v5043_v39 = vcombine.high %v1516_v35, %v1520_v36 }
 0x2bb   : > { %2993 = vmatprep.subr.bf16.mxu1 %v5131_v1 }
 0x2bc   : > { %2947 = vmatpush1.bf16.msra.mxu0 %v4978_v37  ;;  %v1644_v37 = vld [vmem:[#allocation13 + $0x7c0] sm:$0xff] }
 0x2bd   : > { %2948 = vmatprep.subr.bf16.mxu0 %v4987_v43  ;;  %v5171_v41 = vcombine.high %v1644_v37, %v1648_v40  ;;  %v5170_v42 = vcombine.low %v1644_v37, %v1648_v40 }
 0x2be   : > { %2994 = vmatpush1.bf16.msra.mxu1 %v5130_v2 }
 0x2bf   : > { %2995 = vmatprep.subr.bf16.mxu1 %v5139_v9 }
 0x2c0   : > { %2949 = vmatpush1.bf16.msra.mxu0 %v4986_v45  ;;  %v6695_v45 = vld [vmem:[#allocation13 + $0x28] sm:$0xff] }
 0x2c1   : > { %2950 = vmatprep.subr.bf16.mxu0 %v4995_v51  ;;  %v4925_v50 = vcombine.high %v6693_v44, %v6695_v45  ;;  %v6706_v51 = vld [vmem:[#allocation13 + $0x30] sm:$0xff]  ;;  %v4924_v58 = vcombine.low %v6693_v44, %v6695_v45 }
 0x2c2   : > { %2996 = vmatpush1.bf16.msra.mxu1 %v5138_v10  ;;  %v4926_v59 = vcombine.low %v6697_v46, %v6706_v51  ;;  %v4927_v63 = vcombine.high %v6697_v46, %v6706_v51 }
 0x2c3   : > { %2997 = vmatprep.subr.bf16.mxu1 %v5147_v17 }
 0x2c4   : > { %2951 = vmatpush1.bf16.msra.mxu0 %v4994_v56 }
 0x2c5   : > { %2952 = vmatprep.subr.bf16.mxu0 %v5003_v62 }
 0x2c6   : > { %2998 = vmatpush1.bf16.msra.mxu1 %v5146_v18 }
 0x2c7   : > { %2999 = vmatprep.subr.bf16.mxu1 %v5155_v25 }
 0x2c8   : > { %2953 = vmatpush1.bf16.msra.mxu0 %v5002_v0 }
 0x2c9   : > { %2954 = vmatprep.subr.bf16.mxu0 %v5011_v6 }
 0x2ca   : > { %3000 = vmatpush1.bf16.msra.mxu1 %v5154_v26 }
 0x2cb   : > { %3001 = vmatprep.subr.bf16.mxu1 %v5163_v33 }
 0x2cc   : > { %2955 = vmatpush1.bf16.msra.mxu0 %v5010_v8 }
 0x2cd   : > { %2956 = vmatprep.subr.bf16.mxu0 %v5019_v14 }
 0x2ce   : > { %3002 = vmatpush1.bf16.msra.mxu1 %v5162_v34 }
 0x2cf   : > { %3003 = vmatprep.subr.bf16.mxu1 %v5171_v41 }
 0x2d0   : > { %2957 = vmatpush1.bf16.msra.mxu0 %v5018_v16 }
 0x2d1   : > { %2958 = vmatprep.subr.bf16.mxu0 %v5027_v22 }
 0x2d2   : > { %3004 = vmatpush1.bf16.msra.mxu1 %v5170_v42 }
 0x2d3   : > { %3096 = vmatprep.subr.bf16.mxu1 %v4927_v63 }
 0x2d4   : > { %2959 = vmatpush1.bf16.msra.mxu0 %v5026_v24 }
 0x2d5   : > { %2960 = vmatprep.subr.bf16.mxu0 %v5035_v30 }
 0x2d8   : > { %2961 = vmatpush1.bf16.msra.mxu0 %v5034_v32 }
 0x2d9   : > { %2962 = vmatprep.subr.bf16.mxu0 %v5043_v39 }
 0x2dc   : > { %2963 = vmatpush1.bf16.msra.mxu0 %v5042_v38 }
 0x2dd   : > { %3014 = vmatprep.subr.bf16.mxu0 %v4925_v50 }
 0x332   : > { %v6691_v43 = vpop.f32.mrb[4].mxu0 }
 0x333   : > { %v1189_v47 = vrot.slane %v6691_v43, 4  ;;  %v1218_v48 = vmul.f32 %v6691_v43, %v6691_v43  ;;  %v6702_v49 = vpop.f32.mrb[5].mxu0 }
 0x334   : > { %v1195_v54 = vrot.slane %v6702_v49, 4  ;;  %v1219_v56 = vmul.f32 %v6702_v49, %v6702_v49  ;;  %v1143_v57 = vpop.f32.mrb[6].mxu0 }
 0x335   : > { %v1190_v60 = vadd.f32 %v1189_v47, %v6691_v43  ;;  %v1222_v61 = vrot.slane %v1218_v48, 4  ;;  %v1144_v62 = vpop.f32.mrb[7].mxu0 }
 0x336   : > { %v1196_v0 = vadd.f32 %v1195_v54, %v6702_v49  ;;  %v1228_v1 = vrot.slane %v1219_v56, 4 }
 0x337   : > { %v1191_v2 = vrot.slane %v1190_v60, 2  ;;  %v1223_v3 = vadd.f32 %v1222_v61, %v1218_v48 }
 0x338   : > { %v1197_v4 = vrot.slane %v1196_v0, 2  ;;  %v1229_v5 = vadd.f32 %v1228_v1, %v1219_v56 }
 0x339   : > { %v1192_v6 = vadd.f32 %v1191_v2, %v1190_v60  ;;  %v1224_v7 = vrot.slane %v1223_v3, 2 }
 0x33a   : > { %v1198_v8 = vadd.f32 %v1197_v4, %v1196_v0  ;;  %v1230_v9 = vrot.slane %v1229_v5, 2 }
 0x33b   : > { %v1193_v10 = vrot.slane %v1192_v6, 1  ;;  %v1225_v11 = vadd.f32 %v1224_v7, %v1223_v3 }
 0x33c   : > { %v1199_v12 = vrot.slane %v1198_v8, 1  ;;  %v1231_v13 = vadd.f32 %v1230_v9, %v1229_v5 }
 0x33d   : > { %v1194_v14 = vadd.f32 %v1193_v10, %v1192_v6  ;;  %v1226_v15 = vrot.slane %v1225_v11, 1 }
 0x33e   : > { %v1200_v16 = vadd.f32 %v1199_v12, %v1198_v8  ;;  %v1232_v17 = vrot.slane %v1231_v13, 1 }
 0x33f   : > { %v6719_v18 = vmul.f32 0.125, %v1194_v14  ;;  %v1227_v19 = vadd.f32 %v1226_v15, %v1225_v11 }
 0x340   : > { %v6721_v20 = vmul.f32 0.125, %v1200_v16  ;;  %v1233_v21 = vadd.f32 %v1232_v17, %v1231_v13 }
 0x341   : > { %v1246_v22 = vmul.f32 0.125, %v1227_v19  ;;  %v1250_v23 = vmul.f32 %v6719_v18, %v6719_v18 }
 0x342   : > { %v1247_v24 = vmul.f32 0.125, %v1233_v21  ;;  %v1251_v25 = vmul.f32 %v6721_v20, %v6721_v20 }
 0x343   : > { %v1254_v26 = vsub.f32 %v1246_v22, %v1250_v23  ;;  %v6252_v22 = vmov 1966171168  }
 0x344   : > { %v1255_v27 = vsub.f32 %v1247_v24, %v1251_v25  ;;  %v1273_v23 = vunpack.c.l.s4 %v6252_v22 }
 0x345   : > { %v1258_v28 = vadd.f32 0.9, %v1254_v26 }
 0x346   : > { %v1259_v29 = vadd.f32 0.9, %v1255_v27  ;;  %v1274_v24 = vunpack.c.0.s8 %v1273_v23 }
 0x347   : > { %5805 = vrsqrt.f32 %v1258_v28 }
 0x348   : > { %5807 = vrsqrt.f32 %v1259_v29  ;;  %v6734_v26 = vsub.s32 %v1274_v24, %v6677_v52 }
 0x351   : > { %v5806_v30 = vpop.eup %5805 }
 0x352   : > { %v5808_v31 = vpop.eup %5807 }
 0x353   : > { %v1270_v32 = vcombine.low %v5806_v30, %v5808_v31 }
 0x355   : > { %v1278_v29 = vrot.slane %v1270_v32, %v6734_v26 }
 0x372   : > { %v6727_v33 = vpop.f32.mrb[8].mxu0 }
 0x373   : > { %v1201_v34 = vrot.slane %v6727_v33, 4  ;;  %v1220_v35 = vmul.f32 %v6727_v33, %v6727_v33  ;;  %v1182_v36 = vpop.f32.mrb[9].mxu0 }
 0x374   : > { %v1207_v37 = vrot.slane %v1182_v36, 4  ;;  %v1221_v38 = vmul.f32 %v1182_v36, %v1182_v36  ;;  %v1184_v39 = vpop.f32.mrb[10].mxu0 }
 0x375   : > { %v1202_v40 = vadd.f32 %v1201_v34, %v6727_v33  ;;  %v1234_v41 = vrot.slane %v1220_v35, 4  ;;  %v1185_v42 = vpop.f32.mrb[11].mxu0  ;;  %v1187_v34 = vld [vmem:[#allocation10] sm:$0xf] }
 0x376   : > { %v1208_v47 = vadd.f32 %v1207_v37, %v1182_v36  ;;  %v1240_v48 = vrot.slane %v1221_v38, 4  ;;  %v6740_v37 = vsub.s32 2, %v6677_v52 }
 0x377   : > { %v1203_v50 = vrot.slane %v1202_v40, 2  ;;  %v1235_v54 = vadd.f32 %v1234_v41, %v1220_v35 }
 0x378   : > { %v1209_v56 = vrot.slane %v1208_v47, 2  ;;  %v1241_v57 = vadd.f32 %v1240_v48, %v1221_v38  ;;  %v6743_v38 = vsub.s32 3, %v6677_v52 }
 0x379   : > { %v1204_v60 = vadd.f32 %v1203_v50, %v1202_v40  ;;  %v1236_v61 = vrot.slane %v1235_v54, 2 }
 0x37a   : > { %v1210_v62 = vadd.f32 %v1209_v56, %v1208_v47  ;;  %v1242_v63 = vrot.slane %v1241_v57, 2 }
 0x37b   : > { %v1205_v0 = vrot.slane %v1204_v60, 1  ;;  %v1237_v1 = vadd.f32 %v1236_v61, %v1235_v54 }
 0x37c   : > { %v1211_v2 = vrot.slane %v1210_v62, 1  ;;  %v1243_v3 = vadd.f32 %v1242_v63, %v1241_v57 }
 0x37d   : > { %v1206_v4 = vadd.f32 %v1205_v0, %v1204_v60  ;;  %v1238_v5 = vrot.slane %v1237_v1, 1 }
 0x37e   : > { %v1212_v6 = vadd.f32 %v1211_v2, %v1210_v62  ;;  %v1244_v7 = vrot.slane %v1243_v3, 1 }
 0x37f   : > { %v1216_v8 = vmul.f32 0.125, %v1206_v4  ;;  %v1239_v9 = vadd.f32 %v1238_v5, %v1237_v1 }
 0x380   : > { %v1217_v10 = vmul.f32 0.125, %v1212_v6  ;;  %v1245_v11 = vadd.f32 %v1244_v7, %v1243_v3  ;;  %v1188_v3 = vld [vmem:[#allocation11] sm:$0xf] }
 0x381   : > { %v1248_v12 = vmul.f32 0.125, %v1239_v9  ;;  %v1252_v13 = vmul.f32 %v1216_v8, %v1216_v8 }
 0x382   : > { %v1249_v14 = vmul.f32 0.125, %v1245_v11  ;;  %v1253_v15 = vmul.f32 %v1217_v10, %v1217_v10 }
 0x383   : > { %v1256_v16 = vsub.f32 %v1248_v12, %v1252_v13 }
 0x384   : > { %v1257_v17 = vsub.f32 %v1249_v14, %v1253_v15  ;;  %v1409_v15 = vld [vmem:[#allocation13 + $0x68] sm:$0xff] }
 0x385   : > { %v1260_v19 = vadd.f32 0.9, %v1256_v16  ;;  %v1406_v16 = vld [vmem:[#allocation13 + $0x50] sm:$0xff] }
 0x386   : > { %v1261_v21 = vadd.f32 0.9, %v1257_v17  ;;  %v1410_v17 = vld [vmem:[#allocation13 + $0x70] sm:$0xff] }
 0x387   : > { %5809 = vrsqrt.f32 %v1260_v19 }
 0x388   : > { %5811 = vrsqrt.f32 %v1261_v21 }
 0x391   : > { %v5810_v25 = vpop.eup %5809 }
 0x392   : > { %v5812_v27 = vpop.eup %5811 }
 0x393   : > { %v1271_v28 = vcombine.low %v5810_v25, %v5812_v27  ;;  %v1413_v27 = vld [vmem:[#allocation13 + $0x88] sm:$0xff] }
 0x395   : > { %v1285_v30 = vrot.slane %v1271_v28, %v6734_v26 }
 0x397   : > { %v1286_v31 = vcombine.low %v1278_v29, %v1285_v30  ;;  %v4935_v29 = vcombine.high %v1406_v16, %v1410_v17  ;;  %v1417_v30 = vld [vmem:[#allocation13 + $0xa8] sm:$0xff] }
 0x398   : > { %v4940_v44 = vcombine.low %v1413_v27, %v1417_v30 }
 0x399   : > { %v1293_v35 = vrot.slane %v1286_v31, %v6734_v26  ;;  %v1414_v31 = vld [vmem:[#allocation13 + $0x90] sm:$0xff] }
 0x39b   : > { %v1295_v39 = vmul.f32 %v1293_v35, %v1187_v34  ;;  %v1418_v34 = vld [vmem:[#allocation13 + $0xb0] sm:$0xff] }
 0x39c   : > { %v4942_v45 = vcombine.low %v1414_v31, %v1418_v34 }
 0x39d   : > { %v1300_v40 = vrot.slane %v1295_v39, %v6680_v53  ;;  %v1304_v41 = vrot.slane %v1295_v39, %v6683_v55  ;;  %v1308_v42 = vrot.slane %v1295_v39, %v6740_v37  ;;  %v1312_v32 = vrot.slane %v1295_v39, %v6743_v38 }
 0x39e   : > { %v4934_v39 = vcombine.low %v1406_v16, %v1410_v17  ;;  %v1461_v16 = vld [vmem:[#allocation13 + $0x208] sm:$0xff] }
 0x39f   : > { %v1317_v47 = vmul.f32 %v1300_v40, %v6719_v18  ;;  %v1318_v48 = vmul.f32 %v1304_v41, %v6721_v20  ;;  %v1319_v50 = vmul.f32 %v1308_v42, %v1216_v8  ;;  %v1320_v54 = vmul.f32 %v1312_v32, %v1217_v10  ;;  %v1405_v10 = vld [vmem:[#allocation13 + $0x48] sm:$0xff] }
 0x3a0   : > { %v1354_v56 = vmul.f32 %v1312_v32, %v1182_v36  ;;  %v1352_v57 = vmul.f32 %v1304_v41, %v6702_v49  ;;  %v1351_v60 = vmul.f32 %v1300_v40, %v6691_v43  ;;  %v1353_v61 = vmul.f32 %v1308_v42, %v6727_v33  ;;  %v1421_v42 = vld [vmem:[#allocation13 + $0xc8] sm:$0xff] }
 0x3a1   : > { %v1325_v62 = vcombine.low %v1317_v47, %v1318_v48  ;;  %v1326_v63 = vcombine.low %v1319_v50, %v1320_v54  ;;  %v4933_v28 = vcombine.high %v1405_v10, %v1409_v15  ;;  %v4932_v35 = vcombine.low %v1405_v10, %v1409_v15  ;;  %v1425_v32 = vld [vmem:[#allocation13 + $0xe8] sm:$0xff]  ;;  %v1422_v47 = vld [vmem:[#allocation13 + $0xd0] sm:$0xff] }
 0x3a2   : > { %v4941_v40 = vcombine.high %v1413_v27, %v1417_v30  ;;  %v4943_v41 = vcombine.high %v1414_v31, %v1418_v34  ;;  %v1426_v48 = vld [vmem:[#allocation13 + $0xf0] sm:$0xff]  ;;  %v4949_v46 = vcombine.high %v1421_v42, %v1425_v32  ;;  %v1465_v17 = vld [vmem:[#allocation13 + $0x228] sm:$0xff] }
 0x3a3   : > { %v1333_v0 = vrot.slane %v1325_v62, %v6734_v26  ;;  %v1340_v1 = vrot.slane %v1326_v63, %v6734_v26  ;;  %v4951_v51 = vcombine.high %v1422_v47, %v1426_v48  ;;  %v1430_v50 = vld [vmem:[#allocation13 + $0x110] sm:$0xff]  ;;  %v1437_v62 = vld [vmem:[#allocation13 + $0x148] sm:$0xff] }
 0x3a4   : > { %v1434_v54 = vld [vmem:[#allocation13 + $0x130] sm:$0xff]  ;;  %v1441_v63 = vld [vmem:[#allocation13 + $0x168] sm:$0xff] }
 0x3a5   : > { %v1341_v2 = vcombine.low %v1333_v0, %v1340_v1  ;;  %v1438_v0 = vld [vmem:[#allocation13 + $0x150] sm:$0xff]  ;;  %v1469_v31 = vld [vmem:[#allocation13 + $0x248] sm:$0xff] }
 0x3a6   : > { %v1442_v1 = vld [vmem:[#allocation13 + $0x170] sm:$0xff]  ;;  %v1473_v34 = vld [vmem:[#allocation13 + $0x268] sm:$0xff] }
 0x3a7   : > { %v1348_v18 = vrot.slane %v1341_v2, %v6734_v26  ;;  %v1454_v10 = vld [vmem:[#allocation13 + $0x1d0] sm:$0xff] }
 0x3a9   : > { %v1350_v20 = vsub.f32 %v1188_v3, %v1348_v18  ;;  %v4958_v3 = vcombine.low %v1430_v50, %v1434_v54  ;;  %v4965_v18 = vcombine.high %v1437_v62, %v1441_v63 }
 0x3ab   : > { %v1371_v4 = vrot.slane %v1350_v20, %v6743_v38  ;;  %v1363_v36 = vrot.slane %v1350_v20, %v6683_v55  ;;  %v1359_v49 = vrot.slane %v1350_v20, %v6680_v53  ;;  %v1367_v43 = vrot.slane %v1350_v20, %v6740_v37 }
 0x3ac   : > { %v4967_v20 = vcombine.high %v1438_v0, %v1442_v1 }
 0x3ad   : > { %v1379_v33 = vadd.f32 %v1371_v4, %v1354_v56  ;;  %v1377_v5 = vadd.f32 %v1363_v36, %v1352_v57  ;;  %v1376_v6 = vadd.f32 %v1359_v49, %v1351_v60  ;;  %v1378_v7 = vadd.f32 %v1367_v43, %v1353_v61  ;;  %v1445_v4 = vld [vmem:[#allocation13 + $0x188] sm:$0xff]  ;;  %v1446_v49 = vld [vmem:[#allocation13 + $0x190] sm:$0xff] }
 0x3ae   : > { %v4948_v56 = vcombine.low %v1421_v42, %v1425_v32  ;;  %v4950_v57 = vcombine.low %v1422_v47, %v1426_v48  ;;  %v4959_v61 = vcombine.high %v1430_v50, %v1434_v54  ;;  %v1449_v36 = vld [vmem:[#allocation13 + $0x1a8] sm:$0xff]  ;;  %v1450_v43 = vld [vmem:[#allocation13 + $0x1b0] sm:$0xff]  ;;  %v4997_v42 = vcombine.high %v1469_v31, %v1473_v34 }
 0x3af   : > { %vm1381_vm2 = vcmp.gt.f32.partialorder %v1377_v5, 0.0  ;;  %v1385_v8 = vmul.f32 0.2, %v1377_v5  ;;  %vm1383_vm3 = vcmp.gt.f32.partialorder %v1379_v33, 0.0  ;;  %v1387_v9 = vmul.f32 0.2, %v1379_v33 }
 0x3b0   : > { %vm1380_vm4 = vcmp.gt.f32.partialorder %v1376_v6, 0.0  ;;  %v1384_v11 = vmul.f32 0.2, %v1376_v6  ;;  %vm1382_vm5 = vcmp.gt.f32.partialorder %v1378_v7, 0.0  ;;  %v1386_v12 = vmul.f32 0.2, %v1378_v7 }
 0x3b1   : > { %v1389_v13 = vsel %vm1381_vm2, %v1377_v5, %v1385_v8  ;;  %v1391_v14 = vsel %vm1383_vm3, %v1379_v33, %v1387_v9  ;;  %v4964_v33 = vcombine.low %v1437_v62, %v1441_v63  ;;  %v4966_v5 = vcombine.low %v1438_v0, %v1442_v1  ;;  %v1453_v8 = vld [vmem:[#allocation13 + $0x1c8] sm:$0xff] }
 0x3b2   : > { %v6761_v19 = vpack.c.bf16 %v1389_v13, %v1389_v13  ;;  %v6763_v21 = vpack.c.bf16 %v1391_v14, %v1391_v14  ;;  %v1388_v22 = vsel %vm1380_vm4, %v1376_v6, %v1384_v11  ;;  %v1390_v23 = vsel %vm1382_vm5, %v1378_v7, %v1386_v12  ;;  %v1457_v9 = vld [vmem:[#allocation13 + $0x1e8] sm:$0xff]  ;;  %v1458_v11 = vld [vmem:[#allocation13 + $0x1f0] sm:$0xff] }
 0x3b3   : > { %v6765_v24 = vpack.c.bf16 %v1388_v22, %v1388_v22  ;;  %v6767_v25 = vpack.c.bf16 %v1390_v23, %v1390_v23  ;;  %v4973_v6 = vcombine.high %v1445_v4, %v1449_v36  ;;  %v4975_v7 = vcombine.high %v1446_v49, %v1450_v43  ;;  %v1462_v22 = vld [vmem:[#allocation13 + $0x210] sm:$0xff]  ;;  %v1477_v47 = vld [vmem:[#allocation13 + $0x288] sm:$0xff] }
 0x3b4   : > { %2964 = vmatprep.mubr.bf16.mxu0 %v6761_v19  ;;  %3005 = vmatprep.mubr.bf16.mxu1 %v6763_v21  ;;  %v4972_v12 = vcombine.low %v1445_v4, %v1449_v36  ;;  %v4974_v13 = vcombine.low %v1446_v49, %v1450_v43  ;;  %v4981_v14 = vcombine.high %v1453_v8, %v1457_v9  ;;  %v1466_v23 = vld [vmem:[#allocation13 + $0x230] sm:$0xff]  ;;  %v1481_v48 = vld [vmem:[#allocation13 + $0x2a8] sm:$0xff] }
 0x3b5   : > { %2965 = vmatmul.mubr.bf16.vlgmr.msra.gmra.mrb[12].mxu0 %v6765_v24  ;;  %3006 = vmatmul.mubr.bf16.vlgmr.msra.gmra.mrb[0].mxu1 %v6767_v25  ;;  %v4983_v15 = vcombine.high %v1454_v10, %v1458_v11  ;;  %v4980_v27 = vcombine.low %v1453_v8, %v1457_v9  ;;  %v4991_v30 = vcombine.high %v1462_v22, %v1466_v23  ;;  %v1485_v50 = vld [vmem:[#allocation13 + $0x2c8] sm:$0xff] }
 0x3b6   : > { %3015 = vmatpush1.bf16.msra.mxu0 %v4924_v58  ;;  %3097 = vmatpush1.bf16.msra.mxu1 %v4926_v59  ;;  %v1429_v58 = vld [vmem:[#allocation13 + $0x108] sm:$0xff] }
 0x3b7   : > { %3046 = vmatprep.mubr.bf16.mxu0 %v6761_v19  ;;  %3128 = vmatprep.mubr.bf16.mxu1 %v6761_v19  ;;  %v1433_v59 = vld [vmem:[#allocation13 + $0x128] sm:$0xff] }
 0x3b8   : > { %3016 = vmatprep.subr.bf16.mxu0 %v4933_v28  ;;  %3098 = vmatprep.subr.bf16.mxu1 %v4935_v29  ;;  %v4957_v60 = vcombine.high %v1429_v58, %v1433_v59  ;;  %v4956_v2 = vcombine.low %v1429_v58, %v1433_v59  ;;  %v4982_v28 = vcombine.low %v1454_v10, %v1458_v11  ;;  %v1489_v54 = vld [vmem:[#allocation13 + $0x2e8] sm:$0xff] }
 0x3b9   : > { %v4989_v29 = vcombine.high %v1461_v16, %v1465_v17  ;;  %v5005_v58 = vcombine.high %v1477_v47, %v1481_v48  ;;  %v5013_v62 = vcombine.high %v1485_v50, %v1489_v54  ;;  %v1493_v0 = vld [vmem:[#allocation13 + $0x308] sm:$0xff] }
 0x3ba   : > { %3017 = vmatpush1.bf16.msra.mxu0 %v4932_v35  ;;  %3099 = vmatpush1.bf16.msra.mxu1 %v4934_v39  ;;  %v1470_v35 = vld [vmem:[#allocation13 + $0x250] sm:$0xff]  ;;  %v1497_v1 = vld [vmem:[#allocation13 + $0x328] sm:$0xff] }
 0x3bb   : > { %3018 = vmatprep.subr.bf16.mxu0 %v4941_v40  ;;  %3100 = vmatprep.subr.bf16.mxu1 %v4943_v41  ;;  %v1474_v39 = vld [vmem:[#allocation13 + $0x270] sm:$0xff]  ;;  %v4988_v40 = vcombine.low %v1461_v16, %v1465_v17  ;;  %v4990_v41 = vcombine.low %v1462_v22, %v1466_v23  ;;  %v5021_v4 = vcombine.high %v1493_v0, %v1497_v1  ;;  %v1501_v49 = vld [vmem:[#allocation13 + $0x348] sm:$0xff] }
 0x3bc   : > { %v4999_v32 = vcombine.high %v1470_v35, %v1474_v39  ;;  %v1505_v43 = vld [vmem:[#allocation13 + $0x368] sm:$0xff] }
 0x3bd   : > { %v5029_v8 = vcombine.high %v1501_v49, %v1505_v43  ;;  %v1509_v10 = vld [vmem:[#allocation13 + $0x388] sm:$0xff] }
 0x3be   : > { %3019 = vmatpush1.bf16.msra.mxu0 %v4940_v44  ;;  %3101 = vmatpush1.bf16.msra.mxu1 %v4942_v45  ;;  %v1478_v44 = vld [vmem:[#allocation13 + $0x290] sm:$0xff]  ;;  %v1513_v11 = vld [vmem:[#allocation13 + $0x3a8] sm:$0xff] }
 0x3bf   : > { %3020 = vmatprep.subr.bf16.mxu0 %v4949_v46  ;;  %3102 = vmatprep.subr.bf16.mxu1 %v4951_v51  ;;  %v1482_v45 = vld [vmem:[#allocation13 + $0x2b0] sm:$0xff]  ;;  %v4996_v46 = vcombine.low %v1469_v31, %v1473_v34  ;;  %v4998_v51 = vcombine.low %v1470_v35, %v1474_v39  ;;  %v5037_v16 = vcombine.high %v1509_v10, %v1513_v11  ;;  %v1517_v22 = vld [vmem:[#allocation13 + $0x3c8] sm:$0xff] }
 0x3c0   : > { %v5007_v59 = vcombine.high %v1478_v44, %v1482_v45  ;;  %v1521_v23 = vld [vmem:[#allocation13 + $0x3e8] sm:$0xff] }
 0x3c1   : > { %v5045_v31 = vcombine.high %v1517_v22, %v1521_v23  ;;  %v1525_v35 = vld [vmem:[#allocation13 + $0x408] sm:$0xff] }
 0x3c2   : > { %3021 = vmatpush1.bf16.msra.mxu0 %v4948_v56  ;;  %3103 = vmatpush1.bf16.msra.mxu1 %v4950_v57  ;;  %v1486_v56 = vld [vmem:[#allocation13 + $0x2d0] sm:$0xff]  ;;  %v1529_v39 = vld [vmem:[#allocation13 + $0x428] sm:$0xff] }
 0x3c3   : > { %3022 = vmatprep.subr.bf16.mxu0 %v4957_v60  ;;  %3104 = vmatprep.subr.bf16.mxu1 %v4959_v61  ;;  %v1490_v57 = vld [vmem:[#allocation13 + $0x2f0] sm:$0xff]  ;;  %v5004_v60 = vcombine.low %v1477_v47, %v1481_v48  ;;  %v5006_v61 = vcombine.low %v1478_v44, %v1482_v45  ;;  %v5053_v47 = vcombine.high %v1525_v35, %v1529_v39  ;;  %v1533_v44 = vld [vmem:[#allocation13 + $0x448] sm:$0xff] }
 0x3c4   : > { %v5015_v63 = vcombine.high %v1486_v56, %v1490_v57  ;;  %v1537_v45 = vld [vmem:[#allocation13 + $0x468] sm:$0xff] }
 0x3c6   : > { %3023 = vmatpush1.bf16.msra.mxu0 %v4956_v2  ;;  %3105 = vmatpush1.bf16.msra.mxu1 %v4958_v3  ;;  %v1494_v2 = vld [vmem:[#allocation13 + $0x310] sm:$0xff] }
 0x3c7   : > { %3024 = vmatprep.subr.bf16.mxu0 %v4965_v18  ;;  %3106 = vmatprep.subr.bf16.mxu1 %v4967_v20  ;;  %v1498_v3 = vld [vmem:[#allocation13 + $0x330] sm:$0xff]  ;;  %v5012_v18 = vcombine.low %v1485_v50, %v1489_v54  ;;  %v5014_v20 = vcombine.low %v1486_v56, %v1490_v57  ;;  %v5061_v50 = vcombine.high %v1533_v44, %v1537_v45  ;;  %v1541_v56 = vld [vmem:[#allocation13 + $0x488] sm:$0xff] }
 0x3c8   : > { %v5023_v36 = vcombine.high %v1494_v2, %v1498_v3  ;;  %v1545_v57 = vld [vmem:[#allocation13 + $0x4a8] sm:$0xff] }
 0x3ca   : > { %3025 = vmatpush1.bf16.msra.mxu0 %v4964_v33  ;;  %3107 = vmatpush1.bf16.msra.mxu1 %v4966_v5  ;;  %v1502_v33 = vld [vmem:[#allocation13 + $0x350] sm:$0xff] }
 0x3cb   : > { %3026 = vmatprep.subr.bf16.mxu0 %v4973_v6  ;;  %3108 = vmatprep.subr.bf16.mxu1 %v4975_v7  ;;  %v1506_v5 = vld [vmem:[#allocation13 + $0x370] sm:$0xff]  ;;  %v5020_v6 = vcombine.low %v1493_v0, %v1497_v1  ;;  %v5022_v7 = vcombine.low %v1494_v2, %v1498_v3  ;;  %v5069_v0 = vcombine.high %v1541_v56, %v1545_v57  ;;  %v1549_v2 = vld [vmem:[#allocation13 + $0x4c8] sm:$0xff] }
 0x3cc   : > { %v5031_v9 = vcombine.high %v1502_v33, %v1506_v5  ;;  %v1553_v3 = vld [vmem:[#allocation13 + $0x4e8] sm:$0xff] }
 0x3ce   : > { %3027 = vmatpush1.bf16.msra.mxu0 %v4972_v12  ;;  %3109 = vmatpush1.bf16.msra.mxu1 %v4974_v13  ;;  %v1510_v12 = vld [vmem:[#allocation13 + $0x390] sm:$0xff] }
 0x3cf   : > { %3028 = vmatprep.subr.bf16.mxu0 %v4981_v14  ;;  %3110 = vmatprep.subr.bf16.mxu1 %v4983_v15  ;;  %v1514_v13 = vld [vmem:[#allocation13 + $0x3b0] sm:$0xff]  ;;  %v5028_v14 = vcombine.low %v1501_v49, %v1505_v43  ;;  %v5030_v15 = vcombine.low %v1502_v33, %v1506_v5  ;;  %v5077_v49 = vcombine.high %v1549_v2, %v1553_v3  ;;  %v1557_v33 = vld [vmem:[#allocation13 + $0x508] sm:$0xff] }
 0x3d0   : > { %v5039_v17 = vcombine.high %v1510_v12, %v1514_v13  ;;  %v1561_v5 = vld [vmem:[#allocation13 + $0x528] sm:$0xff] }
 0x3d2   : > { %3029 = vmatpush1.bf16.msra.mxu0 %v4980_v27  ;;  %3111 = vmatpush1.bf16.msra.mxu1 %v4982_v28  ;;  %v1518_v27 = vld [vmem:[#allocation13 + $0x3d0] sm:$0xff] }
 0x3d3   : > { %3030 = vmatprep.subr.bf16.mxu0 %v4989_v29  ;;  %3112 = vmatprep.subr.bf16.mxu1 %v4991_v30  ;;  %v1522_v28 = vld [vmem:[#allocation13 + $0x3f0] sm:$0xff]  ;;  %v5036_v29 = vcombine.low %v1509_v10, %v1513_v11  ;;  %v5038_v30 = vcombine.low %v1510_v12, %v1514_v13  ;;  %v5085_v10 = vcombine.high %v1557_v33, %v1561_v5  ;;  %v1565_v12 = vld [vmem:[#allocation13 + $0x548] sm:$0xff] }
 0x3d4   : > { %v5047_v34 = vcombine.high %v1518_v27, %v1522_v28  ;;  %v1569_v13 = vld [vmem:[#allocation13 + $0x568] sm:$0xff] }
 0x3d6   : > { %3031 = vmatpush1.bf16.msra.mxu0 %v4988_v40  ;;  %3113 = vmatpush1.bf16.msra.mxu1 %v4990_v41  ;;  %v1526_v40 = vld [vmem:[#allocation13 + $0x410] sm:$0xff] }
 0x3d7   : > { %3032 = vmatprep.subr.bf16.mxu0 %v4997_v42  ;;  %3114 = vmatprep.subr.bf16.mxu1 %v4999_v32  ;;  %v1530_v41 = vld [vmem:[#allocation13 + $0x430] sm:$0xff]  ;;  %v5044_v42 = vcombine.low %v1517_v22, %v1521_v23  ;;  %v5046_v32 = vcombine.low %v1518_v27, %v1522_v28  ;;  %v5093_v22 = vcombine.high %v1565_v12, %v1569_v13  ;;  %v1573_v27 = vld [vmem:[#allocation13 + $0x588] sm:$0xff] }
 0x3d8   : > { %v5055_v48 = vcombine.high %v1526_v40, %v1530_v41  ;;  %v1577_v28 = vld [vmem:[#allocation13 + $0x5a8] sm:$0xff] }
 0x3da   : > { %3033 = vmatpush1.bf16.msra.mxu0 %v4996_v46  ;;  %3115 = vmatpush1.bf16.msra.mxu1 %v4998_v51  ;;  %v1534_v46 = vld [vmem:[#allocation13 + $0x450] sm:$0xff] }
 0x3db   : > { %3034 = vmatprep.subr.bf16.mxu0 %v5005_v58  ;;  %3116 = vmatprep.subr.bf16.mxu1 %v5007_v59  ;;  %v1538_v51 = vld [vmem:[#allocation13 + $0x470] sm:$0xff]  ;;  %v5052_v58 = vcombine.low %v1525_v35, %v1529_v39  ;;  %v5054_v59 = vcombine.low %v1526_v40, %v1530_v41  ;;  %v5101_v35 = vcombine.high %v1573_v27, %v1577_v28  ;;  %v1581_v40 = vld [vmem:[#allocation13 + $0x5c8] sm:$0xff] }
 0x3dc   : > { %v5063_v54 = vcombine.high %v1534_v46, %v1538_v51  ;;  %v1585_v41 = vld [vmem:[#allocation13 + $0x5e8] sm:$0xff] }
 0x3de   : > { %3035 = vmatpush1.bf16.msra.mxu0 %v5004_v60  ;;  %3117 = vmatpush1.bf16.msra.mxu1 %v5006_v61  ;;  %v1542_v60 = vld [vmem:[#allocation13 + $0x490] sm:$0xff] }
 0x3df   : > { %3036 = vmatprep.subr.bf16.mxu0 %v5013_v62  ;;  %3118 = vmatprep.subr.bf16.mxu1 %v5015_v63  ;;  %v1546_v61 = vld [vmem:[#allocation13 + $0x4b0] sm:$0xff]  ;;  %v5060_v62 = vcombine.low %v1533_v44, %v1537_v45  ;;  %v5062_v63 = vcombine.low %v1534_v46, %v1538_v51  ;;  %v5109_v44 = vcombine.high %v1581_v40, %v1585_v41  ;;  %v1589_v46 = vld [vmem:[#allocation13 + $0x608] sm:$0xff] }
 0x3e0   : > { %v5071_v1 = vcombine.high %v1542_v60, %v1546_v61  ;;  %v1593_v51 = vld [vmem:[#allocation13 + $0x628] sm:$0xff] }
 0x3e2   : > { %3037 = vmatpush1.bf16.msra.mxu0 %v5012_v18  ;;  %3119 = vmatpush1.bf16.msra.mxu1 %v5014_v20  ;;  %v1550_v18 = vld [vmem:[#allocation13 + $0x4d0] sm:$0xff] }
 0x3e3   : > { %3038 = vmatprep.subr.bf16.mxu0 %v5021_v4  ;;  %3120 = vmatprep.subr.bf16.mxu1 %v5023_v36  ;;  %v1554_v20 = vld [vmem:[#allocation13 + $0x4f0] sm:$0xff]  ;;  %v5068_v4 = vcombine.low %v1541_v56, %v1545_v57  ;;  %v5070_v36 = vcombine.low %v1542_v60, %v1546_v61  ;;  %v5117_v56 = vcombine.high %v1589_v46, %v1593_v51  ;;  %v1597_v60 = vld [vmem:[#allocation13 + $0x648] sm:$0xff] }
 0x3e4   : > { %v5079_v43 = vcombine.high %v1550_v18, %v1554_v20  ;;  %v1601_v61 = vld [vmem:[#allocation13 + $0x668] sm:$0xff] }
 0x3e6   : > { %3039 = vmatpush1.bf16.msra.mxu0 %v5020_v6  ;;  %3121 = vmatpush1.bf16.msra.mxu1 %v5022_v7  ;;  %v1558_v6 = vld [vmem:[#allocation13 + $0x510] sm:$0xff] }
 0x3e7   : > { %3040 = vmatprep.subr.bf16.mxu0 %v5029_v8  ;;  %3122 = vmatprep.subr.bf16.mxu1 %v5031_v9  ;;  %v1562_v7 = vld [vmem:[#allocation13 + $0x530] sm:$0xff]  ;;  %v5076_v8 = vcombine.low %v1549_v2, %v1553_v3  ;;  %v5078_v9 = vcombine.low %v1550_v18, %v1554_v20  ;;  %v5125_v2 = vcombine.high %v1597_v60, %v1601_v61  ;;  %v1605_v18 = vld [vmem:[#allocation13 + $0x688] sm:$0xff] }
 0x3e8   : > { %v5087_v11 = vcombine.high %v1558_v6, %v1562_v7  ;;  %v1609_v20 = vld [vmem:[#allocation13 + $0x6a8] sm:$0xff] }
 0x3ea   : > { %3041 = vmatpush1.bf16.msra.mxu0 %v5028_v14  ;;  %3123 = vmatpush1.bf16.msra.mxu1 %v5030_v15  ;;  %v1566_v14 = vld [vmem:[#allocation13 + $0x550] sm:$0xff] }
 0x3eb   : > { %3042 = vmatprep.subr.bf16.mxu0 %v5037_v16  ;;  %3124 = vmatprep.subr.bf16.mxu1 %v5039_v17  ;;  %v1570_v15 = vld [vmem:[#allocation13 + $0x570] sm:$0xff]  ;;  %v5084_v16 = vcombine.low %v1557_v33, %v1561_v5  ;;  %v5086_v17 = vcombine.low %v1558_v6, %v1562_v7  ;;  %v5133_v33 = vcombine.high %v1605_v18, %v1609_v20  ;;  %v1613_v6 = vld [vmem:[#allocation13 + $0x6c8] sm:$0xff] }
 0x3ec   : > { %v5095_v23 = vcombine.high %v1566_v14, %v1570_v15  ;;  %v1617_v7 = vld [vmem:[#allocation13 + $0x6e8] sm:$0xff] }
 0x3ee   : > { %3043 = vmatpush1.bf16.msra.mxu0 %v5036_v29  ;;  %3125 = vmatpush1.bf16.msra.mxu1 %v5038_v30  ;;  %v1574_v29 = vld [vmem:[#allocation13 + $0x590] sm:$0xff] }
 0x3ef   : > { %3044 = vmatprep.subr.bf16.mxu0 %v5045_v31  ;;  %3126 = vmatprep.subr.bf16.mxu1 %v5047_v34  ;;  %v1578_v30 = vld [vmem:[#allocation13 + $0x5b0] sm:$0xff]  ;;  %v5092_v31 = vcombine.low %v1565_v12, %v1569_v13  ;;  %v5094_v34 = vcombine.low %v1566_v14, %v1570_v15  ;;  %v5141_v12 = vcombine.high %v1613_v6, %v1617_v7  ;;  %v1621_v14 = vld [vmem:[#allocation13 + $0x708] sm:$0xff] }
 0x3f0   : > { %v5103_v39 = vcombine.high %v1574_v29, %v1578_v30  ;;  %v1625_v15 = vld [vmem:[#allocation13 + $0x728] sm:$0xff] }
 0x3f2   : > { %3045 = vmatpush1.bf16.msra.mxu0 %v5044_v42  ;;  %3127 = vmatpush1.bf16.msra.mxu1 %v5046_v32  ;;  %v1582_v42 = vld [vmem:[#allocation13 + $0x5d0] sm:$0xff] }
 0x3f3   : > { %3055 = vmatprep.subr.bf16.mxu0 %v5053_v47  ;;  %3137 = vmatprep.subr.bf16.mxu1 %v5055_v48  ;;  %v1586_v32 = vld [vmem:[#allocation13 + $0x5f0] sm:$0xff]  ;;  %v5100_v47 = vcombine.low %v1573_v27, %v1577_v28  ;;  %v5102_v48 = vcombine.low %v1574_v29, %v1578_v30  ;;  %v5149_v27 = vcombine.high %v1621_v14, %v1625_v15  ;;  %v1629_v29 = vld [vmem:[#allocation13 + $0x748] sm:$0xff] }
 0x3f4   : > { %v5111_v45 = vcombine.high %v1582_v42, %v1586_v32  ;;  %v1633_v30 = vld [vmem:[#allocation13 + $0x768] sm:$0xff] }
 0x3f5   : > { %3047 = vmatmul.mubr.bf16.vlgmr.msra.gmra.mrb[16].mxu0 %v6765_v24  ;;  %3129 = vmatmul.mubr.bf16.vlgmr.msra.gmra.mrb[4].mxu1 %v6765_v24 }
 0x3f6   : > { %3056 = vmatpush1.bf16.msra.mxu0 %v5052_v58  ;;  %3087 = vmatprep.mubr.bf16.mxu0 %v6763_v21  ;;  %v1590_v58 = vld [vmem:[#allocation13 + $0x610] sm:$0xff] }
 0x3f7   : > { %3138 = vmatpush1.bf16.msra.mxu1 %v5054_v59  ;;  %3169 = vmatprep.mubr.bf16.mxu1 %v6763_v21  ;;  %v1594_v59 = vld [vmem:[#allocation13 + $0x630] sm:$0xff] }
 0x3f8   : > { %3057 = vmatprep.subr.bf16.mxu0 %v5061_v50  ;;  %3139 = vmatprep.subr.bf16.mxu1 %v5063_v54  ;;  %v5108_v50 = vcombine.low %v1581_v40, %v1585_v41  ;;  %v5110_v54 = vcombine.low %v1582_v42, %v1586_v32  ;;  %v5119_v57 = vcombine.high %v1590_v58, %v1594_v59  ;;  %v1637_v42 = vld [vmem:[#allocation13 + $0x788] sm:$0xff] }
 0x3f9   : > { %v5157_v40 = vcombine.high %v1629_v29, %v1633_v30  ;;  %v1641_v32 = vld [vmem:[#allocation13 + $0x7a8] sm:$0xff] }
 0x3fa   : > { %3058 = vmatpush1.bf16.msra.mxu0 %v5060_v62  ;;  %v1598_v62 = vld [vmem:[#allocation13 + $0x650] sm:$0xff] }
 0x3fb   : > { %3140 = vmatpush1.bf16.msra.mxu1 %v5062_v63  ;;  %3059 = vmatprep.subr.bf16.mxu0 %v5069_v0  ;;  %v1602_v63 = vld [vmem:[#allocation13 + $0x670] sm:$0xff]  ;;  %v5116_v0 = vcombine.low %v1589_v46, %v1593_v51  ;;  %v5165_v46 = vcombine.high %v1637_v42, %v1641_v32 }
 0x3fc   : > { %3141 = vmatprep.subr.bf16.mxu1 %v5071_v1  ;;  %v5118_v1 = vcombine.low %v1590_v58, %v1594_v59  ;;  %v5127_v3 = vcombine.high %v1598_v62, %v1602_v63  ;;  %v1645_v58 = vld [vmem:[#allocation13 + $0x7c8] sm:$0xff] }
 0x3fd   : > { %v1649_v59 = vld [vmem:[#allocation13 + $0x7e8] sm:$0xff] }
 0x3fe   : > { %3060 = vmatpush1.bf16.msra.mxu0 %v5068_v4  ;;  %v1606_v4 = vld [vmem:[#allocation13 + $0x690] sm:$0xff] }
 0x3ff   : > { %3142 = vmatpush1.bf16.msra.mxu1 %v5070_v36  ;;  %3061 = vmatprep.subr.bf16.mxu0 %v5077_v49  ;;  %v1610_v36 = vld [vmem:[#allocation13 + $0x6b0] sm:$0xff]  ;;  %v5124_v49 = vcombine.low %v1597_v60, %v1601_v61  ;;  %v5173_v60 = vcombine.high %v1645_v58, %v1649_v59 }
 0x400   : > { %3143 = vmatprep.subr.bf16.mxu1 %v5079_v43  ;;  %v5126_v43 = vcombine.low %v1598_v62, %v1602_v63  ;;  %v5135_v5 = vcombine.high %v1606_v4, %v1610_v36  ;;  %v1399_v62 = vld [vmem:[#allocation13 + $0x18] sm:$0xff] }
 0x401   : > { %v1403_v63 = vld [vmem:[#allocation13 + $0x38] sm:$0xff] }
 0x402   : > { %3062 = vmatpush1.bf16.msra.mxu0 %v5076_v8  ;;  %v1614_v8 = vld [vmem:[#allocation13 + $0x6d0] sm:$0xff] }
 0x403   : > { %3144 = vmatpush1.bf16.msra.mxu1 %v5078_v9  ;;  %3063 = vmatprep.subr.bf16.mxu0 %v5085_v10  ;;  %v1618_v9 = vld [vmem:[#allocation13 + $0x6f0] sm:$0xff]  ;;  %v5132_v10 = vcombine.low %v1605_v18, %v1609_v20  ;;  %v1411_v18 = vld [vmem:[#allocation13 + $0x78] sm:$0xff]  ;;  %v4928_v20 = vcombine.low %v1399_v62, %v1403_v63 }
 0x404   : > { %3145 = vmatprep.subr.bf16.mxu1 %v5087_v11  ;;  %v5134_v11 = vcombine.low %v1606_v4, %v1610_v36  ;;  %v5143_v13 = vcombine.high %v1614_v8, %v1618_v9  ;;  %v1415_v36 = vld [vmem:[#allocation13 + $0x98] sm:$0xff] }
 0x406   : > { %3064 = vmatpush1.bf16.msra.mxu0 %v5084_v16  ;;  %v1622_v16 = vld [vmem:[#allocation13 + $0x710] sm:$0xff] }
 0x407   : > { %3146 = vmatpush1.bf16.msra.mxu1 %v5086_v17  ;;  %3065 = vmatprep.subr.bf16.mxu0 %v5093_v22  ;;  %v1626_v17 = vld [vmem:[#allocation13 + $0x730] sm:$0xff]  ;;  %v5140_v22 = vcombine.low %v1613_v6, %v1617_v7  ;;  %v1427_v6 = vld [vmem:[#allocation13 + $0xf8] sm:$0xff] }
 0x408   : > { %3147 = vmatprep.subr.bf16.mxu1 %v5095_v23  ;;  %v5142_v23 = vcombine.low %v1614_v8, %v1618_v9  ;;  %v5151_v28 = vcombine.high %v1622_v16, %v1626_v17  ;;  %v1431_v9 = vld [vmem:[#allocation13 + $0x118] sm:$0xff] }
 0x40a   : > { %3066 = vmatpush1.bf16.msra.mxu0 %v5092_v31  ;;  %v1630_v31 = vld [vmem:[#allocation13 + $0x750] sm:$0xff] }
 0x40b   : > { %3148 = vmatpush1.bf16.msra.mxu1 %v5094_v34  ;;  %3067 = vmatprep.subr.bf16.mxu0 %v5101_v35  ;;  %v1634_v34 = vld [vmem:[#allocation13 + $0x770] sm:$0xff]  ;;  %v5148_v35 = vcombine.low %v1621_v14, %v1625_v15  ;;  %v1443_v14 = vld [vmem:[#allocation13 + $0x178] sm:$0xff] }
 0x40c   : > { %3149 = vmatprep.subr.bf16.mxu1 %v5103_v39  ;;  %v5150_v39 = vcombine.low %v1622_v16, %v1626_v17  ;;  %v5159_v41 = vcombine.high %v1630_v31, %v1634_v34  ;;  %v1447_v16 = vld [vmem:[#allocation13 + $0x198] sm:$0xff] }
 0x40d   : > { %v1451_v17 = vld [vmem:[#allocation13 + $0x1b8] sm:$0xff] }
 0x40e   : > { %3068 = vmatpush1.bf16.msra.mxu0 %v5100_v47  ;;  %v1638_v47 = vld [vmem:[#allocation13 + $0x790] sm:$0xff] }
 0x40f   : > { %3150 = vmatpush1.bf16.msra.mxu1 %v5102_v48  ;;  %3069 = vmatprep.subr.bf16.mxu0 %v5109_v44  ;;  %v1642_v48 = vld [vmem:[#allocation13 + $0x7b0] sm:$0xff]  ;;  %v5156_v44 = vcombine.low %v1629_v29, %v1633_v30  ;;  %v4976_v29 = vcombine.low %v1447_v16, %v1451_v17 }
 0x410   : > { %3151 = vmatprep.subr.bf16.mxu1 %v5111_v45  ;;  %v5158_v45 = vcombine.low %v1630_v31, %v1634_v34  ;;  %v5167_v51 = vcombine.high %v1638_v47, %v1642_v48  ;;  %v1463_v31 = vld [vmem:[#allocation13 + $0x218] sm:$0xff] }
 0x411   : > { %v1467_v34 = vld [vmem:[#allocation13 + $0x238] sm:$0xff] }
 0x412   : > { %3070 = vmatpush1.bf16.msra.mxu0 %v5108_v50  ;;  %v1646_v50 = vld [vmem:[#allocation13 + $0x7d0] sm:$0xff] }
 0x413   : > { %3152 = vmatpush1.bf16.msra.mxu1 %v5110_v54  ;;  %3071 = vmatprep.subr.bf16.mxu0 %v5117_v56  ;;  %v1650_v54 = vld [vmem:[#allocation13 + $0x7f0] sm:$0xff]  ;;  %v5164_v56 = vcombine.low %v1637_v42, %v1641_v32  ;;  %v4992_v42 = vcombine.low %v1463_v31, %v1467_v34 }
 0x414   : > { %3153 = vmatprep.subr.bf16.mxu1 %v5119_v57  ;;  %v5166_v57 = vcombine.low %v1638_v47, %v1642_v48  ;;  %v5175_v61 = vcombine.high %v1646_v50, %v1650_v54  ;;  %v1479_v47 = vld [vmem:[#allocation13 + $0x298] sm:$0xff] }
 0x415   : > { %v1483_v48 = vld [vmem:[#allocation13 + $0x2b8] sm:$0xff] }
 0x416   : > { %3072 = vmatpush1.bf16.msra.mxu0 %v5116_v0  ;;  %v5172_v0 = vcombine.low %v1645_v58, %v1649_v59  ;;  %v5008_v58 = vcombine.low %v1479_v47, %v1483_v48 }
 0x417   : > { %3154 = vmatpush1.bf16.msra.mxu1 %v5118_v1  ;;  %3073 = vmatprep.subr.bf16.mxu0 %v5125_v2  ;;  %v5174_v1 = vcombine.low %v1646_v50, %v1650_v54  ;;  %v4929_v2 = vcombine.high %v1399_v62, %v1403_v63  ;;  %v1495_v50 = vld [vmem:[#allocation13 + $0x318] sm:$0xff] }
 0x418   : > { %3155 = vmatprep.subr.bf16.mxu1 %v5127_v3  ;;  %v1407_v3 = vld [vmem:[#allocation13 + $0x58] sm:$0xff] }
 0x419   : > { %v4937_v4 = vcombine.high %v1407_v3, %v1411_v18  ;;  %v1499_v54 = vld [vmem:[#allocation13 + $0x338] sm:$0xff] }
 0x41a   : > { %3074 = vmatpush1.bf16.msra.mxu0 %v5124_v49  ;;  %v1419_v49 = vld [vmem:[#allocation13 + $0xb8] sm:$0xff]  ;;  %v5024_v62 = vcombine.low %v1495_v50, %v1499_v54 }
 0x41b   : > { %3156 = vmatpush1.bf16.msra.mxu1 %v5126_v43  ;;  %3075 = vmatprep.subr.bf16.mxu0 %v5133_v33  ;;  %v4936_v43 = vcombine.low %v1407_v3, %v1411_v18  ;;  %v4945_v33 = vcombine.high %v1415_v36, %v1419_v49  ;;  %v4944_v7 = vcombine.low %v1415_v36, %v1419_v49  ;;  %v1519_v18 = vld [vmem:[#allocation13 + $0x3d8] sm:$0xff] }
 0x41c   : > { %3157 = vmatprep.subr.bf16.mxu1 %v5135_v5  ;;  %v1423_v5 = vld [vmem:[#allocation13 + $0xd8] sm:$0xff] }
 0x41d   : > { %v4953_v8 = vcombine.high %v1423_v5, %v1427_v6  ;;  %v1527_v49 = vld [vmem:[#allocation13 + $0x418] sm:$0xff] }
 0x41e   : > { %3076 = vmatpush1.bf16.msra.mxu0 %v5132_v10  ;;  %v1435_v10 = vld [vmem:[#allocation13 + $0x138] sm:$0xff] }
 0x41f   : > { %3158 = vmatpush1.bf16.msra.mxu1 %v5134_v11  ;;  %3077 = vmatprep.subr.bf16.mxu0 %v5141_v12  ;;  %v4952_v11 = vcombine.low %v1423_v5, %v1427_v6  ;;  %v4961_v12 = vcombine.high %v1431_v9, %v1435_v10  ;;  %v4960_v15 = vcombine.low %v1431_v9, %v1435_v10  ;;  %v1535_v6 = vld [vmem:[#allocation13 + $0x458] sm:$0xff] }
 0x420   : > { %3159 = vmatprep.subr.bf16.mxu1 %v5143_v13  ;;  %v1439_v13 = vld [vmem:[#allocation13 + $0x158] sm:$0xff] }
 0x421   : > { %v1543_v10 = vld [vmem:[#allocation13 + $0x498] sm:$0xff] }
 0x422   : > { %3078 = vmatpush1.bf16.msra.mxu0 %v5140_v22  ;;  %v4968_v22 = vcombine.low %v1439_v13, %v1443_v14 }
 0x423   : > { %3160 = vmatpush1.bf16.msra.mxu1 %v5142_v23  ;;  %3079 = vmatprep.subr.bf16.mxu0 %v5149_v27  ;;  %v4977_v23 = vcombine.high %v1447_v16, %v1451_v17  ;;  %v1455_v27 = vld [vmem:[#allocation13 + $0x1d8] sm:$0xff] }
 0x424   : > { %3161 = vmatprep.subr.bf16.mxu1 %v5151_v28  ;;  %v1459_v28 = vld [vmem:[#allocation13 + $0x1f8] sm:$0xff] }
 0x425   : > { %v4985_v30 = vcombine.high %v1455_v27, %v1459_v28  ;;  %v1559_v17 = vld [vmem:[#allocation13 + $0x518] sm:$0xff] }
 0x426   : > { %3080 = vmatpush1.bf16.msra.mxu0 %v5148_v35  ;;  %v4984_v35 = vcombine.low %v1455_v27, %v1459_v28  ;;  %v1567_v28 = vld [vmem:[#allocation13 + $0x558] sm:$0xff] }
 0x427   : > { %3162 = vmatpush1.bf16.msra.mxu1 %v5150_v39  ;;  %3081 = vmatprep.subr.bf16.mxu0 %v5157_v40  ;;  %v4993_v39 = vcombine.high %v1463_v31, %v1467_v34  ;;  %v1471_v40 = vld [vmem:[#allocation13 + $0x258] sm:$0xff] }
 0x428   : > { %3163 = vmatprep.subr.bf16.mxu1 %v5159_v41  ;;  %v1475_v41 = vld [vmem:[#allocation13 + $0x278] sm:$0xff] }
 0x429   : > { %v5001_v32 = vcombine.high %v1471_v40, %v1475_v41  ;;  %v1579_v31 = vld [vmem:[#allocation13 + $0x5b8] sm:$0xff] }
 0x42a   : > { %3082 = vmatpush1.bf16.msra.mxu0 %v5156_v44  ;;  %v5000_v44 = vcombine.low %v1471_v40, %v1475_v41  ;;  %v1583_v41 = vld [vmem:[#allocation13 + $0x5d8] sm:$0xff] }
 0x42b   : > { %3164 = vmatpush1.bf16.msra.mxu1 %v5158_v45  ;;  %3083 = vmatprep.subr.bf16.mxu0 %v5165_v46  ;;  %v5009_v45 = vcombine.high %v1479_v47, %v1483_v48  ;;  %v1487_v46 = vld [vmem:[#allocation13 + $0x2d8] sm:$0xff] }
 0x42c   : > { %3165 = vmatprep.subr.bf16.mxu1 %v5167_v51  ;;  %v1491_v51 = vld [vmem:[#allocation13 + $0x2f8] sm:$0xff] }
 0x42d   : > { %v5017_v59 = vcombine.high %v1487_v46, %v1491_v51 }
 0x42e   : > { %3084 = vmatpush1.bf16.msra.mxu0 %v5164_v56  ;;  %v5016_v56 = vcombine.low %v1487_v46, %v1491_v51 }
 0x42f   : > { %3166 = vmatpush1.bf16.msra.mxu1 %v5166_v57  ;;  %3085 = vmatprep.subr.bf16.mxu0 %v5173_v60  ;;  %v5025_v57 = vcombine.high %v1495_v50, %v1499_v54  ;;  %v1503_v60 = vld [vmem:[#allocation13 + $0x358] sm:$0xff] }
 0x430   : > { %3167 = vmatprep.subr.bf16.mxu1 %v5175_v61  ;;  %v1507_v61 = vld [vmem:[#allocation13 + $0x378] sm:$0xff] }
 0x431   : > { %v5033_v63 = vcombine.high %v1503_v60, %v1507_v61 }
 0x432   : > { %3086 = vmatpush1.bf16.msra.mxu0 %v5172_v0  ;;  %v1511_v0 = vld [vmem:[#allocation13 + $0x398] sm:$0xff] }
 0x433   : > { %3168 = vmatpush1.bf16.msra.mxu1 %v5174_v1  ;;  %3178 = vmatprep.subr.bf16.mxu0 %v4929_v2  ;;  %v1515_v1 = vld [vmem:[#allocation13 + $0x3b8] sm:$0xff]  ;;  %v5032_v2 = vcombine.low %v1503_v60, %v1507_v61 }
 0x434   : > { %v5041_v3 = vcombine.high %v1511_v0, %v1515_v1  ;;  %v1591_v61 = vld [vmem:[#allocation13 + $0x618] sm:$0xff] }
 0x435   : > { %3088 = vmatmul.mubr.bf16.vlgmr.msra.gmra.mrb[16].mxu0 %v6767_v25 }
 0x436   : > { %3170 = vmatmul.mubr.bf16.vlgmr.msra.gmra.mrb[4].mxu1 %v6767_v25  ;;  %3179 = vmatpush1.bf16.msra.mxu0 %v4928_v20  ;;  %v1523_v20 = vld [vmem:[#allocation13 + $0x3f8] sm:$0xff] }
 0x437   : > { %3210 = vmatprep.mubr.bf16.mxu0 %v6761_v19  ;;  %3180 = vmatprep.subr.bf16.mxu0 %v4937_v4  ;;  %v4969_v19 = vcombine.high %v1439_v13, %v1443_v14  ;;  %v5040_v4 = vcombine.low %v1511_v0, %v1515_v1  ;;  %v5049_v36 = vcombine.high %v1519_v18, %v1523_v20  ;;  %v1551_v14 = vld [vmem:[#allocation13 + $0x4d8] sm:$0xff] }
 0x43a   : > { %3181 = vmatpush1.bf16.msra.mxu0 %v4936_v43  ;;  %v1531_v43 = vld [vmem:[#allocation13 + $0x438] sm:$0xff] }
 0x43b   : > { %3182 = vmatprep.subr.bf16.mxu0 %v4945_v33  ;;  %v5048_v33 = vcombine.low %v1519_v18, %v1523_v20  ;;  %v5057_v5 = vcombine.high %v1527_v49, %v1531_v43 }
 0x43e   : > { %3183 = vmatpush1.bf16.msra.mxu0 %v4944_v7  ;;  %v1539_v7 = vld [vmem:[#allocation13 + $0x478] sm:$0xff] }
 0x43f   : > { %3184 = vmatprep.subr.bf16.mxu0 %v4953_v8  ;;  %v5056_v8 = vcombine.low %v1527_v49, %v1531_v43  ;;  %v5065_v9 = vcombine.high %v1535_v6, %v1539_v7  ;;  %v1599_v43 = vld [vmem:[#allocation13 + $0x658] sm:$0xff] }
 0x442   : > { %3185 = vmatpush1.bf16.msra.mxu0 %v4952_v11  ;;  %v1547_v11 = vld [vmem:[#allocation13 + $0x4b8] sm:$0xff] }
 0x443   : > { %3186 = vmatprep.subr.bf16.mxu0 %v4961_v12  ;;  %v5064_v12 = vcombine.low %v1535_v6, %v1539_v7  ;;  %v5073_v13 = vcombine.high %v1543_v10, %v1547_v11 }
 0x446   : > { %3187 = vmatpush1.bf16.msra.mxu0 %v4960_v15  ;;  %v1555_v15 = vld [vmem:[#allocation13 + $0x4f8] sm:$0xff] }
 0x447   : > { %3188 = vmatprep.subr.bf16.mxu0 %v4969_v19  ;;  %v5072_v19 = vcombine.low %v1543_v10, %v1547_v11  ;;  %v5081_v16 = vcombine.high %v1551_v14, %v1555_v15 }
 0x44a   : > { %3189 = vmatpush1.bf16.msra.mxu0 %v4968_v22  ;;  %v1563_v22 = vld [vmem:[#allocation13 + $0x538] sm:$0xff] }
 0x44b   : > { %3190 = vmatprep.subr.bf16.mxu0 %v4977_v23  ;;  %v5080_v23 = vcombine.low %v1551_v14, %v1555_v15  ;;  %v5089_v27 = vcombine.high %v1559_v17, %v1563_v22  ;;  %v1607_v15 = vld [vmem:[#allocation13 + $0x698] sm:$0xff] }
 0x44e   : > { %3191 = vmatpush1.bf16.msra.mxu0 %v4976_v29  ;;  %v5088_v29 = vcombine.low %v1559_v17, %v1563_v22 }
 0x44f   : > { %3192 = vmatprep.subr.bf16.mxu0 %v4985_v30  ;;  %v1575_v30 = vld [vmem:[#allocation13 + $0x598] sm:$0xff] }
 0x450   : > { %v5104_v51 = vcombine.low %v1575_v30, %v1579_v31 }
 0x452   : > { %3193 = vmatpush1.bf16.msra.mxu0 %v4984_v35  ;;  %v5105_v35 = vcombine.high %v1575_v30, %v1579_v31  ;;  %v1615_v31 = vld [vmem:[#allocation13 + $0x6d8] sm:$0xff] }
 0x453   : > { %3194 = vmatprep.subr.bf16.mxu0 %v4993_v39 }
 0x456   : > { %3195 = vmatpush1.bf16.msra.mxu0 %v4992_v42  ;;  %v1587_v42 = vld [vmem:[#allocation13 + $0x5f8] sm:$0xff] }
 0x457   : > { %3196 = vmatprep.subr.bf16.mxu0 %v5001_v32 }
 0x45a   : > { %3197 = vmatpush1.bf16.msra.mxu0 %v5000_v44 }
 0x45b   : > { %3198 = vmatprep.subr.bf16.mxu0 %v5009_v45 }
 0x45e   : > { %3199 = vmatpush1.bf16.msra.mxu0 %v5008_v58 }
 0x45f   : > { %3200 = vmatprep.subr.bf16.mxu0 %v5017_v59 }
 0x462   : > { %3201 = vmatpush1.bf16.msra.mxu0 %v5016_v56  ;;  %v5113_v56 = vcombine.high %v1583_v41, %v1587_v42 }
 0x463   : > { %3202 = vmatprep.subr.bf16.mxu0 %v5025_v57 }
 0x466   : > { %3203 = vmatpush1.bf16.msra.mxu0 %v5024_v62  ;;  %v1595_v62 = vld [vmem:[#allocation13 + $0x638] sm:$0xff] }
 0x467   : > { %3204 = vmatprep.subr.bf16.mxu0 %v5033_v63 }
 0x46a   : > { %3205 = vmatpush1.bf16.msra.mxu0 %v5032_v2 }
 0x46b   : > { %3206 = vmatprep.subr.bf16.mxu0 %v5041_v3  ;;  %v5112_v3 = vcombine.low %v1583_v41, %v1587_v42 }
 0x46e   : > { %3207 = vmatpush1.bf16.msra.mxu0 %v5040_v4  ;;  %v5121_v4 = vcombine.high %v1591_v61, %v1595_v62 }
 0x46f   : > { %3208 = vmatprep.subr.bf16.mxu0 %v5049_v36 }
 0x472   : > { %3209 = vmatpush1.bf16.msra.mxu0 %v5048_v33  ;;  %v1603_v33 = vld [vmem:[#allocation13 + $0x678] sm:$0xff] }
 0x473   : > { %3219 = vmatprep.subr.bf16.mxu0 %v5057_v5 }
 0x475   : > { %3211 = vmatmul.mubr.bf16.vlgmr.msra.gmra.mrb[20].mxu0 %v6765_v24  ;;  %v1571_v24 = vld [vmem:[#allocation13 + $0x578] sm:$0xff] }
 0x476   : > { %3220 = vmatpush1.bf16.msra.mxu0 %v5056_v8  ;;  %3251 = vmatprep.mubr.bf16.mxu0 %v6763_v21  ;;  %v5097_v21 = vcombine.high %v1567_v28, %v1571_v24  ;;  %v5096_v34 = vcombine.low %v1567_v28, %v1571_v24 }
 0x477   : > { %3221 = vmatprep.subr.bf16.mxu0 %v5065_v9  ;;  %v5120_v9 = vcombine.low %v1591_v61, %v1595_v62  ;;  %v1639_v62 = vld [vmem:[#allocation13 + $0x798] sm:$0xff] }
 0x47a   : > { %3222 = vmatpush1.bf16.msra.mxu0 %v5064_v12  ;;  %v5129_v12 = vcombine.high %v1599_v43, %v1603_v33 }
 0x47b   : > { %3223 = vmatprep.subr.bf16.mxu0 %v5073_v13 }
 0x47e   : > { %3224 = vmatpush1.bf16.msra.mxu0 %v5072_v19  ;;  %v1611_v19 = vld [vmem:[#allocation13 + $0x6b8] sm:$0xff] }
 0x47f   : > { %3225 = vmatprep.subr.bf16.mxu0 %v5081_v16  ;;  %v5136_v42 = vcombine.low %v1607_v15, %v1611_v19 }
 0x482   : > { %3226 = vmatpush1.bf16.msra.mxu0 %v5080_v23 }
 0x483   : > { %3227 = vmatprep.subr.bf16.mxu0 %v5089_v27  ;;  %v5128_v27 = vcombine.low %v1599_v43, %v1603_v33 }
 0x486   : > { %3228 = vmatpush1.bf16.msra.mxu0 %v5088_v29  ;;  %v5137_v29 = vcombine.high %v1607_v15, %v1611_v19 }
 0x487   : > { %3229 = vmatprep.subr.bf16.mxu0 %v5097_v21 }
 0x488   : > { %v2966_v39 = vpop.f32.mrb[12].mxu0  ;;  %v3007_v40 = vpop.f32.mrb[0].mxu1 }
 0x489   : > { %v6790_v32 = vadd.f32 %v3007_v40, %v2966_v39  ;;  %v2968_v47 = vpop.f32.mrb[13].mxu0  ;;  %v3009_v48 = vpop.f32.mrb[1].mxu1 }
 0x48a   : > { %v6792_v44 = vadd.f32 %v3009_v48, %v2968_v47  ;;  %3230 = vmatpush1.bf16.msra.mxu0 %v5096_v34  ;;  %v2970_v45 = vpop.f32.mrb[14].mxu0  ;;  %v3011_v46 = vpop.f32.mrb[2].mxu1  ;;  %v1619_v34 = vld [vmem:[#allocation13 + $0x6f8] sm:$0xff] }
 0x48b   : > { %v3262_v58 = vrot.slane %v6790_v32, 4  ;;  %v3318_v59 = vmul.f32 %v6790_v32, %v6790_v32  ;;  %v2971_v50 = vpop.f32.mrb[15].mxu0  ;;  %v3012_v54 = vpop.f32.mrb[3].mxu1  ;;  %3231 = vmatprep.subr.bf16.mxu0 %v5105_v35  ;;  %v5145_v48 = vcombine.high %v1615_v31, %v1619_v34  ;;  %v1623_v46 = vld [vmem:[#allocation13 + $0x718] sm:$0xff] }
 0x48c   : > { %v3268_v57 = vrot.slane %v6792_v44, 4  ;;  %v3319_v60 = vmul.f32 %v6792_v44, %v6792_v44  ;;  %v5144_v50 = vcombine.low %v1615_v31, %v1619_v34 }
 0x48d   : > { %v3263_v63 = vadd.f32 %v3262_v58, %v6790_v32  ;;  %v3326_v0 = vrot.slane %v3318_v59, 4 }
 0x48e   : > { %v3269_v1 = vadd.f32 %v3268_v57, %v6792_v44  ;;  %v3332_v2 = vrot.slane %v3319_v60, 4  ;;  %3232 = vmatpush1.bf16.msra.mxu0 %v5104_v51  ;;  %v1627_v51 = vld [vmem:[#allocation13 + $0x738] sm:$0xff] }
 0x48f   : > { %v3264_v18 = vrot.slane %v3263_v63, 2  ;;  %v3327_v20 = vadd.f32 %v3326_v0, %v3318_v59  ;;  %3233 = vmatprep.subr.bf16.mxu0 %v5113_v56  ;;  %v5153_v54 = vcombine.high %v1623_v46, %v1627_v51  ;;  %v1631_v56 = vld [vmem:[#allocation13 + $0x758] sm:$0xff] }
 0x490   : > { %v3270_v36 = vrot.slane %v3269_v1, 2  ;;  %v3333_v49 = vadd.f32 %v3332_v2, %v3319_v60  ;;  %v1635_v57 = vld [vmem:[#allocation13 + $0x778] sm:$0xff]  ;;  %v5152_v60 = vcombine.low %v1623_v46, %v1627_v51 }
 0x491   : > { %v3265_v5 = vadd.f32 %v3264_v18, %v3263_v63  ;;  %v3328_v6 = vrot.slane %v3327_v20, 2  ;;  %v5161_v61 = vcombine.high %v1631_v56, %v1635_v57  ;;  %v1643_v63 = vld [vmem:[#allocation13 + $0x7b8] sm:$0xff]  ;;  %v5160_v0 = vcombine.low %v1631_v56, %v1635_v57 }
 0x492   : > { %v3271_v7 = vadd.f32 %v3270_v36, %v3269_v1  ;;  %v3334_v8 = vrot.slane %v3333_v49, 2  ;;  %3234 = vmatpush1.bf16.msra.mxu0 %v5112_v3  ;;  %v5169_v1 = vcombine.high %v1639_v62, %v1643_v63  ;;  %v1647_v2 = vld [vmem:[#allocation13 + $0x7d8] sm:$0xff] }
 0x493   : > { %v3266_v10 = vrot.slane %v3265_v5, 1  ;;  %v3329_v11 = vadd.f32 %v3328_v6, %v3327_v20  ;;  %3235 = vmatprep.subr.bf16.mxu0 %v5121_v4  ;;  %v1651_v3 = vld [vmem:[#allocation13 + $0x7f8] sm:$0xff]  ;;  %v5168_v4 = vcombine.low %v1639_v62, %v1643_v63 }
 0x494   : > { %v3272_v13 = vrot.slane %v3271_v7, 1  ;;  %v3335_v14 = vadd.f32 %v3334_v8, %v3333_v49  ;;  %v5177_v49 = vcombine.high %v1647_v2, %v1651_v3  ;;  %v5176_v43 = vcombine.low %v1647_v2, %v1651_v3 }
 0x495   : > { %v3267_v16 = vadd.f32 %v3266_v10, %v3265_v5  ;;  %v3330_v17 = vrot.slane %v3329_v11, 1 }
 0x496   : > { %v3273_v22 = vadd.f32 %v3272_v13, %v3271_v7  ;;  %v3336_v23 = vrot.slane %v3335_v14, 1  ;;  %3236 = vmatpush1.bf16.msra.mxu0 %v5120_v9 }
 0x497   : > { %v6802_v28 = vmul.f32 0.125, %v3267_v16  ;;  %v3331_v24 = vadd.f32 %v3330_v17, %v3329_v11  ;;  %3237 = vmatprep.subr.bf16.mxu0 %v5129_v12 }
 0x498   : > { %v6804_v21 = vmul.f32 0.125, %v3273_v22  ;;  %v3337_v30 = vadd.f32 %v3336_v23, %v3335_v14 }
 0x499   : > { %v3374_v35 = vmul.f32 0.125, %v3331_v24  ;;  %v3382_v39 = vmul.f32 %v6802_v28, %v6802_v28 }
 0x49a   : > { %v3375_v40 = vmul.f32 0.125, %v3337_v30  ;;  %v3383_v41 = vmul.f32 %v6804_v21, %v6804_v21  ;;  %3238 = vmatpush1.bf16.msra.mxu0 %v5128_v27 }
 0x49b   : > { %v3390_v47 = vsub.f32 %v3374_v35, %v3382_v39  ;;  %3239 = vmatprep.subr.bf16.mxu0 %v5137_v29 }
 0x49c   : > { %v3391_v45 = vsub.f32 %v3375_v40, %v3383_v41 }
 0x49d   : > { %v3398_v58 = vadd.f32 0.9, %v3390_v47 }
 0x49e   : > { %v3399_v59 = vadd.f32 0.9, %v3391_v45  ;;  %3240 = vmatpush1.bf16.msra.mxu0 %v5136_v42 }
 0x49f   : > { %5813 = vrsqrt.f32 %v3398_v58  ;;  %3241 = vmatprep.subr.bf16.mxu0 %v5145_v48  ;;  %v5615_v48 = vld [vmem:[%s6671_s9 + $0x4] ss:$8 sps:$4 sm:$0xff]  }
 0x4a0   : > { %5815 = vrsqrt.f32 %v3399_v59  ;;  %v5613_v59 = vld [vmem:[%s6671_s9] ss:$8 sps:$4 sm:$0xff]   ;;  %4450 = vmatprep.subr.bf16.mxu1 %v5615_v48 }
 0x4a1   : > { %4451 = vmatpush1.bf16.msra.mxu1 %v5613_v59 }
 0x4a2   : > { %3242 = vmatpush1.bf16.msra.mxu0 %v5144_v50 }
 0x4a3   : > { %3243 = vmatprep.subr.bf16.mxu0 %v5153_v54 }
 0x4a6   : > { %3244 = vmatpush1.bf16.msra.mxu0 %v5152_v60 }
 0x4a7   : > { %3245 = vmatprep.subr.bf16.mxu0 %v5161_v61 }
 0x4a9   : > { %v6810_v18 = vpop.eup %5813 }
 0x4aa   : > { %v6812_v20 = vpop.eup %5815  ;;  %3246 = vmatpush1.bf16.msra.mxu0 %v5160_v0 }
 0x4ab   : > { %v3422_v36 = vcombine.low %v6810_v18, %v6812_v20  ;;  %3247 = vmatprep.subr.bf16.mxu0 %v5169_v1  ;;  %v5640_v18 = vld [vmem:[%s6671_s9 + $0x90] ss:$8 sps:$4 sm:$0xff]   ;;  %v5645_v20 = vld [vmem:[%s6671_s9 + $0xa4] ss:$8 sps:$4 sm:$0xff]  }
 0x4ae   : > { %3248 = vmatpush1.bf16.msra.mxu0 %v5168_v4  ;;  %v5618_v4 = vld [vmem:[%s6671_s9 + $0x14] ss:$8 sps:$4 sm:$0xff]  }
 0x4af   : > { %3249 = vmatprep.subr.bf16.mxu0 %v5177_v49  ;;  %4452 = vmatprep.subr.bf16.mxu1 %v5618_v4 }
 0x4b2   : > { %3250 = vmatpush1.bf16.msra.mxu0 %v5176_v43 }
 0x4b5   : > { %3252 = vmatmul.mubr.bf16.vlgmr.msra.gmra.mrb[20].mxu0 %v6767_v25 }
 0x508   : > { %v6817_v33 = vpop.f32.mrb[16].mxu0 }
 0x509   : > { %v3274_v5 = vrot.slane %v6817_v33, 4  ;;  %v3320_v6 = vmul.f32 %v6817_v33, %v6817_v33  ;;  %v6822_v7 = vpop.f32.mrb[4].mxu1  ;;  %v6824_v8 = vpop.f32.mrb[17].mxu0 }
 0x50a   : > { %v3286_v9 = vrot.slane %v6822_v7, 4  ;;  %v3322_v10 = vmul.f32 %v6822_v7, %v6822_v7  ;;  %v3280_v11 = vrot.slane %v6824_v8, 4  ;;  %v3321_v25 = vmul.f32 %v6824_v8, %v6824_v8  ;;  %v6832_v12 = vpop.f32.mrb[5].mxu1  ;;  %v3093_v13 = vpop.f32.mrb[18].mxu0 }
 0x50b   : > { %v3275_v14 = vadd.f32 %v3274_v5, %v6817_v33  ;;  %v3338_v15 = vrot.slane %v3320_v6, 4  ;;  %v3292_v19 = vrot.slane %v6832_v12, 4  ;;  %v3323_v16 = vmul.f32 %v6832_v12, %v6832_v12  ;;  %v3175_v17 = vpop.f32.mrb[6].mxu1  ;;  %v3094_v22 = vpop.f32.mrb[19].mxu0 }
 0x50c   : > { %v3287_v23 = vadd.f32 %v3286_v9, %v6822_v7  ;;  %v3350_v27 = vrot.slane %v3322_v10, 4  ;;  %v3281_v24 = vadd.f32 %v3280_v11, %v6824_v8  ;;  %v3344_v29 = vrot.slane %v3321_v25, 4  ;;  %v3176_v30 = vpop.f32.mrb[7].mxu1  ;;  %v5616_v9 = vld [vmem:[%s6671_s9 + $0x10] ss:$8 sps:$4 sm:$0xff]  }
 0x50d   : > { %v3276_v31 = vrot.slane %v3275_v14, 2  ;;  %v3339_v34 = vadd.f32 %v3338_v15, %v3320_v6  ;;  %v3293_v35 = vadd.f32 %v3292_v19, %v6832_v12  ;;  %v3356_v39 = vrot.slane %v3323_v16, 4  ;;  %4453 = vmatpush1.bf16.msra.mxu1 %v5616_v9 }
 0x50e   : > { %v3288_v40 = vrot.slane %v3287_v23, 2  ;;  %v3351_v41 = vadd.f32 %v3350_v27, %v3322_v10  ;;  %v3282_v42 = vrot.slane %v3281_v24, 2  ;;  %v3345_v47 = vadd.f32 %v3344_v29, %v3321_v25 }
 0x50f   : > { %v3277_v45 = vadd.f32 %v3276_v31, %v3275_v14  ;;  %v3340_v46 = vrot.slane %v3339_v34, 2  ;;  %v3294_v51 = vrot.slane %v3293_v35, 2  ;;  %v3357_v58 = vadd.f32 %v3356_v39, %v3323_v16 }
 0x510   : > { %v3289_v50 = vadd.f32 %v3288_v40, %v3287_v23  ;;  %v3352_v54 = vrot.slane %v3351_v41, 2  ;;  %v3283_v56 = vadd.f32 %v3282_v42, %v3281_v24  ;;  %v3346_v57 = vrot.slane %v3345_v47, 2  ;;  %v5621_v24 = vld [vmem:[%s6671_s9 + $0x24] ss:$8 sps:$4 sm:$0xff]  }
 0x511   : > { %v3278_v60 = vrot.slane %v3277_v45, 1  ;;  %v3341_v61 = vadd.f32 %v3340_v46, %v3339_v34  ;;  %v3295_v62 = vadd.f32 %v3294_v51, %v3293_v35  ;;  %v3358_v63 = vrot.slane %v3357_v58, 2  ;;  %v5619_v35 = vld [vmem:[%s6671_s9 + $0x20] ss:$8 sps:$4 sm:$0xff]   ;;  %4454 = vmatprep.subr.bf16.mxu1 %v5621_v24  ;;  %v5651_v24 = vld [vmem:[%s6671_s9 + $0xc4] ss:$8 sps:$4 sm:$0xff]  }
 0x512   : > { %v3290_v0 = vrot.slane %v3289_v50, 1  ;;  %v3353_v1 = vadd.f32 %v3352_v54, %v3351_v41  ;;  %v3284_v2 = vrot.slane %v3283_v56, 1  ;;  %v3347_v3 = vadd.f32 %v3346_v57, %v3345_v47  ;;  %4455 = vmatpush1.bf16.msra.mxu1 %v5619_v35  ;;  %v5622_v54 = vld [vmem:[%s6671_s9 + $0x30] ss:$8 sps:$4 sm:$0xff]   ;;  %v5657_v35 = vld [vmem:[%s6671_s9 + $0xe4] ss:$8 sps:$4 sm:$0xff]  }
 0x513   : > { %v3279_v49 = vadd.f32 %v3278_v60, %v3277_v45  ;;  %v3342_v43 = vrot.slane %v3341_v61, 1  ;;  %v3296_v5 = vrot.slane %v3295_v62, 1  ;;  %v3359_v6 = vadd.f32 %v3358_v63, %v3357_v58  ;;  %v5624_v58 = vld [vmem:[%s6671_s9 + $0x34] ss:$8 sps:$4 sm:$0xff]  }
 0x514   : > { %v3291_v10 = vadd.f32 %v3290_v0, %v3289_v50  ;;  %v3354_v11 = vrot.slane %v3353_v1, 1  ;;  %v3285_v25 = vadd.f32 %v3284_v2, %v3283_v56  ;;  %v3348_v13 = vrot.slane %v3347_v3, 1  ;;  %4456 = vmatprep.subr.bf16.mxu1 %v5624_v58  ;;  %v5630_v63 = vld [vmem:[%s6671_s9 + $0x54] ss:$8 sps:$4 sm:$0xff]   ;;  %v5628_v0 = vld [vmem:[%s6671_s9 + $0x50] ss:$8 sps:$4 sm:$0xff]  }
 0x515   : > { %v6845_v14 = vmul.f32 0.125, %v3279_v49  ;;  %v3343_v15 = vadd.f32 %v3342_v43, %v3341_v61  ;;  %v3297_v19 = vadd.f32 %v3296_v5, %v3295_v62  ;;  %v3360_v16 = vrot.slane %v3359_v6, 1  ;;  %v5627_v61 = vld [vmem:[%s6671_s9 + $0x44] ss:$8 sps:$4 sm:$0xff]   ;;  %v5625_v62 = vld [vmem:[%s6671_s9 + $0x40] ss:$8 sps:$4 sm:$0xff]  }
 0x516   : > { %v6847_v17 = vmul.f32 0.125, %v3291_v10  ;;  %v3355_v22 = vadd.f32 %v3354_v11, %v3353_v1  ;;  %v6849_v23 = vmul.f32 0.125, %v3285_v25  ;;  %v3349_v27 = vadd.f32 %v3348_v13, %v3347_v3  ;;  %4457 = vmatpush1.bf16.msra.mxu1 %v5622_v54  ;;  %v5633_v1 = vld [vmem:[%s6671_s9 + $0x64] ss:$8 sps:$4 sm:$0xff]   ;;  %v5631_v3 = vld [vmem:[%s6671_s9 + $0x60] ss:$8 sps:$4 sm:$0xff]  }
 0x517   : > { %v3376_v29 = vmul.f32 0.125, %v3343_v15  ;;  %v3384_v30 = vmul.f32 %v6845_v14, %v6845_v14  ;;  %v6854_v31 = vmul.f32 0.125, %v3297_v19  ;;  %v3361_v34 = vadd.f32 %v3360_v16, %v3359_v6  ;;  %4458 = vmatprep.subr.bf16.mxu1 %v5627_v61  ;;  %v5636_v6 = vld [vmem:[%s6671_s9 + $0x74] ss:$8 sps:$4 sm:$0xff]   ;;  %v5634_v10 = vld [vmem:[%s6671_s9 + $0x70] ss:$8 sps:$4 sm:$0xff]  }
 0x518   : > { %v3378_v39 = vmul.f32 0.125, %v3355_v22  ;;  %v3386_v40 = vmul.f32 %v6847_v17, %v6847_v17  ;;  %v3377_v41 = vmul.f32 0.125, %v3349_v27  ;;  %v3385_v42 = vmul.f32 %v6849_v23, %v6849_v23  ;;  %v5639_v15 = vld [vmem:[%s6671_s9 + $0x84] ss:$8 sps:$4 sm:$0xff]   ;;  %v5637_v19 = vld [vmem:[%s6671_s9 + $0x80] ss:$8 sps:$4 sm:$0xff]  }
 0x519   : > { %v3392_v47 = vsub.f32 %v3376_v29, %v3384_v30  ;;  %v3379_v48 = vmul.f32 0.125, %v3361_v34  ;;  %v3387_v45 = vmul.f32 %v6854_v31, %v6854_v31  ;;  %v6883_v11 = vrot.slane %v3422_v36, %v6734_v26  ;;  %v5642_v16 = vld [vmem:[%s6671_s9 + $0x94] ss:$8 sps:$4 sm:$0xff]   ;;  %v5643_v36 = vld [vmem:[%s6671_s9 + $0xa0] ss:$8 sps:$4 sm:$0xff]  }
 0x51a   : > { %v3394_v46 = vsub.f32 %v3378_v39, %v3386_v40  ;;  %v3393_v51 = vsub.f32 %v3377_v41, %v3385_v42  ;;  %4459 = vmatpush1.bf16.msra.mxu1 %v5625_v62  ;;  %v5648_v22 = vld [vmem:[%s6671_s9 + $0xb4] ss:$8 sps:$4 sm:$0xff]   ;;  %v5646_v27 = vld [vmem:[%s6671_s9 + $0xb0] ss:$8 sps:$4 sm:$0xff]   ;;  %v5649_v29 = vld [vmem:[%s6671_s9 + $0xc0] ss:$8 sps:$4 sm:$0xff]  }
 0x51b   : > { %v3400_v59 = vadd.f32 0.9, %v3392_v47  ;;  %v3395_v50 = vsub.f32 %v3379_v48, %v3387_v45  ;;  %4460 = vmatprep.subr.bf16.mxu1 %v5630_v63  ;;  %v5654_v30 = vld [vmem:[%s6671_s9 + $0xd4] ss:$8 sps:$4 sm:$0xff]   ;;  %v5652_v34 = vld [vmem:[%s6671_s9 + $0xd0] ss:$8 sps:$4 sm:$0xff]  }
 0x51c   : > { %v3402_v56 = vadd.f32 0.9, %v3394_v46  ;;  %v3401_v57 = vadd.f32 0.9, %v3393_v51  ;;  %v5655_v39 = vld [vmem:[%s6671_s9 + $0xe0] ss:$8 sps:$4 sm:$0xff]  }
 0x51d   : > { %5817 = vrsqrt.f32 %v3400_v59  ;;  %v3403_v60 = vadd.f32 0.9, %v3395_v50  ;;  %v5660_v40 = vld [vmem:[%s6671_s9 + $0xf4] ss:$8 sps:$4 sm:$0xff]   ;;  %v5658_v41 = vld [vmem:[%s6671_s9 + $0xf0] ss:$8 sps:$4 sm:$0xff]  }
 0x51e   : > { %5819 = vrsqrt.f32 %v3402_v56  ;;  %4461 = vmatpush1.bf16.msra.mxu1 %v5628_v0  ;;  %v5663_v42 = vld [vmem:[%s6671_s9 + $0x104] ss:$8 sps:$4 sm:$0xff]  }
 0x51f   : > { %5821 = vrsqrt.f32 %v3401_v57  ;;  %4462 = vmatprep.subr.bf16.mxu1 %v5633_v1 }
 0x520   : > { %5823 = vrsqrt.f32 %v3403_v60 }
 0x522   : > { %4463 = vmatpush1.bf16.msra.mxu1 %v5631_v3 }
 0x523   : > { %4464 = vmatprep.subr.bf16.mxu1 %v5636_v6 }
 0x526   : > { %4465 = vmatpush1.bf16.msra.mxu1 %v5634_v10 }
 0x527   : > { %v5818_v2 = vpop.eup %5817  ;;  %4466 = vmatprep.subr.bf16.mxu1 %v5639_v15 }
 0x528   : > { %v6871_v4 = vpop.eup %5819 }
 0x529   : > { %v5822_v49 = vpop.eup %5821 }
 0x52a   : > { %v6873_v43 = vpop.eup %5823  ;;  %v3423_v5 = vcombine.low %v5818_v2, %v5822_v49  ;;  %4467 = vmatpush1.bf16.msra.mxu1 %v5637_v19 }
 0x52b   : > { %v3424_v9 = vcombine.low %v6871_v4, %v6873_v43  ;;  %4468 = vmatprep.subr.bf16.mxu1 %v5642_v16  ;;  %v3504_v4 = vsub.s32 7, %v6677_v52 }
 0x52c   : > { %v6886_v25 = vrot.slane %v3423_v5, %v6734_v26 }
 0x52e   : > { %v3454_v13 = vcombine.low %v6883_v11, %v6886_v25  ;;  %4469 = vmatpush1.bf16.msra.mxu1 %v5640_v18 }
 0x52f   : > { %4470 = vmatprep.subr.bf16.mxu1 %v5645_v20 }
 0x532   : > { %4471 = vmatpush1.bf16.msra.mxu1 %v5643_v36 }
 0x533   : > { %4472 = vmatprep.subr.bf16.mxu1 %v5648_v22 }
 0x536   : > { %4473 = vmatpush1.bf16.msra.mxu1 %v5646_v27 }
 0x537   : > { %4474 = vmatprep.subr.bf16.mxu1 %v5651_v24 }
 0x53a   : > { %4475 = vmatpush1.bf16.msra.mxu1 %v5649_v29 }
 0x53b   : > { %4476 = vmatprep.subr.bf16.mxu1 %v5654_v30 }
 0x53e   : > { %4477 = vmatpush1.bf16.msra.mxu1 %v5652_v34 }
 0x53f   : > { %4478 = vmatprep.subr.bf16.mxu1 %v5657_v35 }
 0x542   : > { %4479 = vmatpush1.bf16.msra.mxu1 %v5655_v39 }
 0x543   : > { %4480 = vmatprep.subr.bf16.mxu1 %v5660_v40 }
 0x546   : > { %4481 = vmatpush1.bf16.msra.mxu1 %v5658_v41 }
 0x547   : > { %4491 = vmatprep.subr.bf16.mxu1 %v5663_v42 }
 0x588   : > { %v6907_v47 = vpop.f32.mrb[20].mxu0 }
 0x589   : > { %v3298_v48 = vrot.slane %v6907_v47, 4  ;;  %v3324_v45 = vmul.f32 %v6907_v47, %v6907_v47  ;;  %v6912_v46 = vpop.f32.mrb[21].mxu0 }
 0x58a   : > { %v3304_v51 = vrot.slane %v6912_v46, 4  ;;  %v3325_v58 = vmul.f32 %v6912_v46, %v6912_v46  ;;  %v3257_v59 = vpop.f32.mrb[22].mxu0 }
 0x58b   : > { %v3299_v50 = vadd.f32 %v3298_v48, %v6907_v47  ;;  %v3362_v54 = vrot.slane %v3324_v45, 4  ;;  %v3258_v56 = vpop.f32.mrb[23].mxu0 }
 0x58c   : > { %v3305_v57 = vadd.f32 %v3304_v51, %v6912_v46  ;;  %v3368_v60 = vrot.slane %v3325_v58, 4 }
 0x58d   : > { %v3300_v61 = vrot.slane %v3299_v50, 2  ;;  %v3363_v62 = vadd.f32 %v3362_v54, %v3324_v45  ;;  %v3462_v54 = vrot.slane %v3454_v13, %v6734_v26 }
 0x58e   : > { %v3306_v63 = vrot.slane %v3305_v57, 2  ;;  %v3369_v0 = vadd.f32 %v3368_v60, %v3325_v58  ;;  %v3446_v58 = vrot.slane %v3424_v9, %v6734_v26 }
 0x58f   : > { %v3301_v1 = vadd.f32 %v3300_v61, %v3299_v50  ;;  %v3364_v2 = vrot.slane %v3363_v62, 2  ;;  %v3492_v61 = vsub.s32 4, %v6677_v52 }
 0x590   : > { %v3307_v3 = vadd.f32 %v3306_v63, %v3305_v57  ;;  %v3370_v49 = vrot.slane %v3369_v0, 2  ;;  %v3260_v57 = vld [vmem:[#allocation14] sm:$0xff]  ;;  %v3500_v63 = vsub.s32 6, %v6677_v52 }
 0x591   : > { %v3302_v5 = vrot.slane %v3301_v1, 1  ;;  %v3365_v6 = vadd.f32 %v3364_v2, %v3363_v62  ;;  %v3496_v62 = vsub.s32 5, %v6677_v52 }
 0x592   : > { %v3308_v10 = vrot.slane %v3307_v3, 1  ;;  %v3371_v15 = vadd.f32 %v3370_v49, %v3369_v0 }
 0x593   : > { %v3303_v19 = vadd.f32 %v3302_v5, %v3301_v1  ;;  %v3366_v16 = vrot.slane %v3365_v6, 1 }
 0x594   : > { %v3309_v18 = vadd.f32 %v3308_v10, %v3307_v3  ;;  %v3372_v20 = vrot.slane %v3371_v15, 1 }
 0x595   : > { %v3316_v36 = vmul.f32 0.125, %v3303_v19  ;;  %v3367_v22 = vadd.f32 %v3366_v16, %v3365_v6 }
 0x596   : > { %v3317_v27 = vmul.f32 0.125, %v3309_v18  ;;  %v3373_v24 = vadd.f32 %v3372_v20, %v3371_v15 }
 0x597   : > { %v3380_v29 = vmul.f32 0.125, %v3367_v22  ;;  %v3388_v30 = vmul.f32 %v3316_v36, %v3316_v36 }
 0x598   : > { %v3381_v34 = vmul.f32 0.125, %v3373_v24  ;;  %v3389_v35 = vmul.f32 %v3317_v27, %v3317_v27 }
 0x599   : > { %v3396_v39 = vsub.f32 %v3380_v29, %v3388_v30 }
 0x59a   : > { %v3397_v40 = vsub.f32 %v3381_v34, %v3389_v35 }
 0x59b   : > { %v3404_v41 = vadd.f32 0.9, %v3396_v39  ;;  %v3261_v39 = vld [vmem:[#allocation16] sm:$0xff] }
 0x59c   : > { %v3405_v42 = vadd.f32 0.9, %v3397_v40 }
 0x59d   : > { %5825 = vrsqrt.f32 %v3404_v41 }
 0x59e   : > { %5827 = vrsqrt.f32 %v3405_v42 }
 0x5a7   : > { %v5826_v48 = vpop.eup %5825 }
 0x5a8   : > { %v5828_v45 = vpop.eup %5827 }
 0x5a9   : > { %v3425_v51 = vcombine.low %v5826_v48, %v5828_v45 }
 0x5ab   : > { %v3453_v59 = vrot.slane %v3425_v51, %v6734_v26 }
 0x5ad   : > { %v3455_v50 = vcombine.low %v3446_v58, %v3453_v59 }
 0x5af   : > { %v3469_v56 = vrot.slane %v3455_v50, %v6734_v26 }
 0x5b1   : > { %v3470_v60 = vcombine.low %v3462_v54, %v3469_v56 }
 0x5b3   : > { %v3472_v43 = vmul.f32 %v3470_v60, %v3260_v57 }
 0x5b5   : > { %v3477_v9 = vrot.slane %v3472_v43, %v6680_v53  ;;  %v3481_v0 = vrot.slane %v3472_v43, %v6683_v55  ;;  %v3485_v11 = vrot.slane %v3472_v43, %v6740_v37  ;;  %v3489_v25 = vrot.slane %v3472_v43, %v6743_v38 }
 0x5b6   : > { %v3493_v13 = vrot.slane %v3472_v43, %v3492_v61  ;;  %v3497_v1 = vrot.slane %v3472_v43, %v3496_v62  ;;  %v3501_v2 = vrot.slane %v3472_v43, %v3500_v63  ;;  %v3505_v3 = vrot.slane %v3472_v43, %v3504_v4  ;;  %v5661_v43 = vld [vmem:[%s6671_s9 + $0x100] ss:$8 sps:$4 sm:$0xff]  }
 0x5b7   : > { %v3514_v49 = vmul.f32 %v3477_v9, %v6802_v28  ;;  %v3515_v5 = vmul.f32 %v3481_v0, %v6804_v21  ;;  %v3516_v6 = vmul.f32 %v3485_v11, %v6845_v14  ;;  %v3517_v52 = vmul.f32 %v3489_v25, %v6849_v23 }
 0x5b8   : > { %v3518_v10 = vmul.f32 %v3493_v13, %v6847_v17  ;;  %v3519_v15 = vmul.f32 %v3497_v1, %v6854_v31  ;;  %v3520_v19 = vmul.f32 %v3501_v2, %v3316_v36  ;;  %v3521_v16 = vmul.f32 %v3505_v3, %v3317_v27 }
 0x5b9   : > { %v3530_v18 = vcombine.low %v3514_v49, %v3515_v5  ;;  %v3531_v20 = vcombine.low %v3516_v6, %v3517_v52  ;;  %v3588_v22 = vmul.f32 %v3505_v3, %v6912_v46  ;;  %v3582_v24 = vmul.f32 %v3481_v0, %v6792_v44  ;;  %v5672_v3 = vld [vmem:[%s6671_s9 + $0x134] ss:$8 sps:$4 sm:$0xff]   ;;  %v5670_v49 = vld [vmem:[%s6671_s9 + $0x130] ss:$8 sps:$4 sm:$0xff]   ;;  %v5675_v5 = vld [vmem:[%s6671_s9 + $0x144] ss:$8 sps:$4 sm:$0xff]  }
 0x5ba   : > { %v3532_v29 = vcombine.low %v3518_v10, %v3519_v15  ;;  %v3533_v28 = vcombine.low %v3520_v19, %v3521_v16  ;;  %v3581_v21 = vmul.f32 %v3477_v9, %v6790_v32  ;;  %v3584_v14 = vmul.f32 %v3489_v25, %v6824_v8  ;;  %v5673_v6 = vld [vmem:[%s6671_s9 + $0x140] ss:$8 sps:$4 sm:$0xff]   ;;  %v5678_v52 = vld [vmem:[%s6671_s9 + $0x154] ss:$8 sps:$4 sm:$0xff]   ;;  %v5676_v10 = vld [vmem:[%s6671_s9 + $0x150] ss:$8 sps:$4 sm:$0xff]  }
 0x5bb   : > { %v3540_v23 = vrot.slane %v3530_v18, %v6734_v26  ;;  %v3547_v17 = vrot.slane %v3531_v20, %v6734_v26  ;;  %v3583_v31 = vmul.f32 %v3485_v11, %v6817_v33  ;;  %v3586_v36 = vmul.f32 %v3497_v1, %v6832_v12  ;;  %v5666_v11 = vld [vmem:[%s6671_s9 + $0x114] ss:$8 sps:$4 sm:$0xff]   ;;  %v5669_v1 = vld [vmem:[%s6671_s9 + $0x124] ss:$8 sps:$4 sm:$0xff]   ;;  %v5679_v19 = vld [vmem:[%s6671_s9 + $0x160] ss:$8 sps:$4 sm:$0xff]  }
 0x5bc   : > { %v3554_v27 = vrot.slane %v3532_v29, %v6734_v26  ;;  %v3561_v46 = vrot.slane %v3533_v28, %v6734_v26  ;;  %v3585_v44 = vmul.f32 %v3493_v13, %v6822_v7  ;;  %v3587_v30 = vmul.f32 %v3501_v2, %v6907_v47  ;;  %v5664_v13 = vld [vmem:[%s6671_s9 + $0x110] ss:$8 sps:$4 sm:$0xff]   ;;  %v5667_v2 = vld [vmem:[%s6671_s9 + $0x120] ss:$8 sps:$4 sm:$0xff]   ;;  %v5681_v15 = vld [vmem:[%s6671_s9 + $0x164] ss:$8 sps:$4 sm:$0xff]  }
 0x5bd   : > { %v3562_v34 = vcombine.low %v3540_v23, %v3547_v17  ;;  %v5684_v16 = vld [vmem:[%s6671_s9 + $0x174] ss:$8 sps:$4 sm:$0xff]   ;;  %v5682_v18 = vld [vmem:[%s6671_s9 + $0x170] ss:$8 sps:$4 sm:$0xff]   ;;  %v5687_v20 = vld [vmem:[%s6671_s9 + $0x184] ss:$8 sps:$4 sm:$0xff]  }
 0x5be   : > { %v3563_v32 = vcombine.low %v3554_v27, %v3561_v46  ;;  %v5688_v29 = vld [vmem:[%s6671_s9 + $0x190] ss:$8 sps:$4 sm:$0xff]   ;;  %v5693_v28 = vld [vmem:[%s6671_s9 + $0x1a4] ss:$8 sps:$4 sm:$0xff]  }
 0x5bf   : > { %v3570_v8 = vrot.slane %v3562_v34, %v6734_v26  ;;  %v5694_v23 = vld [vmem:[%s6671_s9 + $0x1b0] ss:$8 sps:$4 sm:$0xff]   ;;  %v5699_v17 = vld [vmem:[%s6671_s9 + $0x1c4] ss:$8 sps:$4 sm:$0xff]  }
 0x5c0   : > { %v3577_v35 = vrot.slane %v3563_v32, %v6734_v26  ;;  %v5700_v27 = vld [vmem:[%s6671_s9 + $0x1d0] ss:$8 sps:$4 sm:$0xff]   ;;  %v5705_v46 = vld [vmem:[%s6671_s9 + $0x1e4] ss:$8 sps:$4 sm:$0xff]  }
 0x5c2   : > { %v3578_v40 = vcombine.low %v3570_v8, %v3577_v35  ;;  %v5706_v8 = vld [vmem:[%s6671_s9 + $0x1f0] ss:$8 sps:$4 sm:$0xff]   ;;  %v5711_v35 = vld [vmem:[%s6671_s9 + $0x204] ss:$8 sps:$4 sm:$0xff]  }
 0x5c4   : > { %v3580_v41 = vsub.f32 %v3261_v39, %v3578_v40 }
 0x5c6   : > { %v3621_v33 = vrot.slane %v3580_v41, %v3504_v4  ;;  %v3597_v12 = vrot.slane %v3580_v41, %v6683_v55  ;;  %v3593_v42 = vrot.slane %v3580_v41, %v6680_v53  ;;  %v3605_v48 = vrot.slane %v3580_v41, %v6743_v38 }
 0x5c7   : > { %v3601_v7 = vrot.slane %v3580_v41, %v6740_v37  ;;  %v3613_v45 = vrot.slane %v3580_v41, %v3496_v62  ;;  %v3609_v47 = vrot.slane %v3580_v41, %v3492_v61  ;;  %v3617_v51 = vrot.slane %v3580_v41, %v3500_v63  ;;  %v5709_v41 = vld [vmem:[%s6671_s9 + $0x200] ss:$8 sps:$4 sm:$0xff]  }
 0x5c8   : > { %v6961_v58 = vadd.f32 %v3621_v33, %v3588_v22  ;;  %v3631_v59 = vadd.f32 %v3597_v12, %v3582_v24  ;;  %v3630_v26 = vadd.f32 %v3593_v42, %v3581_v21  ;;  %v3633_v50 = vadd.f32 %v3605_v48, %v3584_v14  ;;  %v5685_v22 = vld [vmem:[%s6671_s9 + $0x180] ss:$8 sps:$4 sm:$0xff]   ;;  %v5690_v24 = vld [vmem:[%s6671_s9 + $0x194] ss:$8 sps:$4 sm:$0xff]   ;;  %v5712_v48 = vld [vmem:[%s6671_s9 + $0x210] ss:$8 sps:$4 sm:$0xff]  }
 0x5c9   : > { %v6963_v54 = vadd.f32 %v3601_v7, %v3583_v31  ;;  %v6965_v56 = vadd.f32 %v3613_v45, %v3586_v36  ;;  %v6967_v57 = vadd.f32 %v3609_v47, %v3585_v44  ;;  %v6969_v60 = vadd.f32 %v3617_v51, %v3587_v30  ;;  %v5691_v21 = vld [vmem:[%s6671_s9 + $0x1a0] ss:$8 sps:$4 sm:$0xff]   ;;  %v5696_v14 = vld [vmem:[%s6671_s9 + $0x1b4] ss:$8 sps:$4 sm:$0xff]   ;;  %v5717_v7 = vld [vmem:[%s6671_s9 + $0x224] ss:$8 sps:$4 sm:$0xff]  }
 0x5ca   : > { %vm3639_vm6 = vcmp.gt.f32.partialorder %v3631_v59, 0.0  ;;  %v3647_v37 = vmul.f32 0.2, %v3631_v59  ;;  %vm3638_vm7 = vcmp.gt.f32.partialorder %v3630_v26, 0.0  ;;  %v3646_v38 = vmul.f32 0.2, %v3630_v26 }
 0x5cb   : > { %vm3641_vm8 = vcmp.gt.f32.partialorder %v3633_v50, 0.0  ;;  %v3649_v61 = vmul.f32 0.2, %v3633_v50  ;;  %v5697_v31 = vld [vmem:[%s6671_s9 + $0x1c0] ss:$8 sps:$4 sm:$0xff]   ;;  %vm3640_vm9 = vcmp.gt.f32.partialorder %v6963_v54, 0.0 }
 0x5cc   : > { %v3655_v62 = vsel %vm3639_vm6, %v3631_v59, %v3647_v37  ;;  %v3654_v63 = vsel %vm3638_vm7, %v3630_v26, %v3646_v38  ;;  %v5702_v36 = vld [vmem:[%s6671_s9 + $0x1d4] ss:$8 sps:$4 sm:$0xff]   ;;  %v5703_v44 = vld [vmem:[%s6671_s9 + $0x1e0] ss:$8 sps:$4 sm:$0xff]   ;;  %v3648_v34 = vmul.f32 0.2, %v6963_v54 }
 0x5cd   : > { %v3663_v4 = vpack.c.bf16 %v3655_v62, %v3655_v62  ;;  %v3662_v9 = vpack.c.bf16 %v3654_v63, %v3654_v63  ;;  %v3657_v0 = vsel %vm3641_vm8, %v3633_v50, %v3649_v61  ;;  %v5708_v30 = vld [vmem:[%s6671_s9 + $0x1f4] ss:$8 sps:$4 sm:$0xff]   ;;  %v3651_v32 = vmul.f32 0.2, %v6965_v56  ;;  %v5715_v45 = vld [vmem:[%s6671_s9 + $0x220] ss:$8 sps:$4 sm:$0xff]  }
 0x5ce   : > { %v3665_v25 = vpack.c.bf16 %v3657_v0, %v3657_v0  ;;  %vm3643_vm10 = vcmp.gt.f32.partialorder %v6965_v56, 0.0  ;;  %v3656_v39 = vsel %vm3640_vm9, %v6963_v54, %v3648_v34  ;;  %v5714_v12 = vld [vmem:[%s6671_s9 + $0x214] ss:$8 sps:$4 sm:$0xff]   ;;  %v5718_v51 = vld [vmem:[%s6671_s9 + $0x230] ss:$8 sps:$4 sm:$0xff]   ;;  %vm3642_vm11 = vcmp.gt.f32.partialorder %v6967_v57, 0.0 }
 0x5cf   : > { %4482 = vmatprep.mubr.bf16.mxu1 %v3663_v4  ;;  %v3659_v40 = vsel %vm3643_vm10, %v6965_v56, %v3651_v32  ;;  %v3664_v33 = vpack.c.bf16 %v3656_v39, %v3656_v39  ;;  %v5720_v47 = vld [vmem:[%s6671_s9 + $0x234] ss:$8 sps:$4 sm:$0xff]   ;;  %v5723_v59 = vld [vmem:[%s6671_s9 + $0x244] ss:$8 sps:$4 sm:$0xff]   ;;  %v5721_v26 = vld [vmem:[%s6671_s9 + $0x240] ss:$8 sps:$4 sm:$0xff]  }
 0x5d0   : > { %4483 = vmatmul.mubr.bf16.vlgmr.msra.gmra.mrb[8].mxu1 %v3662_v9  ;;  %v3667_v42 = vpack.c.bf16 %v3659_v40, %v3659_v40  ;;  %v5726_v50 = vld [vmem:[%s6671_s9 + $0x254] ss:$8 sps:$4 sm:$0xff]   ;;  %v5724_v54 = vld [vmem:[%s6671_s9 + $0x250] ss:$8 sps:$4 sm:$0xff]   ;;  %v5729_v56 = vld [vmem:[%s6671_s9 + $0x264] ss:$8 sps:$4 sm:$0xff]  }
 0x5d1   : > { %4492 = vmatpush1.bf16.msra.mxu1 %v5661_v43  ;;  %4523 = vmatprep.mubr.bf16.mxu1 %v3665_v25  ;;  %v5727_v37 = vld [vmem:[%s6671_s9 + $0x260] ss:$8 sps:$4 sm:$0xff]   ;;  %v5732_v38 = vld [vmem:[%s6671_s9 + $0x274] ss:$8 sps:$4 sm:$0xff]   ;;  %v5730_v61 = vld [vmem:[%s6671_s9 + $0x270] ss:$8 sps:$4 sm:$0xff]  }
 0x5d2   : > { %4493 = vmatprep.subr.bf16.mxu1 %v5666_v11  ;;  %v5735_v62 = vld [vmem:[%s6671_s9 + $0x284] ss:$8 sps:$4 sm:$0xff]   ;;  %v5733_v63 = vld [vmem:[%s6671_s9 + $0x280] ss:$8 sps:$4 sm:$0xff]   ;;  %v5738_v4 = vld [vmem:[%s6671_s9 + $0x294] ss:$8 sps:$4 sm:$0xff]  }
 0x5d3   : > { %v5736_v43 = vld [vmem:[%s6671_s9 + $0x290] ss:$8 sps:$4 sm:$0xff]   ;;  %v5741_v9 = vld [vmem:[%s6671_s9 + $0x2a4] ss:$8 sps:$4 sm:$0xff]   ;;  %v5739_v0 = vld [vmem:[%s6671_s9 + $0x2a0] ss:$8 sps:$4 sm:$0xff]  }
 0x5d4   : > { %v5744_v11 = vld [vmem:[%s6671_s9 + $0x2b4] ss:$8 sps:$4 sm:$0xff]   ;;  %v5742_v25 = vld [vmem:[%s6671_s9 + $0x2b0] ss:$8 sps:$4 sm:$0xff]   ;;  %vm3645_vm12 = vcmp.gt.f32.partialorder %v6961_v58, 0.0  ;;  %vm3644_vm13 = vcmp.gt.f32.partialorder %v6969_v60, 0.0 }
 0x5d5   : > { %4494 = vmatpush1.bf16.msra.mxu1 %v5664_v13  ;;  %v5747_v13 = vld [vmem:[%s6671_s9 + $0x2c4] ss:$8 sps:$4 sm:$0xff]   ;;  %v5781_v32 = vld [vmem:[%s6671_s9 + $0x380] ss:$8 sps:$4 sm:$0xff]  }
 0x5d6   : > { %4495 = vmatprep.subr.bf16.mxu1 %v5669_v1  ;;  %v5745_v1 = vld [vmem:[%s6671_s9 + $0x2c0] ss:$8 sps:$4 sm:$0xff]   ;;  %v5783_v34 = vld [vmem:[%s6671_s9 + $0x384] ss:$8 sps:$4 sm:$0xff]  }
 0x5d7   : > { %v5789_v39 = vld [vmem:[%s6671_s9 + $0x3a4] ss:$8 sps:$4 sm:$0xff]   ;;  %v5787_v40 = vld [vmem:[%s6671_s9 + $0x3a0] ss:$8 sps:$4 sm:$0xff]  }
 0x5d9   : > { %4496 = vmatpush1.bf16.msra.mxu1 %v5667_v2  ;;  %v5750_v2 = vld [vmem:[%s6671_s9 + $0x2d4] ss:$8 sps:$4 sm:$0xff]  }
 0x5da   : > { %4497 = vmatprep.subr.bf16.mxu1 %v5672_v3  ;;  %v5748_v3 = vld [vmem:[%s6671_s9 + $0x2d0] ss:$8 sps:$4 sm:$0xff]  }
 0x5dd   : > { %4498 = vmatpush1.bf16.msra.mxu1 %v5670_v49  ;;  %v5753_v49 = vld [vmem:[%s6671_s9 + $0x2e4] ss:$8 sps:$4 sm:$0xff]  }
 0x5de   : > { %4499 = vmatprep.subr.bf16.mxu1 %v5675_v5  ;;  %v5751_v5 = vld [vmem:[%s6671_s9 + $0x2e0] ss:$8 sps:$4 sm:$0xff]  }
 0x5e1   : > { %4500 = vmatpush1.bf16.msra.mxu1 %v5673_v6  ;;  %v5756_v6 = vld [vmem:[%s6671_s9 + $0x2f4] ss:$8 sps:$4 sm:$0xff]  }
 0x5e2   : > { %4501 = vmatprep.subr.bf16.mxu1 %v5678_v52  ;;  %v3650_v52 = vmul.f32 0.2, %v6967_v57 }
 0x5e5   : > { %4502 = vmatpush1.bf16.msra.mxu1 %v5676_v10  ;;  %v3653_v10 = vmul.f32 0.2, %v6961_v58 }
 0x5e6   : > { %4503 = vmatprep.subr.bf16.mxu1 %v5681_v15  ;;  %v5754_v15 = vld [vmem:[%s6671_s9 + $0x2f0] ss:$8 sps:$4 sm:$0xff]  }
 0x5e9   : > { %4504 = vmatpush1.bf16.msra.mxu1 %v5679_v19  ;;  %v5759_v19 = vld [vmem:[%s6671_s9 + $0x304] ss:$8 sps:$4 sm:$0xff]  }
 0x5ea   : > { %4505 = vmatprep.subr.bf16.mxu1 %v5684_v16  ;;  %v3658_v16 = vsel %vm3642_vm11, %v6967_v57, %v3650_v52  ;;  %v5765_v57 = vld [vmem:[%s6671_s9 + $0x324] ss:$8 sps:$4 sm:$0xff]  }
 0x5ed   : > { %4506 = vmatpush1.bf16.msra.mxu1 %v5682_v18  ;;  %v3661_v18 = vsel %vm3645_vm12, %v6961_v58, %v3653_v10  ;;  %v5763_v58 = vld [vmem:[%s6671_s9 + $0x320] ss:$8 sps:$4 sm:$0xff]  }
 0x5ee   : > { %4507 = vmatprep.subr.bf16.mxu1 %v5687_v20  ;;  %v5757_v20 = vld [vmem:[%s6671_s9 + $0x300] ss:$8 sps:$4 sm:$0xff]  }
 0x5f1   : > { %4508 = vmatpush1.bf16.msra.mxu1 %v5685_v22  ;;  %v3666_v22 = vpack.c.bf16 %v3658_v16, %v3658_v16 }
 0x5f2   : > { %4509 = vmatprep.subr.bf16.mxu1 %v5690_v24  ;;  %v5762_v24 = vld [vmem:[%s6671_s9 + $0x314] ss:$8 sps:$4 sm:$0xff]  }
 0x5f5   : > { %4510 = vmatpush1.bf16.msra.mxu1 %v5688_v29  ;;  %v3669_v29 = vpack.c.bf16 %v3661_v18, %v3661_v18 }
 0x5f6   : > { %4511 = vmatprep.subr.bf16.mxu1 %v5693_v28  ;;  %v5760_v28 = vld [vmem:[%s6671_s9 + $0x310] ss:$8 sps:$4 sm:$0xff]  }
 0x5f9   : > { %4512 = vmatpush1.bf16.msra.mxu1 %v5691_v21  ;;  %v5768_v21 = vld [vmem:[%s6671_s9 + $0x334] ss:$8 sps:$4 sm:$0xff]  }
 0x5fa   : > { %4513 = vmatprep.subr.bf16.mxu1 %v5696_v14  ;;  %v5766_v14 = vld [vmem:[%s6671_s9 + $0x330] ss:$8 sps:$4 sm:$0xff]  }
 0x5fd   : > { %4514 = vmatpush1.bf16.msra.mxu1 %v5694_v23  ;;  %v5771_v23 = vld [vmem:[%s6671_s9 + $0x344] ss:$8 sps:$4 sm:$0xff]  }
 0x5fe   : > { %4515 = vmatprep.subr.bf16.mxu1 %v5699_v17  ;;  %v5769_v17 = vld [vmem:[%s6671_s9 + $0x340] ss:$8 sps:$4 sm:$0xff]  }
 0x601   : > { %4516 = vmatpush1.bf16.msra.mxu1 %v5697_v31  ;;  %v5774_v31 = vld [vmem:[%s6671_s9 + $0x354] ss:$8 sps:$4 sm:$0xff]  }
 0x602   : > { %4517 = vmatprep.subr.bf16.mxu1 %v5702_v36  ;;  %v5772_v36 = vld [vmem:[%s6671_s9 + $0x350] ss:$8 sps:$4 sm:$0xff]  }
 0x605   : > { %4518 = vmatpush1.bf16.msra.mxu1 %v5700_v27  ;;  %v5777_v27 = vld [vmem:[%s6671_s9 + $0x364] ss:$8 sps:$4 sm:$0xff]  }
 0x606   : > { %4519 = vmatprep.subr.bf16.mxu1 %v5705_v46  ;;  %v5775_v46 = vld [vmem:[%s6671_s9 + $0x360] ss:$8 sps:$4 sm:$0xff]  }
 0x609   : > { %4520 = vmatpush1.bf16.msra.mxu1 %v5703_v44  ;;  %v5780_v44 = vld [vmem:[%s6671_s9 + $0x374] ss:$8 sps:$4 sm:$0xff]  }
 0x60a   : > { %4521 = vmatprep.subr.bf16.mxu1 %v5708_v30  ;;  %v5778_v30 = vld [vmem:[%s6671_s9 + $0x370] ss:$8 sps:$4 sm:$0xff]  }
 0x60d   : > { %4522 = vmatpush1.bf16.msra.mxu1 %v5706_v8  ;;  %v5786_v8 = vld [vmem:[%s6671_s9 + $0x394] ss:$8 sps:$4 sm:$0xff]  }
 0x60e   : > { %4532 = vmatprep.subr.bf16.mxu1 %v5711_v35  ;;  %v5784_v35 = vld [vmem:[%s6671_s9 + $0x390] ss:$8 sps:$4 sm:$0xff]  }
 0x610   : > { %4524 = vmatmul.mubr.bf16.vlgmr.msra.gmra.mrb[8].mxu1 %v3664_v33  ;;  %v5790_v33 = vld [vmem:[%s6671_s9 + $0x3b0] ss:$8 sps:$4 sm:$0xff]  }
 0x611   : > { %4533 = vmatpush1.bf16.msra.mxu1 %v5709_v41  ;;  %4564 = vmatprep.mubr.bf16.mxu1 %v3667_v42  ;;  %v5792_v41 = vld [vmem:[%s6671_s9 + $0x3b4] ss:$8 sps:$4 sm:$0xff]   ;;  %v5793_v42 = vld [vmem:[%s6671_s9 + $0x3c0] ss:$8 sps:$4 sm:$0xff]  }
 0x612   : > { %4534 = vmatprep.subr.bf16.mxu1 %v5714_v12  ;;  %v5795_v12 = vld [vmem:[%s6671_s9 + $0x3c4] ss:$8 sps:$4 sm:$0xff]  }
 0x615   : > { %4535 = vmatpush1.bf16.msra.mxu1 %v5712_v48  ;;  %v5798_v48 = vld [vmem:[%s6671_s9 + $0x3d4] ss:$8 sps:$4 sm:$0xff]  }
 0x616   : > { %4536 = vmatprep.subr.bf16.mxu1 %v5717_v7  ;;  %v5796_v7 = vld [vmem:[%s6671_s9 + $0x3d0] ss:$8 sps:$4 sm:$0xff]  }
 0x619   : > { %4537 = vmatpush1.bf16.msra.mxu1 %v5715_v45  ;;  %v5801_v45 = vld [vmem:[%s6671_s9 + $0x3e4] ss:$8 sps:$4 sm:$0xff]  }
 0x61a   : > { %4538 = vmatprep.subr.bf16.mxu1 %v5720_v47  ;;  %v5799_v47 = vld [vmem:[%s6671_s9 + $0x3e0] ss:$8 sps:$4 sm:$0xff]  }
 0x61d   : > { %4539 = vmatpush1.bf16.msra.mxu1 %v5718_v51  ;;  %v5804_v51 = vld [vmem:[%s6671_s9 + $0x3f4] ss:$8 sps:$4 sm:$0xff]  }
 0x61e   : > { %4540 = vmatprep.subr.bf16.mxu1 %v5723_v59  ;;  %v3652_v59 = vmul.f32 0.2, %v6969_v60 }
 0x621   : > { %4541 = vmatpush1.bf16.msra.mxu1 %v5721_v26  ;;  %v5802_v26 = vld [vmem:[%s6671_s9 + $0x3f0] ss:$8 sps:$4 sm:$0xff]  }
 0x622   : > { %4542 = vmatprep.subr.bf16.mxu1 %v5726_v50  ;;  %v3660_v50 = vsel %vm3644_vm13, %v6969_v60, %v3652_v59 }
 0x625   : > { %4543 = vmatpush1.bf16.msra.mxu1 %v5724_v54  ;;  %v3668_v54 = vpack.c.bf16 %v3660_v50, %v3660_v50 }
 0x626   : > { %4544 = vmatprep.subr.bf16.mxu1 %v5729_v56  ;;  %v3798_v56 = vld [vmem:[%s515_s24] sm:$0x3] }
 0x629   : > { %4545 = vmatpush1.bf16.msra.mxu1 %v5727_v37  ;;  %v3803_v37 = vrot.slane %v3798_v56, %v6680_v53 }
 0x62a   : > { %4546 = vmatprep.subr.bf16.mxu1 %v5732_v38  ;;  %v3807_v38 = vrot.slane %v3798_v56, %v6683_v55 }
 0x62d   : > { %4547 = vmatpush1.bf16.msra.mxu1 %v5730_v61 }
 0x62e   : > { %4548 = vmatprep.subr.bf16.mxu1 %v5735_v62 }
 0x631   : > { %4549 = vmatpush1.bf16.msra.mxu1 %v5733_v63 }
 0x632   : > { %4550 = vmatprep.subr.bf16.mxu1 %v5738_v4 }
 0x635   : > { %4551 = vmatpush1.bf16.msra.mxu1 %v5736_v43 }
 0x636   : > { %4552 = vmatprep.subr.bf16.mxu1 %v5741_v9 }
 0x639   : > { %4553 = vmatpush1.bf16.msra.mxu1 %v5739_v0 }
 0x63a   : > { %4554 = vmatprep.subr.bf16.mxu1 %v5744_v11 }
 0x63d   : > { %4555 = vmatpush1.bf16.msra.mxu1 %v5742_v25 }
 0x63e   : > { %4556 = vmatprep.subr.bf16.mxu1 %v5747_v13 }
 0x641   : > { %4557 = vmatpush1.bf16.msra.mxu1 %v5745_v1 }
 0x642   : > { %4558 = vmatprep.subr.bf16.mxu1 %v5750_v2 }
 0x645   : > { %4559 = vmatpush1.bf16.msra.mxu1 %v5748_v3 }
 0x646   : > { %4560 = vmatprep.subr.bf16.mxu1 %v5753_v49 }
 0x649   : > { %4561 = vmatpush1.bf16.msra.mxu1 %v5751_v5 }
 0x64a   : > { %4562 = vmatprep.subr.bf16.mxu1 %v5756_v6 }
 0x64d   : > { %4563 = vmatpush1.bf16.msra.mxu1 %v5754_v15 }
 0x64e   : > { %4573 = vmatprep.subr.bf16.mxu1 %v5759_v19 }
 0x650   : > { %4565 = vmatmul.mubr.bf16.vlgmr.msra.gmra.mrb[8].mxu1 %v3666_v22 }
 0x651   : > { %4574 = vmatpush1.bf16.msra.mxu1 %v5757_v20  ;;  %4605 = vmatprep.mubr.bf16.mxu1 %v3669_v29 }
 0x652   : > { %4575 = vmatprep.subr.bf16.mxu1 %v5762_v24 }
 0x655   : > { %4576 = vmatpush1.bf16.msra.mxu1 %v5760_v28 }
 0x656   : > { %4577 = vmatprep.subr.bf16.mxu1 %v5765_v57 }
 0x659   : > { %4578 = vmatpush1.bf16.msra.mxu1 %v5763_v58 }
 0x65a   : > { %4579 = vmatprep.subr.bf16.mxu1 %v5768_v21 }
 0x65d   : > { %4580 = vmatpush1.bf16.msra.mxu1 %v5766_v14 }
 0x65e   : > { %4581 = vmatprep.subr.bf16.mxu1 %v5771_v23 }
 0x661   : > { %4582 = vmatpush1.bf16.msra.mxu1 %v5769_v17 }
 0x662   : > { %4583 = vmatprep.subr.bf16.mxu1 %v5774_v31 }
 0x665   : > { %4584 = vmatpush1.bf16.msra.mxu1 %v5772_v36 }
 0x666   : > { %4585 = vmatprep.subr.bf16.mxu1 %v5777_v27 }
 0x669   : > { %4586 = vmatpush1.bf16.msra.mxu1 %v5775_v46 }
 0x66a   : > { %4587 = vmatprep.subr.bf16.mxu1 %v5780_v44 }
 0x66d   : > { %4588 = vmatpush1.bf16.msra.mxu1 %v5778_v30 }
 0x66e   : > { %4589 = vmatprep.subr.bf16.mxu1 %v5783_v34 }
 0x671   : > { %4590 = vmatpush1.bf16.msra.mxu1 %v5781_v32 }
 0x672   : > { %4591 = vmatprep.subr.bf16.mxu1 %v5786_v8 }
 0x675   : > { %4592 = vmatpush1.bf16.msra.mxu1 %v5784_v35 }
 0x676   : > { %4593 = vmatprep.subr.bf16.mxu1 %v5789_v39 }
 0x679   : > { %4594 = vmatpush1.bf16.msra.mxu1 %v5787_v40 }
 0x67a   : > { %4595 = vmatprep.subr.bf16.mxu1 %v5792_v41 }
 0x67d   : > { %4596 = vmatpush1.bf16.msra.mxu1 %v5790_v33 }
 0x67e   : > { %4597 = vmatprep.subr.bf16.mxu1 %v5795_v12 }
 0x681   : > { %4598 = vmatpush1.bf16.msra.mxu1 %v5793_v42 }
 0x682   : > { %4599 = vmatprep.subr.bf16.mxu1 %v5798_v48 }
 0x685   : > { %4600 = vmatpush1.bf16.msra.mxu1 %v5796_v7 }
 0x686   : > { %4601 = vmatprep.subr.bf16.mxu1 %v5801_v45 }
 0x689   : > { %4602 = vmatpush1.bf16.msra.mxu1 %v5799_v47 }
 0x68a   : > { %4603 = vmatprep.subr.bf16.mxu1 %v5804_v51 }
 0x68d   : > { %4604 = vmatpush1.bf16.msra.mxu1 %v5802_v26 }
 0x690   : > { %4606 = vmatmul.mubr.bf16.vlgmr.msra.gmra.mrb[8].mxu1 %v3668_v54 }
 0x763   : > { %v4607_v61 = vpop.f32.mrb[8].mxu1 }
 0x764   : > { %v5316_v62 = vadd.f32 %v4607_v61, %v3803_v37  ;;  %v4609_v63 = vpop.f32.mrb[9].mxu1 }
 0x765   : > { %v5317_v4 = vadd.f32 %v4609_v63, %v3807_v38  ;;  %v4611_v43 = vpop.f32.mrb[10].mxu1 }
 0x766   : > { %5829 = vtanh.f32 %v5316_v62  ;;  %v4612_v60 = vpop.f32.mrb[11].mxu1 }
 0x767   : > { %5831 = vtanh.f32 %v5317_v4 }
 0x770   : > { %v5830_v9 = vpop.eup %5829 }
 0x771   : > { %v5832_v53 = vpop.eup %5831  ;;  %4616 = vst [vmem:[%s558_s1] sm:$0xff] %v5830_v9 }
 0x772   : > { %4617 = vst [vmem:[%s558_s1 + $0x8] sm:$0xff] %v5832_v53 }
 0x773   : > { %6158 = shalt.err (!%p6155_p13)
}
 0x774   : > { %s6159_s22 = scalar_lea.hbm %s7089_s11, 256  ;;  %s6163_s13 = scalar_lea.hbm %s7210_s30, 768 }
 0x775   : > { %p6160_p11 = scmp.ne.s32.totalorder %s7089_s11, %s6159_s22  ;;  %p6164_p7 = scmp.lt.u32.totalorder %s7089_s11, %s7210_s30 }
 0x776   : > { %p6165_p2 = scmp.lt.u32.totalorder %s6163_s13, %s6159_s22  ;;  %p6167_p3 = scmp.lt.u32.totalorder %s6159_s22, %s7089_s11 }
 0x777   : > { %p6161_p4 = pnand %p6160_p11, %p7211_p5 }
 0x778   : > { %p6166_p9 = por %p6165_p2, %p6164_p7 }
 0x779   : > { %p6162_p6 = pneg %p6161_p4 }
 0x77a   : > { %p6168_p10 = por %p6167_p3, %p6166_p9 }
 0x77c   : > { %p6169_p0 = pnand %p6168_p10, %p6162_p6 }
 0x77e   : > { %6172 = shalt.err (!%p6169_p0)
}
 0x77f   : > { %5382 = dma.vmem_to_hbm [thread:$0]  (%p7211_p5), %s7091_s27, 256, %s7089_s11, %s4619_s7  }
 0x780 PF: > { %s7212_s10 = sld [smem:[#allocation28_spill]]  ;;  %s7213_s24 = sld [smem:[#allocation32_spill]] }
 0x781   : > { %p5442_p8 = scmp.ge.s32.totalorder %s6231_s20, 2 }
 0x786   : > { %s4645_s16 = sand.u32 1, %s7212_s10   ;;  %p7214_p1 = scmp.ne.s32.totalorder %s7213_s24, 0 }
 0x787   : > { %s4646_s25 = scalar_lea.sflag [#allocation4], %s4645_s16 }
 0x788   : > { %p5420_p12 = pnand %p5442_p8, %p7214_p1 }
 0x78a   : > { %6214 = dma.done.wait (!%p5420_p12), %s4646_s25, 256  }
 0x78b   : > { %6216 = vsyncadd (!%p5420_p12), %s4646_s25, 4294967040  ;;  %s7215_s20 = sld [smem:[#allocation30_spill]]  ;;  %s7216_s1 = sld [smem:[#allocation31_spill]] }
 0x78c   : > { %s7217_s17 = smov %s6223_s18  ;;  %s7218_s18 = smov %s6227_s19 }
 0x791   : > { %p29_p13 = scmp.ge.s32.totalorder %s7215_s20, 5   ;;  %s7219_s19 = smov %s7216_s1 }
 0x793   :  { %31 = sbr.rel (!%p29_p13) target bundleno = 18 (0x12), region = 157 }
 0x79a   :  { %4651 = vsyncpa [#allocation3], 1 }
 0x79b   :  { %4653 = vsyncpa [#allocation3 + $0x1], 1 }
 0x79c   :  { %4654 = vsyncpa [#allocation6], 1 }
 0x79d   :  { %4655 = vsyncpa [#allocation9], 1 }
 0x79e   :  { %4656 = vsyncpa [#allocation12], 1 }
 0x79f   :  { %4657 = vsyncpa [#allocation15], 1 }
 0x7a0   :  { %4658 = vsyncpa [#allocation18], 1 }
 0x7a1   :  { %4660 = vsyncpa [#allocation18 + $0x1], 1 }
 0x7a2   :  { %4661 = vsyncpa [#allocation4], 1 }
 0x7a3   :  { %4663 = vsyncpa [#allocation4 + $0x1], 1 }

</bundles_post_ra>
